<compile_context>
chip_gen: v7x
topology: tpu7x:2x2x1
jax: 0.10.0
libtpu: 0.0.40
codegen_flags: <defaults>
</compile_context>

<pallas_src>
import jax
import jax.numpy as jnp
from jax.experimental import pallas as pl
from jax.experimental.pallas import tpu as pltpu

BN_EPS = 1e-5          # PyTorch BatchNorm1d default eps
LEAKY_SLOPE = 0.2      # nn.LeakyReLU(0.2)


# ----------------------------------------------------------------------------- kernel
def unet_head_kernel(x_ref, wcat_ref, bcat_ref, w2_ref, slope_ref, slab_ref):
    m = x_ref.shape[1]
    x = x_ref[...].astype(jnp.bfloat16)                          # (TN, m) bf16 operand

    # MXU push #1 (bf16, K=m):
    #   lanes [0, m)      -> z = BN-folded Conv1d(m, m, 1)(x)
    #   lanes [m, m+C)    -> x @ Wl + bl   (the residual's linear term)
    #   remaining lanes   -> 0
    xcat = jnp.dot(x, wcat_ref[...],
                   preferred_element_type=jnp.float32) + bcat_ref[...]

    # LeakyReLU(0.2) on the feat lanes only: slope row is 0.2 in lanes [0, m)
    # and 1.0 elsewhere, so non-feat lanes pass through untouched.
    act = jnp.where(xcat < 0.0, xcat * slope_ref[...], xcat)
    # act: lanes [0,m) = feat ; lanes [m,m+C) = x@Wl + bl ; rest = 0

    # MXU push #2 (bf16, K=m): route feat into the logit lanes (feat @ Wl).
    # w2 is (m, slab_w), nonzero only in cols [m, m+C).
    feat_b = act[:, :m].astype(jnp.bfloat16)
    slab = act + jnp.dot(feat_b, w2_ref[...], preferred_element_type=jnp.float32)
    # slab = [ feat | (feat + x) @ Wl + bl | 0 ]

    slab_ref[...] = slab.astype(slab_ref.dtype)                  # lane-dense bf16 store


# --------------------------------------------------------------------- one-time prep
def prepare_unet_head_params(wc_t, bc, gamma, beta, mean, var, wl_t, bl):
    """Fold BatchNorm (eval mode) into the Conv1d and fuse everything into
    lane-dense bf16 weights.  Run ONCE per checkpoint, off the hot path.

    wc_t: (m, m) Conv1d(k=1) weight pre-transposed (in, out);  bc: (1, m) bias.
    gamma/beta/mean/var: (1, m) BatchNorm1d params / running stats.
    wl_t: (m, classes) Linear weight pre-transposed;  bl: (1, classes) bias.
    """
    f32 = jnp.float32
    m = wc_t.shape[0]
    classes = wl_t.shape[1]
    slab_w = max(128, ((m + classes + 127) // 128) * 128)

    # BN fold in full f32; cast to bf16 only at the very end (no double rounding).
    scale = gamma.astype(f32) * jax.lax.rsqrt(var.astype(f32) + BN_EPS)    # (1, m)
    w_fold = wc_t.astype(f32) * scale                                      # (m, m)
    b_fold = (bc.astype(f32) - mean.astype(f32)) * scale + beta.astype(f32)

    wcat = jnp.zeros((m, slab_w), f32)
    wcat = wcat.at[:, :m].set(w_fold).at[:, m:m + classes].set(wl_t.astype(f32))
    bcat = jnp.zeros((1, slab_w), f32)
    bcat = bcat.at[:, :m].set(b_fold).at[:, m:m + classes].set(bl.astype(f32))
    # Routing weight: only m rows (K=m in the kernel), wl_t in the logit columns.
    w2 = jnp.zeros((m, slab_w), f32)
    w2 = w2.at[:, m:m + classes].set(wl_t.astype(f32))
    # Per-lane LeakyReLU slope row: 0.2 on feat lanes, 1.0 elsewhere.
    lane = jnp.arange(slab_w, dtype=jnp.int32)[None, :]
    slope = jnp.where(lane < m, LEAKY_SLOPE, 1.0).astype(f32)

    params = (wcat.astype(jnp.bfloat16), bcat, w2.astype(jnp.bfloat16), slope)
    return jax.device_put(params), m, classes, slab_w


# --------------------------------------------------------------------------- tiling
def _auto_tile_n(N, max_tile=4096):
    """Single step for small N (one-TC chips); otherwise an even tile count so
    v7x's two TensorCores split the 'parallel' grid axis evenly."""
    if N <= 1024:
        n_tiles = 1
    else:
        n_tiles = max(2, -(-N // max_tile))
        if n_tiles % 2:
            n_tiles += 1
    tile_n = -(-N // n_tiles)
    tile_n = ((tile_n + 15) // 16) * 16          # bf16 sublane multiple
    return max(tile_n, 16)


# ------------------------------------------------------------------------- hot path
def unet_head_packed(x, wcat, bcat, w2, slope, *, tile_n=None,
                     out_dtype=jnp.bfloat16):
    """x: (N, m) point features (f32 output of the sparse UNet).

    Returns the packed lane-dense slab (n_pad, slab_w) in `out_dtype`:
      lanes [0, m)           = feat   (shape_embedding output)
      lanes [m, m+classes)   = logits (linear(feat + x))
      remaining lanes        = 0
    Rows >= N are padding (they hold the fused bias, not zeros) and must be
    ignored by the consumer.  Consumers should read the packed slab directly
    rather than re-slicing it through HBM.
    """
    N, m = x.shape
    slab_w = wcat.shape[1]
    if tile_n is None:
        tile_n = _auto_tile_n(N)
    assert tile_n % 16 == 0, "tile_n must be a multiple of the bf16 sublane tile"

    n_tiles = -(-N // tile_n)
    n_pad = n_tiles * tile_n
    x = x.astype(jnp.float32)
    if n_pad != N:
        x = jnp.pad(x, ((0, n_pad - N), (0, 0)))

    row = lambda i: (i, 0)           # tile along the point axis
    full = lambda i: (0, 0)          # resident (untiled) parameter blocks

    slab = pl.pallas_call(
        unet_head_kernel,
        out_shape=jax.ShapeDtypeStruct((n_pad, slab_w), out_dtype),
        grid_spec=pltpu.PrefetchScalarGridSpec(
            num_scalar_prefetch=0,
            grid=(n_tiles,),
            in_specs=[
                pl.BlockSpec((tile_n, m), row),          # x
                pl.BlockSpec((m, slab_w), full),         # fused conv||linear weight (bf16)
                pl.BlockSpec((1, slab_w), full),         # fused bias (f32)
                pl.BlockSpec((m, slab_w), full),         # feat->logit routing (bf16, K=m)
                pl.BlockSpec((1, slab_w), full),         # LeakyReLU slope row
            ],
            out_specs=pl.BlockSpec((tile_n, slab_w), row),
        ),
        compiler_params=pltpu.CompilerParams(
            dimension_semantics=("parallel",)),
    )(x, wcat, bcat, w2, slope)

    return slab


# ------------------------------------------------------------------------ reference
def reference(x, wc_t, bc, gamma, beta, mean, var, wl_t, bl):
    z = x @ wc_t + bc
    z = (z - mean) * jax.lax.rsqrt(var + BN_EPS) * gamma + beta
    feat = jnp.where(z >= 0, z, LEAKY_SLOPE * z)
    out = (feat + x) @ wl_t + bl
    return out, feat


if __name__ == "__main__":
    # Small, deterministic config: m=32 feature planes, 20 segmentation classes,
    # N=2500 points coming out of the (stubbed) sparse UNet + OutputLayer(3).
    # N is deliberately NOT a multiple of tile_n to exercise the padded-tail path.
    m = 32
    classes_seg = 20
    N = 2500

    key = jax.random.PRNGKey(0)
    kx, kwc, kbc, kg, kb, kmu, kvar, kwl, kbl = jax.random.split(key, 9)

    # Stand-in for sparseModel(batch_x) output (N, m).  TODO(synk): see header.
    x = jax.random.normal(kx, (N, m), dtype=jnp.float32)

    # shape_embedding: Conv1d(m, m, 1) params (weight pre-transposed: (in, out))
    wc_t = jax.random.normal(kwc, (m, m), dtype=jnp.float32) * 0.1
    bc = jax.random.normal(kbc, (1, m), dtype=jnp.float32) * 0.1
    # BatchNorm1d(m) params / running stats (eval mode fold)
    gamma = 1.0 + 0.1 * jax.random.normal(kg, (1, m), dtype=jnp.float32)
    beta = 0.1 * jax.random.normal(kb, (1, m), dtype=jnp.float32)
    mean = 0.1 * jax.random.normal(kmu, (1, m), dtype=jnp.float32)
    var = jnp.abs(jax.random.normal(kvar, (1, m), dtype=jnp.float32)) + 0.5
    # self.linear = nn.Linear(m, classes_seg)   (weight pre-transposed: (m, classes))
    wl_t = jax.random.normal(kwl, (m, classes_seg), dtype=jnp.float32) * 0.1
    bl = jax.random.normal(kbl, (1, classes_seg), dtype=jnp.float32) * 0.1

    # One-time weight prep (off the hot path, once per checkpoint).
    params, m_, classes_, slab_w = prepare_unet_head_params(
        wc_t, bc, gamma, beta, mean, var, wl_t, bl)

    # Hot path: a single pallas_call producing the packed slab.
    head = jax.jit(lambda pts: unet_head_packed(pts, *params))
    slab = head(x)
    jax.block_until_ready(slab)

    # Verification only: unpack feat / logits from the slab (consumers should
    # read the packed layout directly instead of paying this extra HBM pass).
    feat = slab[:N, :m].astype(jnp.float32)
    logits = slab[:N, m:m + classes_seg].astype(jnp.float32)

    ref_logits, ref_feat = reference(x, wc_t, bc, gamma, beta, mean, var, wl_t, bl)
    assert logits.shape == (N, classes_seg) and feat.shape == (N, m)
    # Outputs are stored in bf16 and the MXU runs on bf16 operands (f32 accumulate),
    # so compare with bf16-level tolerance.
    assert jnp.allclose(logits, ref_logits, atol=3e-2, rtol=3e-2)
    assert jnp.allclose(feat, ref_feat, atol=3e-2, rtol=3e-2)

    print("KERNEL_OK")
</pallas_src>

<mosaic_0001>
module attributes {stable_mosaic.version = 11 : i64} {
  func.func @unet_head_kernel(%arg0: i32, %arg1: memref<1264x32xf32, #tpu.memory_space<vmem>>, %arg2: memref<32x128xbf16, #tpu.memory_space<vmem>>, %arg3: memref<1x128xf32, #tpu.memory_space<vmem>>, %arg4: memref<32x128xbf16, #tpu.memory_space<vmem>>, %arg5: memref<1x128xf32, #tpu.memory_space<vmem>>, %arg6: memref<1264x128xbf16, #tpu.memory_space<vmem>>) attributes {dimension_semantics = [#tpu.dimension_semantics<parallel>], iteration_bounds = array<i64: 2>, scalar_prefetch = 0 : i64, scratch_operands = 0 : i64, tpu.core_type = #tpu.core_type<tc>, window_params = [{transform_indices = @transform_0, window_bounds = array<i64: 1264, 32>}, {pipeline_mode = #tpu.pipeline_mode<synchronous>, transform_indices = @transform_1, window_bounds = array<i64: 32, 128>}, {pipeline_mode = #tpu.pipeline_mode<synchronous>, transform_indices = @transform_2, window_bounds = array<i64: 1, 128>}, {pipeline_mode = #tpu.pipeline_mode<synchronous>, transform_indices = @transform_3, window_bounds = array<i64: 32, 128>}, {pipeline_mode = #tpu.pipeline_mode<synchronous>, transform_indices = @transform_4, window_bounds = array<i64: 1, 128>}, {transform_indices = @transform_5, window_bounds = array<i64: 1264, 128>}]} {
    %c0 = arith.constant 0 : index
    %c0_0 = arith.constant 0 : index
    %0 = vector.load %arg1[%c0, %c0_0] : memref<1264x32xf32, #tpu.memory_space<vmem>>, vector<1264x32xf32>
    %1 = arith.truncf %0 : vector<1264x32xf32> to vector<1264x32xbf16>
    %c0_1 = arith.constant 0 : index
    %c0_2 = arith.constant 0 : index
    %2 = vector.load %arg2[%c0_1, %c0_2] : memref<32x128xbf16, #tpu.memory_space<vmem>>, vector<32x128xbf16>
    %cst = arith.constant dense<0.000000e+00> : vector<1264x128xf32>
    %3 = tpu.matmul %1, %2, %cst {dimension_numbers = #tpu.dot_dimension_numbers<[1], [0], [0], [1], [0, 0, 1, 1], [], []>} : vector<1264x32xbf16>, vector<32x128xbf16>, vector<1264x128xf32> -> vector<1264x128xf32>
    %c0_3 = arith.constant 0 : index
    %c0_4 = arith.constant 0 : index
    %4 = vector.load %arg3[%c0_3, %c0_4] : memref<1x128xf32, #tpu.memory_space<vmem>>, vector<1x128xf32>
    %5 = vector.broadcast %4 : vector<1x128xf32> to vector<1264x128xf32>
    %6 = arith.addf %3, %5 : vector<1264x128xf32>
    %cst_5 = arith.constant 0.000000e+00 : f32
    %7 = vector.broadcast %cst_5 : f32 to vector<1264x128xf32>
    %8 = arith.cmpf olt, %6, %7 : vector<1264x128xf32>
    %c0_6 = arith.constant 0 : index
    %c0_7 = arith.constant 0 : index
    %9 = vector.load %arg5[%c0_6, %c0_7] : memref<1x128xf32, #tpu.memory_space<vmem>>, vector<1x128xf32>
    %10 = vector.broadcast %9 : vector<1x128xf32> to vector<1264x128xf32>
    %11 = arith.mulf %6, %10 : vector<1264x128xf32>
    %12 = arith.select %8, %11, %6 : vector<1264x128xi1>, vector<1264x128xf32>
    %13 = vector.extract_strided_slice %12 {offsets = [0, 0], sizes = [1264, 32], strides = [1, 1]} : vector<1264x128xf32> to vector<1264x32xf32>
    %14 = arith.truncf %13 : vector<1264x32xf32> to vector<1264x32xbf16>
    %c0_8 = arith.constant 0 : index
    %c0_9 = arith.constant 0 : index
    %15 = vector.load %arg4[%c0_8, %c0_9] : memref<32x128xbf16, #tpu.memory_space<vmem>>, vector<32x128xbf16>
    %cst_10 = arith.constant dense<0.000000e+00> : vector<1264x128xf32>
    %16 = tpu.matmul %14, %15, %cst_10 {dimension_numbers = #tpu.dot_dimension_numbers<[1], [0], [0], [1], [0, 0, 1, 1], [], []>} : vector<1264x32xbf16>, vector<32x128xbf16>, vector<1264x128xf32> -> vector<1264x128xf32>
    %17 = arith.addf %12, %16 : vector<1264x128xf32>
    %18 = arith.truncf %17 : vector<1264x128xf32> to vector<1264x128xbf16>
    %c0_11 = arith.constant 0 : index
    %c0_12 = arith.constant 0 : index
    %19 = vector.load %arg6[%c0_11, %c0_12] : memref<1264x128xbf16, #tpu.memory_space<vmem>>, vector<1264x128xbf16>
    tpu.vector_store %arg6[%c0_11, %c0_12], %18 {strides = array<i32>} : memref<1264x128xbf16, #tpu.memory_space<vmem>>, vector<1264x128xbf16>,
    return
  }
  func.func @transform_0(%arg0: i32) -> (i32, i32) {
    %c0_i32 = arith.constant 0 : i32
    %c0_i32_0 = arith.constant 0 : i32
    return %arg0, %c0_i32 : i32, i32
  }
  func.func @transform_1(%arg0: i32) -> (i32, i32) {
    %c0_i32 = arith.constant 0 : i32
    %c0_i32_0 = arith.constant 0 : i32
    %c0_i32_1 = arith.constant 0 : i32
    return %c0_i32, %c0_i32_0 : i32, i32
  }
  func.func @transform_2(%arg0: i32) -> (i32, i32) {
    %c0_i32 = arith.constant 0 : i32
    %c0_i32_0 = arith.constant 0 : i32
    %c0_i32_1 = arith.constant 0 : i32
    return %c0_i32, %c0_i32_0 : i32, i32
  }
  func.func @transform_3(%arg0: i32) -> (i32, i32) {
    %c0_i32 = arith.constant 0 : i32
    %c0_i32_0 = arith.constant 0 : i32
    %c0_i32_1 = arith.constant 0 : i32
    return %c0_i32, %c0_i32_0 : i32, i32
  }
  func.func @transform_4(%arg0: i32) -> (i32, i32) {
    %c0_i32 = arith.constant 0 : i32
    %c0_i32_0 = arith.constant 0 : i32
    %c0_i32_1 = arith.constant 0 : i32
    return %c0_i32, %c0_i32_0 : i32, i32
  }
  func.func @transform_5(%arg0: i32) -> (i32, i32) {
    %c0_i32 = arith.constant 0 : i32
    %c0_i32_0 = arith.constant 0 : i32
    return %arg0, %c0_i32 : i32, i32
  }
}

</mosaic_0001>

<bundles_post_ra>
// kernel: _lambda_.1
= control target key start
LH: loop header
LB: loop body
LE: loop exit
PB: predicated region body
PF: predicated region fallthrough
CT: control target
= control target key end

     0   :  { %10 = vsyncpa [#allocation3], 0  ;;  %s7635_s0 = inlined_call_operand.vmem [shape: f32[2528,32], index: 0, kind: input, shape index: {}]   ;;  %s7636_s1 = inlined_call_operand.vmem [shape: bf16[32,128], index: 1, kind: input, shape index: {}]   ;;  %s7637_s2 = inlined_call_operand.vmem [shape: f32[1,128], index: 2, kind: input, shape index: {}]   ;;  %s7638_s3 = inlined_call_operand.vmem [shape: bf16[32,128], index: 3, kind: input, shape index: {}]   ;;  %s7639_s4 = inlined_call_operand.vmem [shape: f32[1,128], index: 4, kind: input, shape index: {}]   ;;  %s7640_s5 = inlined_call_operand.hbm [shape: bf16[2528,128], index: 5, kind: output, shape index: {}]  }
   0x1   :  { %12 = vsyncpa [#allocation3 + $0x1], 0  ;;  %s5809_s18 = smov 0   ;;  %s5811_s19 = smov 0  }
   0x2   :  { %s5813_s20 = smov 0   ;;  %s5815_s21 = smov 0  }
   0x3 LB: > { %s5830_s22 = sadd.s32 4294967295, %s5772_s21   ;;  %s3892_s23 = sadd.s32 4294967294, %s5772_s21   ;;  %s5772_s21 = sphi %s5815_s21, %s7733_s21   ;;  %s5768_s20 = sphi %s5813_s20, %s7732_s20   ;;  %s5764_s19 = sphi %s5811_s19, %s7731_s19   ;;  %s5760_s18 = sphi %s5809_s18, %s7730_s18  }
   0x4   : > { %s5834_s24 = sadd.s32 1, %s5772_s21   ;;  %s135_s25 = sadd.s32 1, %s5768_s20 }
   0x5   : > { %s132_s26 = ssub.s32 %s5772_s21, %s5834_s24  ;;  %p145_p0 = scmp.ne.s32.totalorder %s5768_s20, %s5764_s19 }
   0x6   : > { %p133_p1 = scmp.eq.s32.totalorder %s132_s26, 0  ;;  %p146_p2 = scmp.eq.s32.totalorder %s5830_s22, 1 }
   0x7   : > { %p151_p3 = scmp.ne.s32.totalorder %s5764_s19, %s5760_s18  ;;  %p152_p4 = scmp.eq.s32.totalorder %s3892_s23, 1 }
   0x8   : > { %s5845_s27 = scalar_select %p133_p1, %s5768_s20, %s135_s25  }
   0x9   : > { %p5847_p5 = por %p146_p2, %p145_p0  ;;  %p5851_p6 = por %p152_p4, %p151_p3 }
   0xa   : > { %p3895_p7 = scmp.ge.s32.totalorder %s5772_s21, 1  ;;  %p191_p8 = scmp.lt.s32.totalorder %s5772_s21, 3 }
   0xc   : > { %p192_p9 = pnand %p3895_p7, %p191_p8 }
   0xe   : > { %195 = sbr.rel (%p192_p9) target bundleno = 1109 (0x455), region = 40 }
  0x15   : > { %v5700_v0 = vld [vmem:[%s7636_s1] sm:$0xff]   ;;  %v7642_v1 = vmov 0.0   ;;  %v5701_v2 = vld [vmem:[%s7636_s1 + $0x8] sm:$0xff]   ;;  %vm5775_vm0 = vmmov 0   ;;  %s219_s9 = smul.u32 158, %s5830_s22  ;;  %vm487_vm1 = vcmask 261120  }
  0x16   : > { %5016 = vmatprep.subr.bf16.mxu0 %v7642_v1  ;;  %5336 = vmatprep.subr.bf16.mxu1 %v7642_v1  ;;  %v5702_v39 = vld [vmem:[%s7638_s3] sm:$0xff]   ;;  %v5703_v40 = vld [vmem:[%s7638_s3 + $0x8] sm:$0xff]   ;;  %s4380_s30 = smul.u32 10112, %s5830_s22  ;;  %s5776_s14 = smov [#allocation2]  }
  0x17   : > { %5017 = vmatpush3.bf16.msra.mxu0 %v5700_v0  ;;  %5020 = vmatprep.mubr.msk.bf16.mxu0 %vm5775_vm0, %v7642_v1  ;;  %p220_p10 = scmp.lt.s32.totalorder %s219_s9, 315  ;;  %s5714_s15 = sshll.u32 %s5776_s14, 4  ;;  %s5715_s15 = int_to_ptr.vmem [resolvable:$false] %s5714_s15 }
  0x18   : > { %5018 = vmatprep.subr.bf16.mxu0 %v7642_v1  ;;  %5340 = vmatprep.mubr.msk.bf16.mxu1 %vm5775_vm0, %v7642_v1  ;;  %s5716_s16 = scalar_lea.vmem %s5715_s15, 20224 }
  0x19   : > { %s7735_s9 = smov (!%p220_p10, %s219_s9), 315  ;;  %5337 = vmatpush3.bf16.msra.mxu1 %v5702_v39 }
  0x1a   : > { %s3896_s10 = sshll.u32 %s7735_s9, 3  ;;  %5338 = vmatprep.subr.bf16.mxu1 %v7642_v1  ;;  %s7587_s9 = scalar_lea.hbm %s7640_s5, %s4380_s30 }
  0x1b   : > { %5019 = vmatpush3.bf16.msra.mxu0 %v5701_v2  ;;  %s5874_s13 = scalar_lea.vmem %s7635_s0, %s3896_s10  ;;  %s216_s10 = sand.u32 1, %s5764_s19  }
  0x1c   : > { %v227_v3 = vld [vmem:[%s5874_s13] sm:$0xff]  ;;  %v228_v4 = vld [vmem:[%s5874_s13 + $0x8] sm:$0xff]  ;;  %v229_v6 = vld [vmem:[%s5874_s13 + $0x10] sm:$0xff]  ;;  %s5656_s11 = smul.u32 632, %s216_s10  ;;  %s7594_s22 = scalar_lea.sflag [#allocation3], %s216_s10 }
  0x1d   : > { %v385_v5 = vpack.c.bf16 %v228_v4, %v227_v3  ;;  %v230_v7 = vld [vmem:[%s5874_s13 + $0x18] sm:$0xff]  ;;  %v231_v9 = vld [vmem:[%s5874_s13 + $0x20] sm:$0xff]  ;;  %v232_v10 = vld [vmem:[%s5874_s13 + $0x28] sm:$0xff]  ;;  %5339 = vmatpush3.bf16.msra.mxu1 %v5703_v40 }
  0x1e   : > { %v386_v8 = vpack.c.bf16 %v230_v7, %v229_v6  ;;  %v387_v11 = vpack.c.bf16 %v232_v10, %v231_v9  ;;  %v233_v12 = vld [vmem:[%s5874_s13 + $0x30] sm:$0xff]  ;;  %v234_v13 = vld [vmem:[%s5874_s13 + $0x38] sm:$0xff]  ;;  %v235_v15 = vld [vmem:[%s5874_s13 + $0x40] sm:$0xff]  ;;  %s6552_s12 = scalar_lea.vmem [#allocation2], %s5656_s11 }
  0x1f   : > { %5021 = vmatmul.mubr.msk.bf16.vlgmr.msra.gmra.mrb[0].mxu0 %vm487_vm1, %v385_v5  ;;  %v388_v14 = vpack.c.bf16 %v234_v13, %v233_v12  ;;  %v236_v16 = vld [vmem:[%s5874_s13 + $0x48] sm:$0xff]  ;;  %v237_v18 = vld [vmem:[%s5874_s13 + $0x50] sm:$0xff]  ;;  %v238_v19 = vld [vmem:[%s5874_s13 + $0x58] sm:$0xff]  ;;  %s3830_s6 = sshll.u32 %s6552_s12, 4  ;;  %s7589_s6 = int_to_ptr.vmem [resolvable:$true] %s3830_s6 }
  0x20   : > { %5024 = vmatprep.mubr.msk.bf16.mxu0 %vm5775_vm0, %v7642_v1  ;;  %v389_v17 = vpack.c.bf16 %v236_v16, %v235_v15  ;;  %v390_v20 = vpack.c.bf16 %v238_v19, %v237_v18  ;;  %v239_v21 = vld [vmem:[%s5874_s13 + $0x60] sm:$0xff]  ;;  %v240_v22 = vld [vmem:[%s5874_s13 + $0x68] sm:$0xff]  ;;  %v241_v24 = vld [vmem:[%s5874_s13 + $0x70] sm:$0xff]  ;;  %s5710_s11 = scalar_lea.vmem %s7589_s6, 10112  ;;  %p5717_p0 = scmp.lt.s32.totalorder %s7589_s6, %s5715_s15 }
  0x21   : > { %v391_v23 = vpack.c.bf16 %v240_v22, %v239_v21  ;;  %v242_v25 = vld [vmem:[%s5874_s13 + $0x78] sm:$0xff]  ;;  %v243_v27 = vld [vmem:[%s5874_s13 + $0x80] sm:$0xff]  ;;  %v244_v28 = vld [vmem:[%s5874_s13 + $0x88] sm:$0xff]  ;;  %p5711_p11 = scmp.ne.s32.totalorder %s7589_s6, %s5710_s11  ;;  %p5718_p1 = scmp.lt.s32.totalorder %s5716_s16, %s5710_s11 }
  0x22   : > { %v392_v26 = vpack.c.bf16 %v242_v25, %v241_v24  ;;  %v393_v29 = vpack.c.bf16 %v244_v28, %v243_v27  ;;  %v245_v30 = vld [vmem:[%s5874_s13 + $0x90] sm:$0xff]  ;;  %v246_v31 = vld [vmem:[%s5874_s13 + $0x98] sm:$0xff]  ;;  %v247_v33 = vld [vmem:[%s5874_s13 + $0xa0] sm:$0xff] }
  0x23   : > { %v394_v32 = vpack.c.bf16 %v246_v31, %v245_v30  ;;  %v248_v34 = vld [vmem:[%s5874_s13 + $0xa8] sm:$0xff]  ;;  %v249_v36 = vld [vmem:[%s5874_s13 + $0xb0] sm:$0xff]  ;;  %v250_v37 = vld [vmem:[%s5874_s13 + $0xb8] sm:$0xff]  ;;  %p5712_p12 = pnand %p5711_p11, %p5847_p5  ;;  %p5719_p2 = por %p5718_p1, %p5717_p0 }
  0x24   : > { %v395_v35 = vpack.c.bf16 %v248_v34, %v247_v33  ;;  %v396_v38 = vpack.c.bf16 %v250_v37, %v249_v36  ;;  %v251_v41 = vld [vmem:[%s5874_s13 + $0xc0] sm:$0xff]  ;;  %v252_v42 = vld [vmem:[%s5874_s13 + $0xc8] sm:$0xff]  ;;  %v253_v44 = vld [vmem:[%s5874_s13 + $0xd0] sm:$0xff] }
  0x25   : > { %v397_v43 = vpack.c.bf16 %v252_v42, %v251_v41  ;;  %v254_v45 = vld [vmem:[%s5874_s13 + $0xd8] sm:$0xff]  ;;  %v255_v47 = vld [vmem:[%s5874_s13 + $0xe0] sm:$0xff]  ;;  %v256_v48 = vld [vmem:[%s5874_s13 + $0xe8] sm:$0xff]  ;;  %p5713_p13 = pneg %p5712_p12 }
  0x26   : > { %v398_v46 = vpack.c.bf16 %v254_v45, %v253_v44  ;;  %v399_v49 = vpack.c.bf16 %v256_v48, %v255_v47  ;;  %v257_v50 = vld [vmem:[%s5874_s13 + $0xf0] sm:$0xff]  ;;  %v258_v51 = vld [vmem:[%s5874_s13 + $0xf8] sm:$0xff]  ;;  %v259_v53 = vld [vmem:[%s5874_s13 + $0x100] sm:$0xff] }
  0x27   : > { %5025 = vmatmul.mubr.msk.bf16.gmra.mrb[4].mxu0 %vm487_vm1, %v386_v8  ;;  %v400_v52 = vpack.c.bf16 %v258_v51, %v257_v50  ;;  %v260_v54 = vld [vmem:[%s5874_s13 + $0x108] sm:$0xff]  ;;  %v261_v56 = vld [vmem:[%s5874_s13 + $0x110] sm:$0xff]  ;;  %v262_v57 = vld [vmem:[%s5874_s13 + $0x118] sm:$0xff]  ;;  %p5720_p3 = pnand %p5719_p2, %p5713_p13 }
  0x28   : > { %5028 = vmatprep.mubr.msk.bf16.mxu0 %vm5775_vm0, %v7642_v1  ;;  %v401_v55 = vpack.c.bf16 %v260_v54, %v259_v53  ;;  %v402_v58 = vpack.c.bf16 %v262_v57, %v261_v56  ;;  %v263_v59 = vld [vmem:[%s5874_s13 + $0x120] sm:$0xff]  ;;  %v264_v60 = vld [vmem:[%s5874_s13 + $0x128] sm:$0xff]  ;;  %v265_v62 = vld [vmem:[%s5874_s13 + $0x130] sm:$0xff] }
  0x29   : > { %v403_v61 = vpack.c.bf16 %v264_v60, %v263_v59  ;;  %v266_v63 = vld [vmem:[%s5874_s13 + $0x138] sm:$0xff]  ;;  %v267_v2 = vld [vmem:[%s5874_s13 + $0x140] sm:$0xff]  ;;  %v268_v3 = vld [vmem:[%s5874_s13 + $0x148] sm:$0xff] }
  0x2a   : > { %v404_v0 = vpack.c.bf16 %v266_v63, %v265_v62  ;;  %v405_v4 = vpack.c.bf16 %v268_v3, %v267_v2  ;;  %v269_v5 = vld [vmem:[%s5874_s13 + $0x150] sm:$0xff]  ;;  %v270_v6 = vld [vmem:[%s5874_s13 + $0x158] sm:$0xff]  ;;  %v271_v8 = vld [vmem:[%s5874_s13 + $0x160] sm:$0xff] }
  0x2b   : > { %v406_v7 = vpack.c.bf16 %v270_v6, %v269_v5  ;;  %v272_v9 = vld [vmem:[%s5874_s13 + $0x168] sm:$0xff]  ;;  %v274_v12 = vld [vmem:[%s5874_s13 + $0x178] sm:$0xff]  ;;  %v281_v24 = vld [vmem:[%s5874_s13 + $0x1b0] sm:$0xff] }
  0x2c   : > { %v407_v10 = vpack.c.bf16 %v272_v9, %v271_v8  ;;  %v276_v15 = vld [vmem:[%s5874_s13 + $0x188] sm:$0xff]  ;;  %v278_v18 = vld [vmem:[%s5874_s13 + $0x198] sm:$0xff]  ;;  %v6028_v27 = vld [vmem:[%s7639_s4] ss:$0 sm:$0xff] }
  0x2d   : > { %v280_v21 = vld [vmem:[%s5874_s13 + $0x1a8] sm:$0xff]  ;;  %v282_v25 = vld [vmem:[%s5874_s13 + $0x1b8] sm:$0xff]  ;;  %v283_v36 = vld [vmem:[%s5874_s13 + $0x1c0] sm:$0xff] }
  0x2e   : > { %v412_v30 = vpack.c.bf16 %v282_v25, %v281_v24  ;;  %v284_v37 = vld [vmem:[%s5874_s13 + $0x1c8] sm:$0xff]  ;;  %v285_v50 = vld [vmem:[%s5874_s13 + $0x1d0] sm:$0xff]  ;;  %v286_v51 = vld [vmem:[%s5874_s13 + $0x1d8] sm:$0xff] }
  0x2f   : > { %5029 = vmatmul.mubr.msk.bf16.gmra.mrb[8].mxu0 %vm487_vm1, %v387_v11  ;;  %v273_v11 = vld [vmem:[%s5874_s13 + $0x170] sm:$0xff]  ;;  %v413_v44 = vpack.c.bf16 %v284_v37, %v283_v36  ;;  %v288_v2 = vld [vmem:[%s5874_s13 + $0x1e8] sm:$0xff] }
  0x30   : > { %5032 = vmatprep.mubr.msk.bf16.mxu0 %vm5775_vm0, %v7642_v1  ;;  %v408_v13 = vpack.c.bf16 %v274_v12, %v273_v11 }
  0x37   : > { %5033 = vmatmul.mubr.msk.bf16.gmra.mrb[12].mxu0 %vm487_vm1, %v388_v14  ;;  %v275_v14 = vld [vmem:[%s5874_s13 + $0x180] sm:$0xff] }
  0x38   : > { %5036 = vmatprep.mubr.msk.bf16.mxu0 %vm5775_vm0, %v7642_v1  ;;  %v409_v16 = vpack.c.bf16 %v276_v15, %v275_v14  ;;  %v289_v15 = vld [vmem:[%s5874_s13 + $0x1f0] sm:$0xff] }
  0x3f   : > { %5037 = vmatmul.mubr.msk.bf16.gmra.mrb[16].mxu0 %vm487_vm1, %v389_v17  ;;  %v277_v17 = vld [vmem:[%s5874_s13 + $0x190] sm:$0xff] }
  0x40   : > { %5040 = vmatprep.mubr.msk.bf16.mxu0 %vm5775_vm0, %v7642_v1  ;;  %v410_v19 = vpack.c.bf16 %v278_v18, %v277_v17 }
  0x47   : > { %5041 = vmatmul.mubr.msk.bf16.gmra.mrb[20].mxu0 %vm487_vm1, %v390_v20  ;;  %v279_v20 = vld [vmem:[%s5874_s13 + $0x1a0] sm:$0xff] }
  0x48   : > { %5044 = vmatprep.mubr.msk.bf16.mxu0 %vm5775_vm0, %v7642_v1  ;;  %v411_v22 = vpack.c.bf16 %v280_v21, %v279_v20 }
  0x4f   : > { %5045 = vmatmul.mubr.msk.bf16.gmra.mrb[24].mxu0 %vm487_vm1, %v391_v23  ;;  %v6019_v23 = vld [vmem:[%s7637_s2] ss:$0 sm:$0xff] }
  0x50   : > { %5048 = vmatprep.mubr.msk.bf16.mxu0 %vm5775_vm0, %v7642_v1 }
  0x57   : > { %5049 = vmatmul.mubr.msk.bf16.gmra.mrb[28].mxu0 %vm487_vm1, %v392_v26 }
  0x58   : > { %5052 = vmatprep.mubr.msk.bf16.mxu0 %vm5775_vm0, %v7642_v1 }
  0x5f   : > { %5053 = vmatmul.mubr.msk.bf16.gmra.mrb[32].mxu0 %vm487_vm1, %v393_v29 }
  0x60   : > { %5056 = vmatprep.mubr.msk.bf16.mxu0 %vm5775_vm0, %v7642_v1 }
  0x67   : > { %5057 = vmatmul.mubr.msk.bf16.gmra.mrb[36].mxu0 %vm487_vm1, %v394_v32 }
  0x68   : > { %5060 = vmatprep.mubr.msk.bf16.mxu0 %vm5775_vm0, %v7642_v1 }
  0x6f   : > { %5061 = vmatmul.mubr.msk.bf16.gmra.mrb[40].mxu0 %vm487_vm1, %v395_v35 }
  0x70   : > { %5064 = vmatprep.mubr.msk.bf16.mxu0 %vm5775_vm0, %v7642_v1 }
  0x77   : > { %5065 = vmatmul.mubr.msk.bf16.gmra.mrb[44].mxu0 %vm487_vm1, %v396_v38 }
  0x78   : > { %5068 = vmatprep.mubr.msk.bf16.mxu0 %vm5775_vm0, %v7642_v1 }
  0x7f   : > { %5069 = vmatmul.mubr.msk.bf16.gmra.mrb[48].mxu0 %vm487_vm1, %v397_v43 }
  0x80   : > { %5072 = vmatprep.mubr.msk.bf16.mxu0 %vm5775_vm0, %v7642_v1 }
  0x87   : > { %5073 = vmatmul.mubr.msk.bf16.gmra.mrb[52].mxu0 %vm487_vm1, %v398_v46 }
  0x88   : > { %5076 = vmatprep.mubr.msk.bf16.mxu0 %vm5775_vm0, %v7642_v1 }
  0x8f   : > { %5077 = vmatmul.mubr.msk.bf16.gmra.mrb[56].mxu0 %vm487_vm1, %v399_v49 }
  0x90   : > { %5080 = vmatprep.mubr.msk.bf16.mxu0 %vm5775_vm0, %v7642_v1 }
  0x97   : > { %5081 = vmatmul.mubr.msk.bf16.gmra.mrb[60].mxu0 %vm487_vm1, %v400_v52 }
  0x98   : > { %5084 = vmatprep.mubr.msk.bf16.mxu0 %vm5775_vm0, %v7642_v1 }
  0x9f   : > { %5085 = vmatmul.mubr.msk.bf16.gmra.mrb[64].mxu0 %vm487_vm1, %v401_v55 }
  0xa0   : > { %5088 = vmatprep.mubr.msk.bf16.mxu0 %vm5775_vm0, %v7642_v1 }
  0xa7   : > { %5089 = vmatmul.mubr.msk.bf16.gmra.mrb[68].mxu0 %vm487_vm1, %v402_v58  ;;  %v414_v58 = vpack.c.bf16 %v286_v51, %v285_v50 }
  0xa8   : > { %5092 = vmatprep.mubr.msk.bf16.mxu0 %vm5775_vm0, %v7642_v1 }
  0xaf   : > { %5093 = vmatmul.mubr.msk.bf16.gmra.mrb[72].mxu0 %vm487_vm1, %v403_v61 }
  0xb0   : > { %5096 = vmatprep.mubr.msk.bf16.mxu0 %vm5775_vm0, %v7642_v1 }
  0xb7   : > { %5097 = vmatmul.mubr.msk.bf16.gmra.mrb[76].mxu0 %vm487_vm1, %v404_v0  ;;  %v287_v0 = vld [vmem:[%s5874_s13 + $0x1e0] sm:$0xff] }
  0xb8   : > { %5100 = vmatprep.mubr.msk.bf16.mxu0 %vm5775_vm0, %v7642_v1  ;;  %v415_v9 = vpack.c.bf16 %v288_v2, %v287_v0  ;;  %v296_v0 = vld [vmem:[%s5874_s13 + $0x228] sm:$0xff] }
  0xbf   : > { %5101 = vmatmul.mubr.msk.bf16.gmra.mrb[80].mxu0 %vm487_vm1, %v405_v4 }
  0xc0   : > { %5104 = vmatprep.mubr.msk.bf16.mxu0 %vm5775_vm0, %v7642_v1 }
  0xc7   : > { %5105 = vmatmul.mubr.msk.bf16.gmra.mrb[84].mxu0 %vm487_vm1, %v406_v7 }
  0xc8   : > { %5108 = vmatprep.mubr.msk.bf16.mxu0 %vm5775_vm0, %v7642_v1 }
  0xcf   : > { %5109 = vmatmul.mubr.msk.bf16.gmra.mrb[88].mxu0 %vm487_vm1, %v407_v10 }
  0xd0   : > { %5112 = vmatprep.mubr.msk.bf16.mxu0 %vm5775_vm0, %v7642_v1 }
  0xd7   : > { %5113 = vmatmul.mubr.msk.bf16.gmra.mrb[92].mxu0 %vm487_vm1, %v408_v13 }
  0xd8   : > { %5116 = vmatprep.mubr.msk.bf16.mxu0 %vm5775_vm0, %v7642_v1 }
  0xdf   : > { %5117 = vmatmul.mubr.msk.bf16.gmra.mrb[96].mxu0 %vm487_vm1, %v409_v16  ;;  %v290_v16 = vld [vmem:[%s5874_s13 + $0x1f8] sm:$0xff] }
  0xe0   : > { %5120 = vmatprep.mubr.msk.bf16.mxu0 %vm5775_vm0, %v7642_v1  ;;  %v416_v24 = vpack.c.bf16 %v290_v16, %v289_v15  ;;  %v297_v16 = vld [vmem:[%s5874_s13 + $0x230] sm:$0xff] }
  0xe7   : > { %5121 = vmatmul.mubr.msk.bf16.gmra.mrb[100].mxu0 %vm487_vm1, %v410_v19 }
  0xe8   : > { %5124 = vmatprep.mubr.msk.bf16.mxu0 %vm5775_vm0, %v7642_v1 }
  0xef   : > { %5125 = vmatmul.mubr.msk.bf16.gmra.mrb[104].mxu0 %vm487_vm1, %v411_v22 }
  0xf0   : > { %5128 = vmatprep.mubr.msk.bf16.mxu0 %vm5775_vm0, %v7642_v1 }
  0xf2   : > { %v759_v26 = vpop.f32.mrb[0].mxu0 }
  0xf3   : > { %v760_v28 = vadd.f32 %v6019_v23, %v759_v26  ;;  %v5022_v29 = vpop.f32.mrb[1].mxu0 }
  0xf4   : > { %v762_v31 = vpop.f32.mrb[2].mxu0 }
  0xf5   : > { %v1555_v32 = vmul.f32 %v6028_v27, %v760_v28  ;;  %v763_v33 = vadd.f32 %v6019_v23, %v762_v31  ;;  %v5023_v34 = vpop.f32.mrb[3].mxu0  ;;  %vm1390_vm2 = vcmp.lt.f32.partialorder %v760_v28, 0.0  ;;  %v291_v31 = vld [vmem:[%s5874_s13 + $0x200] sm:$0xff] }
  0xf7   : > { %vm1391_vm3 = vcmp.lt.f32.partialorder %v763_v33, 0.0  ;;  %v1556_v35 = vmul.f32 %v6028_v27, %v763_v33  ;;  %5129 = vmatmul.mubr.msk.bf16.gmra.mrb[108].mxu0 %vm487_vm1, %v412_v30  ;;  %v6039_v38 = vsel %vm1390_vm2, %v1555_v32, %v760_v28  ;;  %v292_v32 = vld [vmem:[%s5874_s13 + $0x208] sm:$0xff] }
  0xf8   : > { %5132 = vmatprep.mubr.msk.bf16.mxu0 %vm5775_vm0, %v7642_v1 }
  0xf9   : > { %v6041_v39 = vsel %vm1391_vm3, %v1556_v35, %v763_v33 }
  0xfa   : > { %v767_v40 = vpop.f32.mrb[4].mxu0  ;;  %v1871_v41 = vpack.c.bf16 %v6041_v39, %v6039_v38 }
  0xfb   : > { %v768_v42 = vadd.f32 %v6019_v23, %v767_v40  ;;  %v5026_v43 = vpop.f32.mrb[5].mxu0 }
  0xfc   : > { %v770_v45 = vpop.f32.mrb[6].mxu0  ;;  %5341 = vmatmul.mubr.msk.bf16.vlgmr.msra.gmra.mrb[0].mxu1 %vm487_vm1, %v1871_v41  ;;  %v417_v41 = vpack.c.bf16 %v292_v32, %v291_v31 }
  0xfd   : > { %v1557_v46 = vmul.f32 %v6028_v27, %v768_v42  ;;  %v771_v47 = vadd.f32 %v6019_v23, %v770_v45  ;;  %v5027_v48 = vpop.f32.mrb[7].mxu0  ;;  %5344 = vmatprep.mubr.msk.bf16.mxu1 %vm5775_vm0, %v7642_v1  ;;  %vm1392_vm4 = vcmp.lt.f32.partialorder %v768_v42, 0.0 }
  0xfe   : > { %v294_v48 = vld [vmem:[%s5874_s13 + $0x218] sm:$0xff] }
  0xff   : > { %vm1393_vm5 = vcmp.lt.f32.partialorder %v771_v47, 0.0  ;;  %v1558_v49 = vmul.f32 %v6028_v27, %v771_v47  ;;  %5133 = vmatmul.mubr.msk.bf16.gmra.mrb[112].mxu0 %vm487_vm1, %v413_v44  ;;  %v6057_v52 = vsel %vm1392_vm4, %v1557_v46, %v768_v42 }
 0x100   : > { %5136 = vmatprep.mubr.msk.bf16.mxu0 %vm5775_vm0, %v7642_v1 }
 0x101   : > { %v6059_v53 = vsel %vm1393_vm5, %v1558_v49, %v771_v47  ;;  %v293_v47 = vld [vmem:[%s5874_s13 + $0x210] sm:$0xff] }
 0x102   : > { %v775_v54 = vpop.f32.mrb[8].mxu0  ;;  %v1872_v55 = vpack.c.bf16 %v6059_v53, %v6057_v52 }
 0x103   : > { %v776_v56 = vadd.f32 %v6019_v23, %v775_v54  ;;  %v5030_v57 = vpop.f32.mrb[9].mxu0 }
 0x104   : > { %v778_v59 = vpop.f32.mrb[10].mxu0  ;;  %5345 = vmatmul.mubr.msk.bf16.gmra.mrb[4].mxu1 %vm487_vm1, %v1872_v55  ;;  %v418_v57 = vpack.c.bf16 %v294_v48, %v293_v47 }
 0x105   : > { %v1559_v60 = vmul.f32 %v6028_v27, %v776_v56  ;;  %v779_v61 = vadd.f32 %v6019_v23, %v778_v59  ;;  %v5031_v62 = vpop.f32.mrb[11].mxu0  ;;  %5348 = vmatprep.mubr.msk.bf16.mxu1 %vm5775_vm0, %v7642_v1  ;;  %vm1394_vm6 = vcmp.lt.f32.partialorder %v776_v56, 0.0 }
 0x107   : > { %vm1395_vm7 = vcmp.lt.f32.partialorder %v779_v61, 0.0  ;;  %v1560_v63 = vmul.f32 %v6028_v27, %v779_v61  ;;  %5137 = vmatmul.mubr.msk.bf16.gmra.mrb[116].mxu0 %vm487_vm1, %v414_v58  ;;  %v6075_v3 = vsel %vm1394_vm6, %v1559_v60, %v776_v56 }
 0x108   : > { %5140 = vmatprep.mubr.msk.bf16.mxu0 %vm5775_vm0, %v7642_v1 }
 0x109   : > { %v6077_v4 = vsel %vm1395_vm7, %v1560_v63, %v779_v61  ;;  %v295_v63 = vld [vmem:[%s5874_s13 + $0x220] sm:$0xff] }
 0x10a   : > { %v783_v5 = vpop.f32.mrb[12].mxu0  ;;  %v1873_v6 = vpack.c.bf16 %v6077_v4, %v6075_v3 }
 0x10b   : > { %v784_v7 = vadd.f32 %v6019_v23, %v783_v5  ;;  %v5034_v8 = vpop.f32.mrb[13].mxu0 }
 0x10c   : > { %v786_v10 = vpop.f32.mrb[14].mxu0  ;;  %5349 = vmatmul.mubr.msk.bf16.gmra.mrb[8].mxu1 %vm487_vm1, %v1873_v6 }
 0x10d   : > { %v1561_v11 = vmul.f32 %v6028_v27, %v784_v7  ;;  %v787_v12 = vadd.f32 %v6019_v23, %v786_v10  ;;  %v5035_v13 = vpop.f32.mrb[15].mxu0  ;;  %5352 = vmatprep.mubr.msk.bf16.mxu1 %vm5775_vm0, %v7642_v1  ;;  %vm1396_vm8 = vcmp.lt.f32.partialorder %v784_v7, 0.0  ;;  %v419_v10 = vpack.c.bf16 %v296_v0, %v295_v63 }
 0x10f   : > { %vm1397_vm9 = vcmp.lt.f32.partialorder %v787_v12, 0.0  ;;  %v1562_v14 = vmul.f32 %v6028_v27, %v787_v12  ;;  %5141 = vmatmul.mubr.msk.bf16.gmra.mrb[120].mxu0 %vm487_vm1, %v415_v9  ;;  %v6093_v17 = vsel %vm1396_vm8, %v1561_v11, %v784_v7 }
 0x110   : > { %5144 = vmatprep.mubr.msk.bf16.mxu0 %vm5775_vm0, %v7642_v1 }
 0x111   : > { %v6095_v18 = vsel %vm1397_vm9, %v1562_v14, %v787_v12 }
 0x112   : > { %v791_v19 = vpop.f32.mrb[16].mxu0  ;;  %v1874_v20 = vpack.c.bf16 %v6095_v18, %v6093_v17 }
 0x113   : > { %v792_v21 = vadd.f32 %v6019_v23, %v791_v19  ;;  %v5038_v22 = vpop.f32.mrb[17].mxu0  ;;  %v298_v19 = vld [vmem:[%s5874_s13 + $0x238] sm:$0xff] }
 0x114   : > { %v794_v25 = vpop.f32.mrb[18].mxu0  ;;  %5353 = vmatmul.mubr.msk.bf16.gmra.mrb[12].mxu1 %vm487_vm1, %v1874_v20 }
 0x115   : > { %v1563_v26 = vmul.f32 %v6028_v27, %v792_v21  ;;  %v795_v28 = vadd.f32 %v6019_v23, %v794_v25  ;;  %v5039_v29 = vpop.f32.mrb[19].mxu0  ;;  %5356 = vmatprep.mubr.msk.bf16.mxu1 %vm5775_vm0, %v7642_v1  ;;  %vm1398_vm10 = vcmp.lt.f32.partialorder %v792_v21, 0.0 }
 0x117   : > { %vm1399_vm11 = vcmp.lt.f32.partialorder %v795_v28, 0.0  ;;  %v1564_v30 = vmul.f32 %v6028_v27, %v795_v28  ;;  %5145 = vmatmul.mubr.msk.bf16.gmra.mrb[124].mxu0 %vm487_vm1, %v416_v24  ;;  %v6111_v33 = vsel %vm1398_vm10, %v1563_v26, %v792_v21 }
 0x118   : > { %5148 = vmatprep.mubr.msk.bf16.mxu0 %vm5775_vm0, %v7642_v1 }
 0x119   : > { %v6113_v34 = vsel %vm1399_vm11, %v1564_v30, %v795_v28  ;;  %v420_v28 = vpack.c.bf16 %v298_v19, %v297_v16 }
 0x11a   : > { %v799_v35 = vpop.f32.mrb[20].mxu0  ;;  %v1875_v36 = vpack.c.bf16 %v6113_v34, %v6111_v33 }
 0x11b   : > { %v800_v37 = vadd.f32 %v6019_v23, %v799_v35  ;;  %v5042_v40 = vpop.f32.mrb[21].mxu0 }
 0x11c   : > { %v802_v42 = vpop.f32.mrb[22].mxu0  ;;  %5357 = vmatmul.mubr.msk.bf16.gmra.mrb[16].mxu1 %vm487_vm1, %v1875_v36  ;;  %v299_v36 = vld [vmem:[%s5874_s13 + $0x240] sm:$0xff] }
 0x11d   : > { %v1565_v43 = vmul.f32 %v6028_v27, %v800_v37  ;;  %v803_v44 = vadd.f32 %v6019_v23, %v802_v42  ;;  %v5043_v45 = vpop.f32.mrb[23].mxu0  ;;  %5360 = vmatprep.mubr.msk.bf16.mxu1 %vm5775_vm0, %v7642_v1  ;;  %vm1400_vm12 = vcmp.lt.f32.partialorder %v800_v37, 0.0 }
 0x11f   : > { %vm1401_vm13 = vcmp.lt.f32.partialorder %v803_v44, 0.0  ;;  %v1566_v46 = vmul.f32 %v6028_v27, %v803_v44  ;;  %5149 = vmatmul.mubr.msk.bf16.gmra.mrb[128].mxu0 %vm487_vm1, %v417_v41  ;;  %v6129_v49 = vsel %vm1400_vm12, %v1565_v43, %v800_v37  ;;  %v300_v37 = vld [vmem:[%s5874_s13 + $0x248] sm:$0xff] }
 0x120   : > { %5152 = vmatprep.mubr.msk.bf16.mxu0 %vm5775_vm0, %v7642_v1 }
 0x121   : > { %v6131_v50 = vsel %vm1401_vm13, %v1566_v46, %v803_v44  ;;  %v421_v46 = vpack.c.bf16 %v300_v37, %v299_v36 }
 0x122   : > { %v807_v51 = vpop.f32.mrb[24].mxu0  ;;  %v1876_v54 = vpack.c.bf16 %v6131_v50, %v6129_v49 }
 0x123   : > { %v808_v55 = vadd.f32 %v6019_v23, %v807_v51  ;;  %v5046_v56 = vpop.f32.mrb[25].mxu0 }
 0x124   : > { %v810_v58 = vpop.f32.mrb[26].mxu0  ;;  %5361 = vmatmul.mubr.msk.bf16.gmra.mrb[20].mxu1 %vm487_vm1, %v1876_v54  ;;  %v301_v56 = vld [vmem:[%s5874_s13 + $0x250] sm:$0xff] }
 0x125   : > { %v1567_v59 = vmul.f32 %v6028_v27, %v808_v55  ;;  %v811_v60 = vadd.f32 %v6019_v23, %v810_v58  ;;  %v5047_v61 = vpop.f32.mrb[27].mxu0  ;;  %5364 = vmatprep.mubr.msk.bf16.mxu1 %vm5775_vm0, %v7642_v1  ;;  %vm1402_vm14 = vcmp.lt.f32.partialorder %v808_v55, 0.0 }
 0x127   : > { %vm1403_vm15 = vcmp.lt.f32.partialorder %v811_v60, 0.0  ;;  %v1568_v62 = vmul.f32 %v6028_v27, %v811_v60  ;;  %5153 = vmatmul.mubr.msk.bf16.gmra.mrb[132].mxu0 %vm487_vm1, %v418_v57  ;;  %v6147_v2 = vsel %vm1402_vm14, %v1567_v59, %v808_v55  ;;  %v302_v57 = vld [vmem:[%s5874_s13 + $0x258] sm:$0xff] }
 0x128   : > { %5156 = vmatprep.mubr.msk.bf16.mxu0 %vm5775_vm0, %v7642_v1  ;;  %v422_v0 = vpack.c.bf16 %v302_v57, %v301_v56  ;;  %v308_v56 = vld [vmem:[%s5874_s13 + $0x288] sm:$0xff] }
 0x129   : > { %v6149_v5 = vsel %vm1403_vm15, %v1568_v62, %v811_v60 }
 0x12a   : > { %v815_v6 = vpop.f32.mrb[28].mxu0  ;;  %v1877_v7 = vpack.c.bf16 %v6149_v5, %v6147_v2 }
 0x12b   : > { %v816_v8 = vadd.f32 %v6019_v23, %v815_v6  ;;  %v5050_v9 = vpop.f32.mrb[29].mxu0 }
 0x12c   : > { %v818_v11 = vpop.f32.mrb[30].mxu0  ;;  %5365 = vmatmul.mubr.msk.bf16.gmra.mrb[24].mxu1 %vm487_vm1, %v1877_v7 }
 0x12d   : > { %v1569_v12 = vmul.f32 %v6028_v27, %v816_v8  ;;  %v819_v13 = vadd.f32 %v6019_v23, %v818_v11  ;;  %v5051_v14 = vpop.f32.mrb[31].mxu0  ;;  %5368 = vmatprep.mubr.msk.bf16.mxu1 %vm5775_vm0, %v7642_v1  ;;  %vm1404_vm2 = vcmp.lt.f32.partialorder %v816_v8, 0.0  ;;  %v303_v11 = vld [vmem:[%s5874_s13 + $0x260] sm:$0xff] }
 0x12f   : > { %vm1405_vm3 = vcmp.lt.f32.partialorder %v819_v13, 0.0  ;;  %v1570_v15 = vmul.f32 %v6028_v27, %v819_v13  ;;  %5157 = vmatmul.mubr.msk.bf16.gmra.mrb[136].mxu0 %vm487_vm1, %v419_v10  ;;  %v6165_v20 = vsel %vm1404_vm2, %v1569_v12, %v816_v8  ;;  %v304_v12 = vld [vmem:[%s5874_s13 + $0x268] sm:$0xff] }
 0x130   : > { %5160 = vmatprep.mubr.msk.bf16.mxu0 %vm5775_vm0, %v7642_v1 }
 0x131   : > { %v6167_v21 = vsel %vm1405_vm3, %v1570_v15, %v819_v13 }
 0x132   : > { %v823_v22 = vpop.f32.mrb[32].mxu0  ;;  %v1878_v24 = vpack.c.bf16 %v6167_v21, %v6165_v20 }
 0x133   : > { %v824_v25 = vadd.f32 %v6019_v23, %v823_v22  ;;  %v5054_v26 = vpop.f32.mrb[33].mxu0 }
 0x134   : > { %v826_v29 = vpop.f32.mrb[34].mxu0  ;;  %5369 = vmatmul.mubr.msk.bf16.gmra.mrb[28].mxu1 %vm487_vm1, %v1878_v24  ;;  %v423_v24 = vpack.c.bf16 %v304_v12, %v303_v11  ;;  %v309_v12 = vld [vmem:[%s5874_s13 + $0x290] sm:$0xff] }
 0x135   : > { %v1571_v30 = vmul.f32 %v6028_v27, %v824_v25  ;;  %v827_v31 = vadd.f32 %v6019_v23, %v826_v29  ;;  %v5055_v32 = vpop.f32.mrb[35].mxu0  ;;  %5372 = vmatprep.mubr.msk.bf16.mxu1 %vm5775_vm0, %v7642_v1  ;;  %vm1406_vm4 = vcmp.lt.f32.partialorder %v824_v25, 0.0 }
 0x136   : > { %v306_v32 = vld [vmem:[%s5874_s13 + $0x278] sm:$0xff] }
 0x137   : > { %vm1407_vm5 = vcmp.lt.f32.partialorder %v827_v31, 0.0  ;;  %v1572_v35 = vmul.f32 %v6028_v27, %v827_v31  ;;  %5161 = vmatmul.mubr.msk.bf16.gmra.mrb[140].mxu0 %vm487_vm1, %v420_v28  ;;  %v6183_v40 = vsel %vm1406_vm4, %v1571_v30, %v824_v25 }
 0x138   : > { %5164 = vmatprep.mubr.msk.bf16.mxu0 %vm5775_vm0, %v7642_v1 }
 0x139   : > { %v6185_v41 = vsel %vm1407_vm5, %v1572_v35, %v827_v31  ;;  %v305_v31 = vld [vmem:[%s5874_s13 + $0x270] sm:$0xff] }
 0x13a   : > { %v831_v42 = vpop.f32.mrb[36].mxu0  ;;  %v1879_v43 = vpack.c.bf16 %v6185_v41, %v6183_v40 }
 0x13b   : > { %v832_v44 = vadd.f32 %v6019_v23, %v831_v42  ;;  %v5058_v45 = vpop.f32.mrb[37].mxu0 }
 0x13c   : > { %v834_v47 = vpop.f32.mrb[38].mxu0  ;;  %5373 = vmatmul.mubr.msk.bf16.gmra.mrb[32].mxu1 %vm487_vm1, %v1879_v43  ;;  %v424_v45 = vpack.c.bf16 %v306_v32, %v305_v31 }
 0x13d   : > { %v1573_v48 = vmul.f32 %v6028_v27, %v832_v44  ;;  %v835_v51 = vadd.f32 %v6019_v23, %v834_v47  ;;  %v5059_v54 = vpop.f32.mrb[39].mxu0  ;;  %5376 = vmatprep.mubr.msk.bf16.mxu1 %vm5775_vm0, %v7642_v1  ;;  %vm1408_vm6 = vcmp.lt.f32.partialorder %v832_v44, 0.0 }
 0x13f   : > { %vm1409_vm7 = vcmp.lt.f32.partialorder %v835_v51, 0.0  ;;  %v1574_v55 = vmul.f32 %v6028_v27, %v835_v51  ;;  %5165 = vmatmul.mubr.msk.bf16.gmra.mrb[144].mxu0 %vm487_vm1, %v421_v46  ;;  %v6201_v58 = vsel %vm1408_vm6, %v1573_v48, %v832_v44 }
 0x140   : > { %5168 = vmatprep.mubr.msk.bf16.mxu0 %vm5775_vm0, %v7642_v1 }
 0x141   : > { %v6203_v59 = vsel %vm1409_vm7, %v1574_v55, %v835_v51  ;;  %v307_v55 = vld [vmem:[%s5874_s13 + $0x280] sm:$0xff] }
 0x142   : > { %v839_v60 = vpop.f32.mrb[40].mxu0  ;;  %v1880_v61 = vpack.c.bf16 %v6203_v59, %v6201_v58 }
 0x143   : > { %v840_v62 = vadd.f32 %v6019_v23, %v839_v60  ;;  %v5062_v63 = vpop.f32.mrb[41].mxu0 }
 0x144   : > { %v842_v6 = vpop.f32.mrb[42].mxu0  ;;  %5377 = vmatmul.mubr.msk.bf16.gmra.mrb[36].mxu1 %vm487_vm1, %v1880_v61 }
 0x145   : > { %v1575_v7 = vmul.f32 %v6028_v27, %v840_v62  ;;  %v843_v8 = vadd.f32 %v6019_v23, %v842_v6  ;;  %v5063_v9 = vpop.f32.mrb[43].mxu0  ;;  %5380 = vmatprep.mubr.msk.bf16.mxu1 %vm5775_vm0, %v7642_v1  ;;  %vm1410_vm8 = vcmp.lt.f32.partialorder %v840_v62, 0.0  ;;  %v425_v6 = vpack.c.bf16 %v308_v56, %v307_v55 }
 0x147   : > { %vm1411_vm9 = vcmp.lt.f32.partialorder %v843_v8, 0.0  ;;  %v1576_v10 = vmul.f32 %v6028_v27, %v843_v8  ;;  %5169 = vmatmul.mubr.msk.bf16.gmra.mrb[148].mxu0 %vm487_vm1, %v422_v0  ;;  %v6219_v13 = vsel %vm1410_vm8, %v1575_v7, %v840_v62 }
 0x148   : > { %5172 = vmatprep.mubr.msk.bf16.mxu0 %vm5775_vm0, %v7642_v1 }
 0x149   : > { %v6221_v14 = vsel %vm1411_vm9, %v1576_v10, %v843_v8 }
 0x14a   : > { %v847_v15 = vpop.f32.mrb[44].mxu0  ;;  %v1881_v16 = vpack.c.bf16 %v6221_v14, %v6219_v13 }
 0x14b   : > { %v848_v19 = vadd.f32 %v6019_v23, %v847_v15  ;;  %v5066_v22 = vpop.f32.mrb[45].mxu0  ;;  %v310_v15 = vld [vmem:[%s5874_s13 + $0x298] sm:$0xff] }
 0x14c   : > { %v850_v25 = vpop.f32.mrb[46].mxu0  ;;  %5381 = vmatmul.mubr.msk.bf16.gmra.mrb[40].mxu1 %vm487_vm1, %v1881_v16 }
 0x14d   : > { %v1577_v26 = vmul.f32 %v6028_v27, %v848_v19  ;;  %v851_v28 = vadd.f32 %v6019_v23, %v850_v25  ;;  %v5067_v29 = vpop.f32.mrb[47].mxu0  ;;  %5384 = vmatprep.mubr.msk.bf16.mxu1 %vm5775_vm0, %v7642_v1  ;;  %vm1412_vm10 = vcmp.lt.f32.partialorder %v848_v19, 0.0 }
 0x14f   : > { %vm1413_vm11 = vcmp.lt.f32.partialorder %v851_v28, 0.0  ;;  %v1578_v30 = vmul.f32 %v6028_v27, %v851_v28  ;;  %5173 = vmatmul.mubr.msk.bf16.gmra.mrb[152].mxu0 %vm487_vm1, %v423_v24  ;;  %v6237_v35 = vsel %vm1412_vm10, %v1577_v26, %v848_v19 }
 0x150   : > { %5176 = vmatprep.mubr.msk.bf16.mxu0 %vm5775_vm0, %v7642_v1 }
 0x151   : > { %v6239_v36 = vsel %vm1413_vm11, %v1578_v30, %v851_v28  ;;  %v426_v28 = vpack.c.bf16 %v310_v15, %v309_v12 }
 0x152   : > { %v855_v37 = vpop.f32.mrb[48].mxu0  ;;  %v1882_v42 = vpack.c.bf16 %v6239_v36, %v6237_v35 }
 0x153   : > { %v856_v43 = vadd.f32 %v6019_v23, %v855_v37  ;;  %v5070_v44 = vpop.f32.mrb[49].mxu0 }
 0x154   : > { %v858_v46 = vpop.f32.mrb[50].mxu0  ;;  %5385 = vmatmul.mubr.msk.bf16.gmra.mrb[44].mxu1 %vm487_vm1, %v1882_v42  ;;  %v311_v42 = vld [vmem:[%s5874_s13 + $0x2a0] sm:$0xff] }
 0x155   : > { %v1579_v47 = vmul.f32 %v6028_v27, %v856_v43  ;;  %v859_v48 = vadd.f32 %v6019_v23, %v858_v46  ;;  %v5071_v51 = vpop.f32.mrb[51].mxu0  ;;  %5388 = vmatprep.mubr.msk.bf16.mxu1 %vm5775_vm0, %v7642_v1  ;;  %vm1414_vm12 = vcmp.lt.f32.partialorder %v856_v43, 0.0 }
 0x157   : > { %vm1415_vm13 = vcmp.lt.f32.partialorder %v859_v48, 0.0  ;;  %v1580_v54 = vmul.f32 %v6028_v27, %v859_v48  ;;  %5177 = vmatmul.mubr.msk.bf16.gmra.mrb[156].mxu0 %vm487_vm1, %v424_v45  ;;  %v6255_v57 = vsel %vm1414_vm12, %v1579_v47, %v856_v43  ;;  %v312_v43 = vld [vmem:[%s5874_s13 + $0x2a8] sm:$0xff] }
 0x158   : > { %5180 = vmatprep.mubr.msk.bf16.mxu0 %vm5775_vm0, %v7642_v1 }
 0x159   : > { %v6257_v60 = vsel %vm1415_vm13, %v1580_v54, %v859_v48  ;;  %v427_v54 = vpack.c.bf16 %v312_v43, %v311_v42 }
 0x15a   : > { %v863_v61 = vpop.f32.mrb[52].mxu0  ;;  %v1883_v62 = vpack.c.bf16 %v6257_v60, %v6255_v57 }
 0x15b   : > { %v864_v63 = vadd.f32 %v6019_v23, %v863_v61  ;;  %v5074_v0 = vpop.f32.mrb[53].mxu0 }
 0x15c   : > { %v866_v7 = vpop.f32.mrb[54].mxu0  ;;  %5389 = vmatmul.mubr.msk.bf16.gmra.mrb[48].mxu1 %vm487_vm1, %v1883_v62  ;;  %v313_v0 = vld [vmem:[%s5874_s13 + $0x2b0] sm:$0xff] }
 0x15d   : > { %v1581_v8 = vmul.f32 %v6028_v27, %v864_v63  ;;  %v867_v9 = vadd.f32 %v6019_v23, %v866_v7  ;;  %v5075_v10 = vpop.f32.mrb[55].mxu0  ;;  %5392 = vmatprep.mubr.msk.bf16.mxu1 %vm5775_vm0, %v7642_v1  ;;  %vm1416_vm14 = vcmp.lt.f32.partialorder %v864_v63, 0.0 }
 0x15f   : > { %vm1417_vm15 = vcmp.lt.f32.partialorder %v867_v9, 0.0  ;;  %v1582_v11 = vmul.f32 %v6028_v27, %v867_v9  ;;  %5181 = vmatmul.mubr.msk.bf16.gmra.mrb[160].mxu0 %vm487_vm1, %v425_v6  ;;  %v6273_v16 = vsel %vm1416_vm14, %v1581_v8, %v864_v63  ;;  %v314_v6 = vld [vmem:[%s5874_s13 + $0x2b8] sm:$0xff] }
 0x160   : > { %5184 = vmatprep.mubr.msk.bf16.mxu0 %vm5775_vm0, %v7642_v1  ;;  %v428_v15 = vpack.c.bf16 %v314_v6, %v313_v0 }
 0x161   : > { %v6275_v19 = vsel %vm1417_vm15, %v1582_v11, %v867_v9 }
 0x162   : > { %v871_v22 = vpop.f32.mrb[56].mxu0  ;;  %v1884_v24 = vpack.c.bf16 %v6275_v19, %v6273_v16 }
 0x163   : > { %v872_v25 = vadd.f32 %v6019_v23, %v871_v22  ;;  %v5078_v26 = vpop.f32.mrb[57].mxu0 }
 0x164   : > { %v874_v29 = vpop.f32.mrb[58].mxu0  ;;  %5393 = vmatmul.mubr.msk.bf16.gmra.mrb[52].mxu1 %vm487_vm1, %v1884_v24 }
 0x165   : > { %v1583_v30 = vmul.f32 %v6028_v27, %v872_v25  ;;  %v875_v31 = vadd.f32 %v6019_v23, %v874_v29  ;;  %v5079_v32 = vpop.f32.mrb[59].mxu0  ;;  %5396 = vmatprep.mubr.msk.bf16.mxu1 %vm5775_vm0, %v7642_v1  ;;  %vm1418_vm2 = vcmp.lt.f32.partialorder %v872_v25, 0.0  ;;  %v315_v29 = vld [vmem:[%s5874_s13 + $0x2c0] sm:$0xff] }
 0x167   : > { %vm1419_vm3 = vcmp.lt.f32.partialorder %v875_v31, 0.0  ;;  %v1584_v37 = vmul.f32 %v6028_v27, %v875_v31  ;;  %5185 = vmatmul.mubr.msk.bf16.gmra.mrb[164].mxu0 %vm487_vm1, %v426_v28  ;;  %v6291_v44 = vsel %vm1418_vm2, %v1583_v30, %v872_v25  ;;  %v316_v30 = vld [vmem:[%s5874_s13 + $0x2c8] sm:$0xff] }
 0x168   : > { %5188 = vmatprep.mubr.msk.bf16.mxu0 %vm5775_vm0, %v7642_v1 }
 0x169   : > { %v6293_v45 = vsel %vm1419_vm3, %v1584_v37, %v875_v31 }
 0x16a   : > { %v879_v46 = vpop.f32.mrb[60].mxu0  ;;  %v1885_v47 = vpack.c.bf16 %v6293_v45, %v6291_v44 }
 0x16b   : > { %v880_v48 = vadd.f32 %v6019_v23, %v879_v46  ;;  %v5082_v51 = vpop.f32.mrb[61].mxu0 }
 0x16c   : > { %v882_v55 = vpop.f32.mrb[62].mxu0  ;;  %5397 = vmatmul.mubr.msk.bf16.gmra.mrb[56].mxu1 %vm487_vm1, %v1885_v47  ;;  %v429_v47 = vpack.c.bf16 %v316_v30, %v315_v29  ;;  %v320_v29 = vld [vmem:[%s5874_s13 + $0x2e8] sm:$0xff] }
 0x16d   : > { %v1585_v56 = vmul.f32 %v6028_v27, %v880_v48  ;;  %v883_v61 = vadd.f32 %v6019_v23, %v882_v55  ;;  %v5083_v62 = vpop.f32.mrb[63].mxu0  ;;  %5400 = vmatprep.mubr.msk.bf16.mxu1 %vm5775_vm0, %v7642_v1  ;;  %vm1420_vm4 = vcmp.lt.f32.partialorder %v880_v48, 0.0 }
 0x16e   : > { %v318_v62 = vld [vmem:[%s5874_s13 + $0x2d8] sm:$0xff] }
 0x16f   : > { %vm1421_vm5 = vcmp.lt.f32.partialorder %v883_v61, 0.0  ;;  %v1586_v63 = vmul.f32 %v6028_v27, %v883_v61  ;;  %5189 = vmatmul.mubr.msk.bf16.gmra.mrb[168].mxu0 %vm487_vm1, %v427_v54  ;;  %v6309_v7 = vsel %vm1420_vm4, %v1585_v56, %v880_v48 }
 0x170   : > { %5192 = vmatprep.mubr.msk.bf16.mxu0 %vm5775_vm0, %v7642_v1 }
 0x171   : > { %v6311_v8 = vsel %vm1421_vm5, %v1586_v63, %v883_v61  ;;  %v317_v61 = vld [vmem:[%s5874_s13 + $0x2d0] sm:$0xff] }
 0x172   : > { %v1886_v9 = vpack.c.bf16 %v6311_v8, %v6309_v7  ;;  %v887_v10 = vpop.f32.mrb[64].mxu0 }
 0x173   : > { %v888_v11 = vadd.f32 %v6019_v23, %v887_v10  ;;  %v5086_v12 = vpop.f32.mrb[65].mxu0 }
 0x174   : > { %v890_v22 = vpop.f32.mrb[66].mxu0  ;;  %5401 = vmatmul.mubr.msk.bf16.gmra.mrb[60].mxu1 %vm487_vm1, %v1886_v9  ;;  %v430_v12 = vpack.c.bf16 %v318_v62, %v317_v61  ;;  %v321_v62 = vld [vmem:[%s5874_s13 + $0x2f0] sm:$0xff] }
 0x175   : > { %v1587_v24 = vmul.f32 %v6028_v27, %v888_v11  ;;  %v891_v25 = vadd.f32 %v6019_v23, %v890_v22  ;;  %v5087_v26 = vpop.f32.mrb[67].mxu0  ;;  %5404 = vmatprep.mubr.msk.bf16.mxu1 %vm5775_vm0, %v7642_v1  ;;  %vm1422_vm6 = vcmp.lt.f32.partialorder %v888_v11, 0.0 }
 0x177   : > { %vm1423_vm7 = vcmp.lt.f32.partialorder %v891_v25, 0.0  ;;  %v1588_v28 = vmul.f32 %v6028_v27, %v891_v25  ;;  %5193 = vmatmul.mubr.msk.bf16.gmra.mrb[172].mxu0 %vm487_vm1, %v428_v15  ;;  %v6327_v31 = vsel %vm1422_vm6, %v1587_v24, %v888_v11 }
 0x178   : > { %5196 = vmatprep.mubr.msk.bf16.mxu0 %vm5775_vm0, %v7642_v1 }
 0x179   : > { %v6329_v32 = vsel %vm1423_vm7, %v1588_v28, %v891_v25  ;;  %v319_v28 = vld [vmem:[%s5874_s13 + $0x2e0] sm:$0xff] }
 0x17a   : > { %v1887_v37 = vpack.c.bf16 %v6329_v32, %v6327_v31  ;;  %v895_v42 = vpop.f32.mrb[68].mxu0 }
 0x17b   : > { %v896_v43 = vadd.f32 %v6019_v23, %v895_v42  ;;  %v5090_v46 = vpop.f32.mrb[69].mxu0 }
 0x17c   : > { %v898_v48 = vpop.f32.mrb[70].mxu0  ;;  %5405 = vmatmul.mubr.msk.bf16.gmra.mrb[64].mxu1 %vm487_vm1, %v1887_v37 }
 0x17d   : > { %v1589_v51 = vmul.f32 %v6028_v27, %v896_v43  ;;  %v899_v54 = vadd.f32 %v6019_v23, %v898_v48  ;;  %v5091_v55 = vpop.f32.mrb[71].mxu0  ;;  %5408 = vmatprep.mubr.msk.bf16.mxu1 %vm5775_vm0, %v7642_v1  ;;  %vm1424_vm8 = vcmp.lt.f32.partialorder %v896_v43, 0.0  ;;  %v431_v48 = vpack.c.bf16 %v320_v29, %v319_v28 }
 0x17f   : > { %vm1425_vm9 = vcmp.lt.f32.partialorder %v899_v54, 0.0  ;;  %v1590_v56 = vmul.f32 %v6028_v27, %v899_v54  ;;  %5197 = vmatmul.mubr.msk.bf16.gmra.mrb[176].mxu0 %vm487_vm1, %v429_v47  ;;  %v6345_v63 = vsel %vm1424_vm8, %v1589_v51, %v896_v43 }
 0x180   : > { %5200 = vmatprep.mubr.msk.bf16.mxu0 %vm5775_vm0, %v7642_v1 }
 0x181   : > { %v6347_v0 = vsel %vm1425_vm9, %v1590_v56, %v899_v54 }
 0x182   : > { %v1888_v6 = vpack.c.bf16 %v6347_v0, %v6345_v63  ;;  %v903_v9 = vpop.f32.mrb[72].mxu0 }
 0x183   : > { %v904_v10 = vadd.f32 %v6019_v23, %v903_v9  ;;  %v5094_v11 = vpop.f32.mrb[73].mxu0 }
 0x184   : > { %v906_v15 = vpop.f32.mrb[74].mxu0  ;;  %5409 = vmatmul.mubr.msk.bf16.gmra.mrb[68].mxu1 %vm487_vm1, %v1888_v6  ;;  %v322_v6 = vld [vmem:[%s5874_s13 + $0x2f8] sm:$0xff] }
 0x185   : > { %v1591_v22 = vmul.f32 %v6028_v27, %v904_v10  ;;  %v907_v24 = vadd.f32 %v6019_v23, %v906_v15  ;;  %v5095_v25 = vpop.f32.mrb[75].mxu0  ;;  %5412 = vmatprep.mubr.msk.bf16.mxu1 %vm5775_vm0, %v7642_v1  ;;  %vm1426_vm10 = vcmp.lt.f32.partialorder %v904_v10, 0.0 }
 0x187   : > { %vm1427_vm11 = vcmp.lt.f32.partialorder %v907_v24, 0.0  ;;  %v1592_v26 = vmul.f32 %v6028_v27, %v907_v24  ;;  %5201 = vmatmul.mubr.msk.bf16.gmra.mrb[180].mxu0 %vm487_vm1, %v430_v12  ;;  %v6363_v30 = vsel %vm1426_vm10, %v1591_v22, %v904_v10 }
 0x188   : > { %5204 = vmatprep.mubr.msk.bf16.mxu0 %vm5775_vm0, %v7642_v1 }
 0x189   : > { %v6365_v37 = vsel %vm1427_vm11, %v1592_v26, %v907_v24  ;;  %v432_v24 = vpack.c.bf16 %v322_v6, %v321_v62 }
 0x18a   : > { %v1889_v42 = vpack.c.bf16 %v6365_v37, %v6363_v30  ;;  %v911_v43 = vpop.f32.mrb[76].mxu0 }
 0x18b   : > { %v912_v46 = vadd.f32 %v6019_v23, %v911_v43  ;;  %v5098_v47 = vpop.f32.mrb[77].mxu0  ;;  %v323_v43 = vld [vmem:[%s5874_s13 + $0x300] sm:$0xff] }
 0x18c   : > { %v914_v51 = vpop.f32.mrb[78].mxu0  ;;  %5413 = vmatmul.mubr.msk.bf16.gmra.mrb[72].mxu1 %vm487_vm1, %v1889_v42 }
 0x18d   : > { %v1593_v54 = vmul.f32 %v6028_v27, %v912_v46  ;;  %v915_v55 = vadd.f32 %v6019_v23, %v914_v51  ;;  %v5099_v56 = vpop.f32.mrb[79].mxu0  ;;  %5416 = vmatprep.mubr.msk.bf16.mxu1 %vm5775_vm0, %v7642_v1  ;;  %vm1428_vm12 = vcmp.lt.f32.partialorder %v912_v46, 0.0 }
 0x18f   : > { %vm1429_vm13 = vcmp.lt.f32.partialorder %v915_v55, 0.0  ;;  %v1594_v61 = vmul.f32 %v6028_v27, %v915_v55  ;;  %5205 = vmatmul.mubr.msk.bf16.gmra.mrb[184].mxu0 %vm487_vm1, %v431_v48  ;;  %v6381_v9 = vsel %vm1428_vm12, %v1593_v54, %v912_v46  ;;  %v324_v46 = vld [vmem:[%s5874_s13 + $0x308] sm:$0xff] }
 0x190   : > { %5208 = vmatprep.mubr.msk.bf16.mxu0 %vm5775_vm0, %v7642_v1 }
 0x191   : > { %v6383_v10 = vsel %vm1429_vm13, %v1594_v61, %v915_v55  ;;  %v433_v61 = vpack.c.bf16 %v324_v46, %v323_v43 }
 0x192   : > { %v1890_v11 = vpack.c.bf16 %v6383_v10, %v6381_v9  ;;  %v919_v12 = vpop.f32.mrb[80].mxu0 }
 0x193   : > { %v920_v15 = vadd.f32 %v6019_v23, %v919_v12  ;;  %v5102_v22 = vpop.f32.mrb[81].mxu0 }
 0x194   : > { %v922_v25 = vpop.f32.mrb[82].mxu0  ;;  %5417 = vmatmul.mubr.msk.bf16.gmra.mrb[76].mxu1 %vm487_vm1, %v1890_v11  ;;  %v325_v22 = vld [vmem:[%s5874_s13 + $0x310] sm:$0xff] }
 0x195   : > { %v1595_v26 = vmul.f32 %v6028_v27, %v920_v15  ;;  %v923_v28 = vadd.f32 %v6019_v23, %v922_v25  ;;  %v5103_v29 = vpop.f32.mrb[83].mxu0  ;;  %5420 = vmatprep.mubr.msk.bf16.mxu1 %vm5775_vm0, %v7642_v1  ;;  %vm1430_vm14 = vcmp.lt.f32.partialorder %v920_v15, 0.0 }
 0x197   : > { %vm1431_vm15 = vcmp.lt.f32.partialorder %v923_v28, 0.0  ;;  %v1596_v42 = vmul.f32 %v6028_v27, %v923_v28  ;;  %5209 = vmatmul.mubr.msk.bf16.gmra.mrb[188].mxu0 %vm487_vm1, %v432_v24  ;;  %v6399_v47 = vsel %vm1430_vm14, %v1595_v26, %v920_v15  ;;  %v326_v24 = vld [vmem:[%s5874_s13 + $0x318] sm:$0xff] }
 0x198   : > { %5212 = vmatprep.mubr.msk.bf16.mxu0 %vm5775_vm0, %v7642_v1  ;;  %v434_v46 = vpack.c.bf16 %v326_v24, %v325_v22 }
 0x199   : > { %v6401_v48 = vsel %vm1431_vm15, %v1596_v42, %v923_v28 }
 0x19a   : > { %v1891_v51 = vpack.c.bf16 %v6401_v48, %v6399_v47  ;;  %v927_v54 = vpop.f32.mrb[84].mxu0 }
 0x19b   : > { %v928_v55 = vadd.f32 %v6019_v23, %v927_v54  ;;  %v5106_v56 = vpop.f32.mrb[85].mxu0 }
 0x19c   : > { %v930_v62 = vpop.f32.mrb[86].mxu0  ;;  %5421 = vmatmul.mubr.msk.bf16.gmra.mrb[80].mxu1 %vm487_vm1, %v1891_v51 }
 0x19d   : > { %v1597_v6 = vmul.f32 %v6028_v27, %v928_v55  ;;  %v931_v11 = vadd.f32 %v6019_v23, %v930_v62  ;;  %v5107_v12 = vpop.f32.mrb[87].mxu0  ;;  %5424 = vmatprep.mubr.msk.bf16.mxu1 %vm5775_vm0, %v7642_v1  ;;  %vm1432_vm2 = vcmp.lt.f32.partialorder %v928_v55, 0.0  ;;  %v327_v62 = vld [vmem:[%s5874_s13 + $0x320] sm:$0xff] }
 0x19f   : > { %vm1433_vm3 = vcmp.lt.f32.partialorder %v931_v11, 0.0  ;;  %v1598_v15 = vmul.f32 %v6028_v27, %v931_v11  ;;  %5213 = vmatmul.mubr.msk.bf16.gmra.mrb[192].mxu0 %vm487_vm1, %v433_v61  ;;  %v6417_v25 = vsel %vm1432_vm2, %v1597_v6, %v928_v55  ;;  %v328_v6 = vld [vmem:[%s5874_s13 + $0x328] sm:$0xff] }
 0x1a0   : > { %5216 = vmatprep.mubr.msk.bf16.mxu0 %vm5775_vm0, %v7642_v1  ;;  %7673 = vst [vmem:[#allocation5_spill] sm:$0xff] %v6417_v25 }
 0x1a1   : > { %v6419_v26 = vsel %vm1433_vm3, %v1598_v15, %v931_v11 }
 0x1a2   : > { %7674 = vst [vmem:[#allocation6_spill] sm:$0xff] %v6419_v26  ;;  %v1892_v28 = vpack.c.bf16 %v6419_v26, %v6417_v25  ;;  %v935_v29 = vpop.f32.mrb[88].mxu0 }
 0x1a3   : > { %v936_v42 = vadd.f32 %v6019_v23, %v935_v29  ;;  %v5110_v43 = vpop.f32.mrb[89].mxu0  ;;  %v435_v29 = vpack.c.bf16 %v328_v6, %v327_v62 }
 0x1a4   : > { %v938_v51 = vpop.f32.mrb[90].mxu0  ;;  %5425 = vmatmul.mubr.msk.bf16.gmra.mrb[84].mxu1 %vm487_vm1, %v1892_v28 }
 0x1a5   : > { %v1599_v54 = vmul.f32 %v6028_v27, %v936_v42  ;;  %v939_v55 = vadd.f32 %v6019_v23, %v938_v51  ;;  %v5111_v56 = vpop.f32.mrb[91].mxu0  ;;  %5428 = vmatprep.mubr.msk.bf16.mxu1 %vm5775_vm0, %v7642_v1  ;;  %vm1434_vm4 = vcmp.lt.f32.partialorder %v936_v42, 0.0 }
 0x1a6   : > { %v330_v56 = vld [vmem:[%s5874_s13 + $0x338] sm:$0xff] }
 0x1a7   : > { %vm1435_vm5 = vcmp.lt.f32.partialorder %v939_v55, 0.0  ;;  %v1600_v61 = vmul.f32 %v6028_v27, %v939_v55  ;;  %5217 = vmatmul.mubr.msk.bf16.gmra.mrb[196].mxu0 %vm487_vm1, %v434_v46  ;;  %v6435_v11 = vsel %vm1434_vm4, %v1599_v54, %v936_v42 }
 0x1a8   : > { %5220 = vmatprep.mubr.msk.bf16.mxu0 %vm5775_vm0, %v7642_v1  ;;  %7675 = vst [vmem:[#allocation7_spill] sm:$0xff] %v6435_v11 }
 0x1a9   : > { %v6437_v12 = vsel %vm1435_vm5, %v1600_v61, %v939_v55  ;;  %v329_v55 = vld [vmem:[%s5874_s13 + $0x330] sm:$0xff] }
 0x1aa   : > { %7676 = vst [vmem:[#allocation8_spill] sm:$0xff] %v6437_v12  ;;  %v1893_v15 = vpack.c.bf16 %v6437_v12, %v6435_v11  ;;  %v943_v22 = vpop.f32.mrb[92].mxu0 }
 0x1ab   : > { %v944_v24 = vadd.f32 %v6019_v23, %v943_v22  ;;  %v5114_v28 = vpop.f32.mrb[93].mxu0 }
 0x1ac   : > { %v946_v43 = vpop.f32.mrb[94].mxu0  ;;  %5429 = vmatmul.mubr.msk.bf16.gmra.mrb[88].mxu1 %vm487_vm1, %v1893_v15 }
 0x1ad   : > { %v1601_v46 = vmul.f32 %v6028_v27, %v944_v24  ;;  %v947_v42 = vadd.f32 %v6019_v23, %v946_v43  ;;  %v5115_v51 = vpop.f32.mrb[95].mxu0  ;;  %5432 = vmatprep.mubr.msk.bf16.mxu1 %vm5775_vm0, %v7642_v1  ;;  %vm1436_vm6 = vcmp.lt.f32.partialorder %v944_v24, 0.0  ;;  %v436_v43 = vpack.c.bf16 %v330_v56, %v329_v55  ;;  %v332_v55 = vld [vmem:[%s5874_s13 + $0x348] sm:$0xff] }
 0x1af   : > { %vm1437_vm7 = vcmp.lt.f32.partialorder %v947_v42, 0.0  ;;  %v1602_v54 = vmul.f32 %v6028_v27, %v947_v42  ;;  %5221 = vmatmul.mubr.msk.bf16.gmra.mrb[200].mxu0 %vm487_vm1, %v435_v29  ;;  %v6453_v61 = vsel %vm1436_vm6, %v1601_v46, %v944_v24 }
 0x1b0   : > { %5224 = vmatprep.mubr.msk.bf16.mxu0 %vm5775_vm0, %v7642_v1  ;;  %7677 = vst [vmem:[#allocation9_spill] sm:$0xff] %v6453_v61 }
 0x1b1   : > { %v6455_v62 = vsel %vm1437_vm7, %v1602_v54, %v947_v42  ;;  %v331_v54 = vld [vmem:[%s5874_s13 + $0x340] sm:$0xff] }
 0x1b2   : > { %7678 = vst [vmem:[#allocation10_spill] sm:$0xff] %v6455_v62  ;;  %v1894_v6 = vpack.c.bf16 %v6455_v62, %v6453_v61  ;;  %v951_v15 = vpop.f32.mrb[96].mxu0  ;;  %v437_v62 = vpack.c.bf16 %v332_v55, %v331_v54  ;;  %v333_v54 = vld [vmem:[%s5874_s13 + $0x350] sm:$0xff]  ;;  %v334_v55 = vld [vmem:[%s5874_s13 + $0x358] sm:$0xff] }
 0x1b3   : > { %v952_v22 = vadd.f32 %v6019_v23, %v951_v15  ;;  %v5118_v28 = vpop.f32.mrb[97].mxu0 }
 0x1b4   : > { %v954_v29 = vpop.f32.mrb[98].mxu0  ;;  %5433 = vmatmul.mubr.msk.bf16.gmra.mrb[92].mxu1 %vm487_vm1, %v1894_v6 }
 0x1b5   : > { %v1603_v51 = vmul.f32 %v6028_v27, %v952_v22  ;;  %v955_v24 = vadd.f32 %v6019_v23, %v954_v29  ;;  %v5119_v46 = vpop.f32.mrb[99].mxu0  ;;  %5436 = vmatprep.mubr.msk.bf16.mxu1 %vm5775_vm0, %v7642_v1  ;;  %vm1438_vm8 = vcmp.lt.f32.partialorder %v952_v22, 0.0 }
 0x1b7   : > { %vm1439_vm9 = vcmp.lt.f32.partialorder %v955_v24, 0.0  ;;  %v1604_v42 = vmul.f32 %v6028_v27, %v955_v24  ;;  %5225 = vmatmul.mubr.msk.bf16.gmra.mrb[204].mxu0 %vm487_vm1, %v436_v43  ;;  %v6471_v56 = vsel %vm1438_vm8, %v1603_v51, %v952_v22 }
 0x1b8   : > { %5228 = vmatprep.mubr.msk.bf16.mxu0 %vm5775_vm0, %v7642_v1  ;;  %7679 = vst [vmem:[#allocation11_spill] sm:$0xff] %v6471_v56 }
 0x1b9   : > { %v6473_v6 = vsel %vm1439_vm9, %v1604_v42, %v955_v24  ;;  %v7681_v24 = vmov 0.0  }
 0x1ba   : > { %7680 = vst [vmem:[#allocation12_spill] sm:$0xff] %v6473_v6  ;;  %v1895_v15 = vpack.c.bf16 %v6473_v6, %v6471_v56  ;;  %v959_v28 = vpop.f32.mrb[100].mxu0 }
 0x1bb   : > { %v960_v29 = vadd.f32 %v6019_v23, %v959_v28  ;;  %v5122_v46 = vpop.f32.mrb[101].mxu0 }
 0x1bc   : > { %v962_v43 = vpop.f32.mrb[102].mxu0  ;;  %5437 = vmatmul.mubr.msk.bf16.gmra.mrb[96].mxu1 %vm487_vm1, %v1895_v15 }
 0x1bd   : > { %v1605_v1 = vmul.f32 %v6028_v27, %v960_v29  ;;  %v963_v22 = vadd.f32 %v6019_v23, %v962_v43  ;;  %v5123_v51 = vpop.f32.mrb[103].mxu0  ;;  %5440 = vmatprep.mubr.msk.bf16.mxu1 %vm5775_vm0, %v7681_v24  ;;  %vm1440_vm10 = vcmp.lt.f32.partialorder %v960_v29, 0.0  ;;  %v6498_v43 = vld [vmem:[%s7637_s2] ss:$0 sm:$0xff] }
 0x1be   : > { %v438_v51 = vpack.c.bf16 %v334_v55, %v333_v54  ;;  %v335_v55 = vld [vmem:[%s5874_s13 + $0x360] sm:$0xff] }
 0x1bf   : > { %vm1441_vm11 = vcmp.lt.f32.partialorder %v963_v22, 0.0  ;;  %v1606_v42 = vmul.f32 %v6028_v27, %v963_v22  ;;  %5229 = vmatmul.mubr.msk.bf16.gmra.mrb[208].mxu0 %vm487_vm1, %v437_v62  ;;  %v6489_v15 = vsel %vm1440_vm10, %v1605_v1, %v960_v29  ;;  %v6505_v1 = vld [vmem:[%s7639_s4] ss:$0 sm:$0xff] }
 0x1c0   : > { %5232 = vmatprep.mubr.msk.bf16.mxu0 %vm5775_vm0, %v7681_v24  ;;  %7682 = vst [vmem:[#allocation13_spill] sm:$0xff] %v6489_v15 }
 0x1c1   : > { %v6491_v28 = vsel %vm1441_vm11, %v1606_v42, %v963_v22 }
 0x1c2   : > { %7683 = vst [vmem:[#allocation14_spill] sm:$0xff] %v6491_v28  ;;  %v1896_v23 = vpack.c.bf16 %v6491_v28, %v6489_v15  ;;  %v967_v46 = vpop.f32.mrb[104].mxu0 }
 0x1c3   : > { %v968_v27 = vadd.f32 %v6498_v43, %v967_v46  ;;  %v5126_v62 = vpop.f32.mrb[105].mxu0 }
 0x1c4   : > { %v970_v6 = vpop.f32.mrb[106].mxu0  ;;  %5441 = vmatmul.mubr.msk.bf16.gmra.mrb[100].mxu1 %vm487_vm1, %v1896_v23  ;;  %v336_v23 = vld [vmem:[%s5874_s13 + $0x368] sm:$0xff] }
 0x1c5   : > { %v1607_v29 = vmul.f32 %v6505_v1, %v968_v27  ;;  %v971_v22 = vadd.f32 %v6498_v43, %v970_v6  ;;  %v5127_v42 = vpop.f32.mrb[107].mxu0  ;;  %5444 = vmatprep.mubr.msk.bf16.mxu1 %vm5775_vm0, %v7681_v24  ;;  %vm1442_vm12 = vcmp.lt.f32.partialorder %v968_v27, 0.0  ;;  %v439_v56 = vpack.c.bf16 %v336_v23, %v335_v55  ;;  %v337_v23 = vld [vmem:[%s5874_s13 + $0x370] sm:$0xff] }
 0x1c7   : > { %vm1443_vm13 = vcmp.lt.f32.partialorder %v971_v22, 0.0  ;;  %v1608_v54 = vmul.f32 %v6505_v1, %v971_v22  ;;  %5233 = vmatmul.mubr.msk.bf16.gmra.mrb[212].mxu0 %vm487_vm1, %v438_v51  ;;  %v6517_v46 = vsel %vm1442_vm12, %v1607_v29, %v968_v27 }
 0x1c8   : > { %5236 = vmatprep.mubr.msk.bf16.mxu0 %vm5775_vm0, %v7681_v24  ;;  %7684 = vst [vmem:[#allocation15_spill] sm:$0xff] %v6517_v46 }
 0x1c9   : > { %v6519_v62 = vsel %vm1443_vm13, %v1608_v54, %v971_v22 }
 0x1ca   : > { %7685 = vst [vmem:[#allocation16_spill] sm:$0xff] %v6519_v62  ;;  %v1897_v6 = vpack.c.bf16 %v6519_v62, %v6517_v46  ;;  %v975_v42 = vpop.f32.mrb[108].mxu0 }
 0x1cb   : > { %v976_v28 = vadd.f32 %v6498_v43, %v975_v42  ;;  %v5130_v15 = vpop.f32.mrb[109].mxu0 }
 0x1cc   : > { %v978_v51 = vpop.f32.mrb[110].mxu0  ;;  %5445 = vmatmul.mubr.msk.bf16.gmra.mrb[104].mxu1 %vm487_vm1, %v1897_v6  ;;  %v338_v6 = vld [vmem:[%s5874_s13 + $0x378] sm:$0xff] }
 0x1cd   : > { %v1609_v27 = vmul.f32 %v6505_v1, %v976_v28  ;;  %v979_v29 = vadd.f32 %v6498_v43, %v978_v51  ;;  %v5131_v22 = vpop.f32.mrb[111].mxu0  ;;  %5448 = vmatprep.mubr.msk.bf16.mxu1 %vm5775_vm0, %v7681_v24  ;;  %vm1444_vm14 = vcmp.lt.f32.partialorder %v976_v28, 0.0  ;;  %v440_v26 = vpack.c.bf16 %v338_v6, %v337_v23 }
 0x1cf   : > { %vm1445_vm15 = vcmp.lt.f32.partialorder %v979_v29, 0.0  ;;  %v1610_v54 = vmul.f32 %v6505_v1, %v979_v29  ;;  %5237 = vmatmul.mubr.msk.bf16.gmra.mrb[216].mxu0 %vm487_vm1, %v439_v56  ;;  %v2237_v15 = vpop.f32.mrb[0].mxu1  ;;  %v6538_v42 = vsel %vm1444_vm14, %v1609_v27, %v976_v28 }
 0x1d0   : > { %v5342_v55 = vpop.f32.mrb[1].mxu1  ;;  %5240 = vmatprep.mubr.msk.bf16.mxu0 %vm5775_vm0, %v7681_v24  ;;  %v2868_v46 = vadd.f32 %v2237_v15, %v6039_v38 }
 0x1d1   : > { %v6540_v51 = vsel %vm1445_vm15, %v1610_v54, %v979_v29  ;;  %v2240_v22 = vpop.f32.mrb[2].mxu1 }
 0x1d2   : > { %v1898_v62 = vpack.c.bf16 %v6540_v51, %v6538_v42  ;;  %v2869_v56 = vadd.f32 %v2240_v22, %v6041_v39  ;;  %v983_v61 = vpop.f32.mrb[112].mxu0  ;;  %v5343_v12 = vpop.f32.mrb[3].mxu1 }
 0x1d3   : > { %v984_v55 = vadd.f32 %v6498_v43, %v983_v61  ;;  %v5134_v11 = vpop.f32.mrb[113].mxu0  ;;  %v339_v12 = vld [vmem:[%s5874_s13 + $0x380] sm:$0xff]  ;;  %v340_v61 = vld [vmem:[%s5874_s13 + $0x388] sm:$0xff] }
 0x1d4   : > { %v4384_v25 = vpack.c.bf16 %v2869_v56, %v2868_v46  ;;  %v986_v28 = vpop.f32.mrb[114].mxu0  ;;  %5449 = vmatmul.mubr.msk.bf16.gmra.mrb[108].mxu1 %vm487_vm1, %v1898_v62 }
 0x1d5   : > { %v1611_v27 = vmul.f32 %v6505_v1, %v984_v55  ;;  %v987_v29 = vadd.f32 %v6498_v43, %v986_v28  ;;  %v5135_v54 = vpop.f32.mrb[115].mxu0  ;;  %5452 = vmatprep.mubr.msk.bf16.mxu1 %vm5775_vm0, %v7681_v24  ;;  %vm1446_vm2 = vcmp.lt.f32.partialorder %v984_v55, 0.0 }
 0x1d6   : > { %4385 = vst [vmem:[%s6552_s12] sm:$0xff] %v4384_v25   ;;  %v441_v54 = vpack.c.bf16 %v340_v61, %v339_v12  ;;  %v341_v12 = vld [vmem:[%s5874_s13 + $0x390] sm:$0xff]  ;;  %v342_v61 = vld [vmem:[%s5874_s13 + $0x398] sm:$0xff] }
 0x1d7   : > { %vm1447_vm3 = vcmp.lt.f32.partialorder %v987_v29, 0.0  ;;  %v1612_v38 = vmul.f32 %v6505_v1, %v987_v29  ;;  %5241 = vmatmul.mubr.msk.bf16.gmra.mrb[220].mxu0 %vm487_vm1, %v440_v26  ;;  %v2245_v39 = vpop.f32.mrb[4].mxu1  ;;  %v6561_v46 = vsel %vm1446_vm2, %v1611_v27, %v984_v55 }
 0x1d8   : > { %v5346_v11 = vpop.f32.mrb[5].mxu1  ;;  %5244 = vmatprep.mubr.msk.bf16.mxu0 %vm5775_vm0, %v7681_v24  ;;  %v2870_v23 = vadd.f32 %v2245_v39, %v6057_v52 }
 0x1d9   : > { %v6563_v62 = vsel %vm1447_vm3, %v1612_v38, %v987_v29  ;;  %v2248_v15 = vpop.f32.mrb[6].mxu1 }
 0x1da   : > { %v1899_v25 = vpack.c.bf16 %v6563_v62, %v6561_v46  ;;  %v2871_v26 = vadd.f32 %v2248_v15, %v6059_v53  ;;  %v991_v6 = vpop.f32.mrb[116].mxu0  ;;  %v5347_v22 = vpop.f32.mrb[7].mxu1 }
 0x1db   : > { %v992_v56 = vadd.f32 %v6498_v43, %v991_v6  ;;  %v5138_v28 = vpop.f32.mrb[117].mxu0 }
 0x1dc   : > { %v4389_v55 = vpack.c.bf16 %v2871_v26, %v2870_v23  ;;  %v994_v27 = vpop.f32.mrb[118].mxu0  ;;  %5453 = vmatmul.mubr.msk.bf16.gmra.mrb[112].mxu1 %vm487_vm1, %v1899_v25 }
 0x1dd   : > { %v1613_v29 = vmul.f32 %v6505_v1, %v992_v56  ;;  %v995_v38 = vadd.f32 %v6498_v43, %v994_v27  ;;  %v5139_v11 = vpop.f32.mrb[119].mxu0  ;;  %5456 = vmatprep.mubr.msk.bf16.mxu1 %vm5775_vm0, %v7681_v24  ;;  %vm1448_vm4 = vcmp.lt.f32.partialorder %v992_v56, 0.0 }
 0x1de   : > { %4776 = vst [vmem:[%s6552_s12 + $0x8] sm:$0xff] %v4389_v55   ;;  %v442_v11 = vpack.c.bf16 %v342_v61, %v341_v12  ;;  %v343_v12 = vld [vmem:[%s5874_s13 + $0x3a0] sm:$0xff]  ;;  %v344_v61 = vld [vmem:[%s5874_s13 + $0x3a8] sm:$0xff] }
 0x1df   : > { %vm1449_vm5 = vcmp.lt.f32.partialorder %v995_v38, 0.0  ;;  %v1614_v52 = vmul.f32 %v6505_v1, %v995_v38  ;;  %5245 = vmatmul.mubr.msk.bf16.gmra.mrb[224].mxu0 %vm487_vm1, %v441_v54  ;;  %v2253_v53 = vpop.f32.mrb[8].mxu1  ;;  %v6582_v15 = vsel %vm1448_vm4, %v1613_v29, %v992_v56 }
 0x1e0   : > { %v5350_v39 = vpop.f32.mrb[9].mxu1  ;;  %5248 = vmatprep.mubr.msk.bf16.mxu0 %vm5775_vm0, %v7681_v24  ;;  %v2872_v6 = vadd.f32 %v2253_v53, %v6075_v3 }
 0x1e1   : > { %v6584_v25 = vsel %vm1449_vm5, %v1614_v52, %v995_v38  ;;  %v2256_v23 = vpop.f32.mrb[10].mxu1 }
 0x1e2   : > { %v1900_v26 = vpack.c.bf16 %v6584_v25, %v6582_v15  ;;  %v2873_v22 = vadd.f32 %v2256_v23, %v6077_v4  ;;  %v999_v28 = vpop.f32.mrb[120].mxu0  ;;  %v5351_v54 = vpop.f32.mrb[11].mxu1 }
 0x1e3   : > { %v1000_v55 = vadd.f32 %v6498_v43, %v999_v28  ;;  %v5142_v27 = vpop.f32.mrb[121].mxu0 }
 0x1e4   : > { %v4394_v56 = vpack.c.bf16 %v2873_v22, %v2872_v6  ;;  %v1002_v29 = vpop.f32.mrb[122].mxu0  ;;  %5457 = vmatmul.mubr.msk.bf16.gmra.mrb[116].mxu1 %vm487_vm1, %v1900_v26 }
 0x1e5   : > { %v1615_v38 = vmul.f32 %v6505_v1, %v1000_v55  ;;  %v1003_v52 = vadd.f32 %v6498_v43, %v1002_v29  ;;  %v5143_v39 = vpop.f32.mrb[123].mxu0  ;;  %5460 = vmatprep.mubr.msk.bf16.mxu1 %vm5775_vm0, %v7681_v24  ;;  %vm1450_vm6 = vcmp.lt.f32.partialorder %v1000_v55, 0.0 }
 0x1e6   : > { %4777 = vst [vmem:[%s6552_s12 + $0x10] sm:$0xff] %v4394_v56   ;;  %v443_v39 = vpack.c.bf16 %v344_v61, %v343_v12  ;;  %v345_v12 = vld [vmem:[%s5874_s13 + $0x3b0] sm:$0xff]  ;;  %v346_v61 = vld [vmem:[%s5874_s13 + $0x3b8] sm:$0xff] }
 0x1e7   : > { %vm1451_vm7 = vcmp.lt.f32.partialorder %v1003_v52, 0.0  ;;  %v1616_v3 = vmul.f32 %v6505_v1, %v1003_v52  ;;  %5249 = vmatmul.mubr.msk.bf16.gmra.mrb[228].mxu0 %vm487_vm1, %v442_v11  ;;  %v2261_v4 = vpop.f32.mrb[12].mxu1  ;;  %v6603_v23 = vsel %vm1450_vm6, %v1615_v38, %v1000_v55 }
 0x1e8   : > { %v5354_v53 = vpop.f32.mrb[13].mxu1  ;;  %5252 = vmatprep.mubr.msk.bf16.mxu0 %vm5775_vm0, %v7681_v24  ;;  %v2874_v28 = vadd.f32 %v2261_v4, %v6093_v17 }
 0x1e9   : > { %v6605_v26 = vsel %vm1451_vm7, %v1616_v3, %v1003_v52  ;;  %v2264_v6 = vpop.f32.mrb[14].mxu1 }
 0x1ea   : > { %v1901_v22 = vpack.c.bf16 %v6605_v26, %v6603_v23  ;;  %v2875_v54 = vadd.f32 %v2264_v6, %v6095_v18  ;;  %v1007_v27 = vpop.f32.mrb[124].mxu0  ;;  %v5355_v11 = vpop.f32.mrb[15].mxu1 }
 0x1eb   : > { %v1008_v56 = vadd.f32 %v6498_v43, %v1007_v27  ;;  %v5146_v29 = vpop.f32.mrb[125].mxu0 }
 0x1ec   : > { %v4399_v55 = vpack.c.bf16 %v2875_v54, %v2874_v28  ;;  %v1010_v38 = vpop.f32.mrb[126].mxu0  ;;  %5461 = vmatmul.mubr.msk.bf16.gmra.mrb[120].mxu1 %vm487_vm1, %v1901_v22 }
 0x1ed   : > { %v1617_v52 = vmul.f32 %v6505_v1, %v1008_v56  ;;  %v1011_v3 = vadd.f32 %v6498_v43, %v1010_v38  ;;  %v5147_v53 = vpop.f32.mrb[127].mxu0  ;;  %5464 = vmatprep.mubr.msk.bf16.mxu1 %vm5775_vm0, %v7681_v24  ;;  %vm1452_vm8 = vcmp.lt.f32.partialorder %v1008_v56, 0.0 }
 0x1ee   : > { %4778 = vst [vmem:[%s6552_s12 + $0x18] sm:$0xff] %v4399_v55   ;;  %v444_v53 = vpack.c.bf16 %v346_v61, %v345_v12  ;;  %v347_v12 = vld [vmem:[%s5874_s13 + $0x3c0] sm:$0xff]  ;;  %v348_v61 = vld [vmem:[%s5874_s13 + $0x3c8] sm:$0xff] }
 0x1ef   : > { %vm1453_vm9 = vcmp.lt.f32.partialorder %v1011_v3, 0.0  ;;  %v1618_v17 = vmul.f32 %v6505_v1, %v1011_v3  ;;  %5253 = vmatmul.mubr.msk.bf16.gmra.mrb[232].mxu0 %vm487_vm1, %v443_v39  ;;  %v2269_v18 = vpop.f32.mrb[16].mxu1  ;;  %v6624_v6 = vsel %vm1452_vm8, %v1617_v52, %v1008_v56 }
 0x1f0   : > { %v5358_v4 = vpop.f32.mrb[17].mxu1  ;;  %5256 = vmatprep.mubr.msk.bf16.mxu0 %vm5775_vm0, %v7681_v24  ;;  %v2876_v27 = vadd.f32 %v2269_v18, %v6111_v33 }
 0x1f1   : > { %v6626_v22 = vsel %vm1453_vm9, %v1618_v17, %v1011_v3  ;;  %v2272_v28 = vpop.f32.mrb[18].mxu1 }
 0x1f2   : > { %v1902_v54 = vpack.c.bf16 %v6626_v22, %v6624_v6  ;;  %v2877_v11 = vadd.f32 %v2272_v28, %v6113_v34  ;;  %v1015_v29 = vpop.f32.mrb[128].mxu0  ;;  %v5359_v39 = vpop.f32.mrb[19].mxu1 }
 0x1f3   : > { %v1016_v55 = vadd.f32 %v6498_v43, %v1015_v29  ;;  %v5150_v38 = vpop.f32.mrb[129].mxu0 }
 0x1f4   : > { %v4404_v56 = vpack.c.bf16 %v2877_v11, %v2876_v27  ;;  %v1018_v52 = vpop.f32.mrb[130].mxu0  ;;  %5465 = vmatmul.mubr.msk.bf16.gmra.mrb[124].mxu1 %vm487_vm1, %v1902_v54 }
 0x1f5   : > { %v1619_v3 = vmul.f32 %v6505_v1, %v1016_v55  ;;  %v1019_v17 = vadd.f32 %v6498_v43, %v1018_v52  ;;  %v5151_v4 = vpop.f32.mrb[131].mxu0  ;;  %5468 = vmatprep.mubr.msk.bf16.mxu1 %vm5775_vm0, %v7681_v24  ;;  %vm1454_vm10 = vcmp.lt.f32.partialorder %v1016_v55, 0.0 }
 0x1f6   : > { %4779 = vst [vmem:[%s6552_s12 + $0x20] sm:$0xff] %v4404_v56   ;;  %v445_v4 = vpack.c.bf16 %v348_v61, %v347_v12  ;;  %v349_v12 = vld [vmem:[%s5874_s13 + $0x3d0] sm:$0xff]  ;;  %v350_v61 = vld [vmem:[%s5874_s13 + $0x3d8] sm:$0xff] }
 0x1f7   : > { %vm1455_vm11 = vcmp.lt.f32.partialorder %v1019_v17, 0.0  ;;  %v1620_v33 = vmul.f32 %v6505_v1, %v1019_v17  ;;  %5257 = vmatmul.mubr.msk.bf16.gmra.mrb[236].mxu0 %vm487_vm1, %v444_v53  ;;  %v2277_v34 = vpop.f32.mrb[20].mxu1  ;;  %v6645_v28 = vsel %vm1454_vm10, %v1619_v3, %v1016_v55 }
 0x1f8   : > { %v5362_v18 = vpop.f32.mrb[21].mxu1  ;;  %5260 = vmatprep.mubr.msk.bf16.mxu0 %vm5775_vm0, %v7681_v24  ;;  %v2878_v29 = vadd.f32 %v2277_v34, %v6129_v49 }
 0x1f9   : > { %v6647_v54 = vsel %vm1455_vm11, %v1620_v33, %v1019_v17  ;;  %v2280_v27 = vpop.f32.mrb[22].mxu1 }
 0x1fa   : > { %v1903_v11 = vpack.c.bf16 %v6647_v54, %v6645_v28  ;;  %v2879_v39 = vadd.f32 %v2280_v27, %v6131_v50  ;;  %v1023_v38 = vpop.f32.mrb[132].mxu0  ;;  %v5363_v53 = vpop.f32.mrb[23].mxu1 }
 0x1fb   : > { %v1024_v56 = vadd.f32 %v6498_v43, %v1023_v38  ;;  %v5154_v52 = vpop.f32.mrb[133].mxu0 }
 0x1fc   : > { %v4409_v55 = vpack.c.bf16 %v2879_v39, %v2878_v29  ;;  %v1026_v3 = vpop.f32.mrb[134].mxu0  ;;  %5469 = vmatmul.mubr.msk.bf16.gmra.mrb[128].mxu1 %vm487_vm1, %v1903_v11 }
 0x1fd   : > { %v1621_v17 = vmul.f32 %v6505_v1, %v1024_v56  ;;  %v1027_v33 = vadd.f32 %v6498_v43, %v1026_v3  ;;  %v5155_v18 = vpop.f32.mrb[135].mxu0  ;;  %5472 = vmatprep.mubr.msk.bf16.mxu1 %vm5775_vm0, %v7681_v24  ;;  %vm1456_vm12 = vcmp.lt.f32.partialorder %v1024_v56, 0.0 }
 0x1fe   : > { %4780 = vst [vmem:[%s6552_s12 + $0x28] sm:$0xff] %v4409_v55   ;;  %v446_v18 = vpack.c.bf16 %v350_v61, %v349_v12  ;;  %v351_v12 = vld [vmem:[%s5874_s13 + $0x3e0] sm:$0xff]  ;;  %v352_v61 = vld [vmem:[%s5874_s13 + $0x3e8] sm:$0xff] }
 0x1ff   : > { %vm1457_vm13 = vcmp.lt.f32.partialorder %v1027_v33, 0.0  ;;  %v1622_v49 = vmul.f32 %v6505_v1, %v1027_v33  ;;  %5261 = vmatmul.mubr.msk.bf16.gmra.mrb[240].mxu0 %vm487_vm1, %v445_v4  ;;  %v2285_v50 = vpop.f32.mrb[24].mxu1  ;;  %v6666_v27 = vsel %vm1456_vm12, %v1621_v17, %v1024_v56 }
 0x200   : > { %v5366_v34 = vpop.f32.mrb[25].mxu1  ;;  %5264 = vmatprep.mubr.msk.bf16.mxu0 %vm5775_vm0, %v7681_v24  ;;  %v2880_v38 = vadd.f32 %v2285_v50, %v6147_v2 }
 0x201   : > { %v6668_v11 = vsel %vm1457_vm13, %v1622_v49, %v1027_v33  ;;  %v2288_v29 = vpop.f32.mrb[26].mxu1 }
 0x202   : > { %v1904_v39 = vpack.c.bf16 %v6668_v11, %v6666_v27  ;;  %v2881_v53 = vadd.f32 %v2288_v29, %v6149_v5  ;;  %v1031_v52 = vpop.f32.mrb[136].mxu0  ;;  %v5367_v4 = vpop.f32.mrb[27].mxu1 }
 0x203   : > { %v1032_v55 = vadd.f32 %v6498_v43, %v1031_v52  ;;  %v5158_v3 = vpop.f32.mrb[137].mxu0 }
 0x204   : > { %v4414_v56 = vpack.c.bf16 %v2881_v53, %v2880_v38  ;;  %v1034_v17 = vpop.f32.mrb[138].mxu0  ;;  %5473 = vmatmul.mubr.msk.bf16.gmra.mrb[132].mxu1 %vm487_vm1, %v1904_v39 }
 0x205   : > { %v1623_v33 = vmul.f32 %v6505_v1, %v1032_v55  ;;  %v1035_v49 = vadd.f32 %v6498_v43, %v1034_v17  ;;  %v5159_v34 = vpop.f32.mrb[139].mxu0  ;;  %5476 = vmatprep.mubr.msk.bf16.mxu1 %vm5775_vm0, %v7681_v24  ;;  %vm1458_vm14 = vcmp.lt.f32.partialorder %v1032_v55, 0.0 }
 0x206   : > { %4781 = vst [vmem:[%s6552_s12 + $0x30] sm:$0xff] %v4414_v56   ;;  %v447_v34 = vpack.c.bf16 %v352_v61, %v351_v12  ;;  %v353_v12 = vld [vmem:[%s5874_s13 + $0x3f0] sm:$0xff]  ;;  %v354_v61 = vld [vmem:[%s5874_s13 + $0x3f8] sm:$0xff] }
 0x207   : > { %vm1459_vm15 = vcmp.lt.f32.partialorder %v1035_v49, 0.0  ;;  %v1624_v2 = vmul.f32 %v6505_v1, %v1035_v49  ;;  %5265 = vmatmul.mubr.msk.bf16.gmra.mrb[244].mxu0 %vm487_vm1, %v446_v18  ;;  %v2293_v5 = vpop.f32.mrb[28].mxu1  ;;  %v6687_v29 = vsel %vm1458_vm14, %v1623_v33, %v1032_v55 }
 0x208   : > { %v5370_v50 = vpop.f32.mrb[29].mxu1  ;;  %5268 = vmatprep.mubr.msk.bf16.mxu0 %vm5775_vm0, %v7681_v24  ;;  %v2882_v52 = vadd.f32 %v2293_v5, %v6165_v20 }
 0x209   : > { %v6689_v39 = vsel %vm1459_vm15, %v1624_v2, %v1035_v49  ;;  %v2296_v38 = vpop.f32.mrb[30].mxu1 }
 0x20a   : > { %v1905_v53 = vpack.c.bf16 %v6689_v39, %v6687_v29  ;;  %v2883_v4 = vadd.f32 %v2296_v38, %v6167_v21  ;;  %v1039_v3 = vpop.f32.mrb[140].mxu0  ;;  %v5371_v18 = vpop.f32.mrb[31].mxu1 }
 0x20b   : > { %v1040_v56 = vadd.f32 %v6498_v43, %v1039_v3  ;;  %v5162_v17 = vpop.f32.mrb[141].mxu0 }
 0x20c   : > { %v4419_v55 = vpack.c.bf16 %v2883_v4, %v2882_v52  ;;  %v1042_v33 = vpop.f32.mrb[142].mxu0  ;;  %5477 = vmatmul.mubr.msk.bf16.gmra.mrb[136].mxu1 %vm487_vm1, %v1905_v53 }
 0x20d   : > { %v1625_v49 = vmul.f32 %v6505_v1, %v1040_v56  ;;  %v1043_v2 = vadd.f32 %v6498_v43, %v1042_v33  ;;  %v5163_v50 = vpop.f32.mrb[143].mxu0  ;;  %5480 = vmatprep.mubr.msk.bf16.mxu1 %vm5775_vm0, %v7681_v24  ;;  %vm1460_vm2 = vcmp.lt.f32.partialorder %v1040_v56, 0.0 }
 0x20e   : > { %4782 = vst [vmem:[%s6552_s12 + $0x38] sm:$0xff] %v4419_v55   ;;  %v448_v50 = vpack.c.bf16 %v354_v61, %v353_v12  ;;  %v355_v12 = vld [vmem:[%s5874_s13 + $0x400] sm:$0xff]  ;;  %v356_v61 = vld [vmem:[%s5874_s13 + $0x408] sm:$0xff] }
 0x20f   : > { %vm1461_vm3 = vcmp.lt.f32.partialorder %v1043_v2, 0.0  ;;  %v1626_v20 = vmul.f32 %v6505_v1, %v1043_v2  ;;  %5269 = vmatmul.mubr.msk.bf16.gmra.mrb[248].mxu0 %vm487_vm1, %v447_v34  ;;  %v2301_v21 = vpop.f32.mrb[32].mxu1  ;;  %v6708_v38 = vsel %vm1460_vm2, %v1625_v49, %v1040_v56 }
 0x210   : > { %v5374_v5 = vpop.f32.mrb[33].mxu1  ;;  %5272 = vmatprep.mubr.msk.bf16.mxu0 %vm5775_vm0, %v7681_v24  ;;  %v2884_v3 = vadd.f32 %v2301_v21, %v6183_v40 }
 0x211   : > { %v6710_v53 = vsel %vm1461_vm3, %v1626_v20, %v1043_v2  ;;  %v2304_v52 = vpop.f32.mrb[34].mxu1 }
 0x212   : > { %v1906_v4 = vpack.c.bf16 %v6710_v53, %v6708_v38  ;;  %v2885_v18 = vadd.f32 %v2304_v52, %v6185_v41  ;;  %v1047_v17 = vpop.f32.mrb[144].mxu0  ;;  %v5375_v34 = vpop.f32.mrb[35].mxu1 }
 0x213   : > { %v1048_v55 = vadd.f32 %v6498_v43, %v1047_v17  ;;  %v5166_v33 = vpop.f32.mrb[145].mxu0 }
 0x214   : > { %v4424_v56 = vpack.c.bf16 %v2885_v18, %v2884_v3  ;;  %v1050_v49 = vpop.f32.mrb[146].mxu0  ;;  %5481 = vmatmul.mubr.msk.bf16.gmra.mrb[140].mxu1 %vm487_vm1, %v1906_v4 }
 0x215   : > { %v1627_v2 = vmul.f32 %v6505_v1, %v1048_v55  ;;  %v1051_v20 = vadd.f32 %v6498_v43, %v1050_v49  ;;  %v5167_v5 = vpop.f32.mrb[147].mxu0  ;;  %5484 = vmatprep.mubr.msk.bf16.mxu1 %vm5775_vm0, %v7681_v24  ;;  %vm1462_vm4 = vcmp.lt.f32.partialorder %v1048_v55, 0.0 }
 0x216   : > { %4783 = vst [vmem:[%s6552_s12 + $0x40] sm:$0xff] %v4424_v56   ;;  %v449_v5 = vpack.c.bf16 %v356_v61, %v355_v12  ;;  %v357_v12 = vld [vmem:[%s5874_s13 + $0x410] sm:$0xff]  ;;  %v358_v61 = vld [vmem:[%s5874_s13 + $0x418] sm:$0xff] }
 0x217   : > { %vm1463_vm5 = vcmp.lt.f32.partialorder %v1051_v20, 0.0  ;;  %v1628_v40 = vmul.f32 %v6505_v1, %v1051_v20  ;;  %5273 = vmatmul.mubr.msk.bf16.gmra.mrb[252].mxu0 %vm487_vm1, %v448_v50  ;;  %v2309_v41 = vpop.f32.mrb[36].mxu1  ;;  %v6729_v52 = vsel %vm1462_vm4, %v1627_v2, %v1048_v55 }
 0x218   : > { %v5378_v21 = vpop.f32.mrb[37].mxu1  ;;  %5276 = vmatprep.mubr.msk.bf16.mxu0 %vm5775_vm0, %v7681_v24  ;;  %v2886_v17 = vadd.f32 %v2309_v41, %v6201_v58 }
 0x219   : > { %v6731_v4 = vsel %vm1463_vm5, %v1628_v40, %v1051_v20  ;;  %v2312_v3 = vpop.f32.mrb[38].mxu1 }
 0x21a   : > { %v1907_v18 = vpack.c.bf16 %v6731_v4, %v6729_v52  ;;  %v2887_v34 = vadd.f32 %v2312_v3, %v6203_v59  ;;  %v1055_v33 = vpop.f32.mrb[148].mxu0  ;;  %v5379_v50 = vpop.f32.mrb[39].mxu1 }
 0x21b   : > { %v1056_v56 = vadd.f32 %v6498_v43, %v1055_v33  ;;  %v5170_v49 = vpop.f32.mrb[149].mxu0 }
 0x21c   : > { %v4429_v55 = vpack.c.bf16 %v2887_v34, %v2886_v17  ;;  %v1058_v2 = vpop.f32.mrb[150].mxu0  ;;  %5485 = vmatmul.mubr.msk.bf16.gmra.mrb[144].mxu1 %vm487_vm1, %v1907_v18 }
 0x21d   : > { %v1629_v20 = vmul.f32 %v6505_v1, %v1056_v56  ;;  %v1059_v40 = vadd.f32 %v6498_v43, %v1058_v2  ;;  %v5171_v21 = vpop.f32.mrb[151].mxu0  ;;  %5488 = vmatprep.mubr.msk.bf16.mxu1 %vm5775_vm0, %v7681_v24  ;;  %vm1464_vm6 = vcmp.lt.f32.partialorder %v1056_v56, 0.0 }
 0x21e   : > { %4784 = vst [vmem:[%s6552_s12 + $0x48] sm:$0xff] %v4429_v55   ;;  %v450_v21 = vpack.c.bf16 %v358_v61, %v357_v12  ;;  %v359_v12 = vld [vmem:[%s5874_s13 + $0x420] sm:$0xff]  ;;  %v360_v61 = vld [vmem:[%s5874_s13 + $0x428] sm:$0xff] }
 0x21f   : > { %vm1465_vm7 = vcmp.lt.f32.partialorder %v1059_v40, 0.0  ;;  %v1630_v58 = vmul.f32 %v6505_v1, %v1059_v40  ;;  %5277 = vmatmul.mubr.msk.bf16.gmra.mrb[0].mxu0 %vm487_vm1, %v449_v5  ;;  %v2317_v59 = vpop.f32.mrb[40].mxu1  ;;  %v6750_v3 = vsel %vm1464_vm6, %v1629_v20, %v1056_v56 }
 0x220   : > { %v5382_v41 = vpop.f32.mrb[41].mxu1  ;;  %5280 = vmatprep.mubr.msk.bf16.mxu0 %vm5775_vm0, %v7681_v24  ;;  %v2888_v33 = vadd.f32 %v2317_v59, %v6219_v13 }
 0x221   : > { %v6752_v18 = vsel %vm1465_vm7, %v1630_v58, %v1059_v40  ;;  %v2320_v17 = vpop.f32.mrb[42].mxu1 }
 0x222   : > { %v1908_v34 = vpack.c.bf16 %v6752_v18, %v6750_v3  ;;  %v2889_v50 = vadd.f32 %v2320_v17, %v6221_v14  ;;  %v1063_v49 = vpop.f32.mrb[152].mxu0  ;;  %v5383_v5 = vpop.f32.mrb[43].mxu1 }
 0x223   : > { %v1064_v55 = vadd.f32 %v6498_v43, %v1063_v49  ;;  %v5174_v2 = vpop.f32.mrb[153].mxu0 }
 0x224   : > { %v4434_v56 = vpack.c.bf16 %v2889_v50, %v2888_v33  ;;  %v1066_v20 = vpop.f32.mrb[154].mxu0  ;;  %5489 = vmatmul.mubr.msk.bf16.gmra.mrb[148].mxu1 %vm487_vm1, %v1908_v34 }
 0x225   : > { %v1631_v40 = vmul.f32 %v6505_v1, %v1064_v55  ;;  %v1067_v58 = vadd.f32 %v6498_v43, %v1066_v20  ;;  %v5175_v41 = vpop.f32.mrb[155].mxu0  ;;  %5492 = vmatprep.mubr.msk.bf16.mxu1 %vm5775_vm0, %v7681_v24  ;;  %vm1466_vm8 = vcmp.lt.f32.partialorder %v1064_v55, 0.0 }
 0x226   : > { %4785 = vst [vmem:[%s6552_s12 + $0x50] sm:$0xff] %v4434_v56   ;;  %v451_v41 = vpack.c.bf16 %v360_v61, %v359_v12  ;;  %v361_v12 = vld [vmem:[%s5874_s13 + $0x430] sm:$0xff]  ;;  %v362_v61 = vld [vmem:[%s5874_s13 + $0x438] sm:$0xff] }
 0x227   : > { %vm1467_vm9 = vcmp.lt.f32.partialorder %v1067_v58, 0.0  ;;  %v1632_v13 = vmul.f32 %v6505_v1, %v1067_v58  ;;  %5281 = vmatmul.mubr.msk.bf16.gmra.mrb[4].mxu0 %vm487_vm1, %v450_v21  ;;  %v2325_v14 = vpop.f32.mrb[44].mxu1  ;;  %v6771_v17 = vsel %vm1466_vm8, %v1631_v40, %v1064_v55 }
 0x228   : > { %v5386_v59 = vpop.f32.mrb[45].mxu1  ;;  %5284 = vmatprep.mubr.msk.bf16.mxu0 %vm5775_vm0, %v7681_v24  ;;  %v2890_v49 = vadd.f32 %v2325_v14, %v6237_v35 }
 0x229   : > { %v6773_v34 = vsel %vm1467_vm9, %v1632_v13, %v1067_v58  ;;  %v2328_v33 = vpop.f32.mrb[46].mxu1 }
 0x22a   : > { %v1909_v50 = vpack.c.bf16 %v6773_v34, %v6771_v17  ;;  %v2891_v5 = vadd.f32 %v2328_v33, %v6239_v36  ;;  %v1071_v2 = vpop.f32.mrb[156].mxu0  ;;  %v5387_v21 = vpop.f32.mrb[47].mxu1 }
 0x22b   : > { %v1072_v56 = vadd.f32 %v6498_v43, %v1071_v2  ;;  %v5178_v20 = vpop.f32.mrb[157].mxu0 }
 0x22c   : > { %v4439_v55 = vpack.c.bf16 %v2891_v5, %v2890_v49  ;;  %v1074_v40 = vpop.f32.mrb[158].mxu0  ;;  %5493 = vmatmul.mubr.msk.bf16.gmra.mrb[152].mxu1 %vm487_vm1, %v1909_v50 }
 0x22d   : > { %v1633_v58 = vmul.f32 %v6505_v1, %v1072_v56  ;;  %v1075_v13 = vadd.f32 %v6498_v43, %v1074_v40  ;;  %v5179_v59 = vpop.f32.mrb[159].mxu0  ;;  %5496 = vmatprep.mubr.msk.bf16.mxu1 %vm5775_vm0, %v7681_v24  ;;  %vm1468_vm10 = vcmp.lt.f32.partialorder %v1072_v56, 0.0 }
 0x22e   : > { %4786 = vst [vmem:[%s6552_s12 + $0x58] sm:$0xff] %v4439_v55   ;;  %v452_v59 = vpack.c.bf16 %v362_v61, %v361_v12  ;;  %v363_v12 = vld [vmem:[%s5874_s13 + $0x440] sm:$0xff]  ;;  %v364_v61 = vld [vmem:[%s5874_s13 + $0x448] sm:$0xff] }
 0x22f   : > { %vm1469_vm11 = vcmp.lt.f32.partialorder %v1075_v13, 0.0  ;;  %v1634_v35 = vmul.f32 %v6505_v1, %v1075_v13  ;;  %5285 = vmatmul.mubr.msk.bf16.gmra.mrb[8].mxu0 %vm487_vm1, %v451_v41  ;;  %v2333_v36 = vpop.f32.mrb[48].mxu1  ;;  %v6792_v33 = vsel %vm1468_vm10, %v1633_v58, %v1072_v56 }
 0x230   : > { %v5390_v14 = vpop.f32.mrb[49].mxu1  ;;  %5288 = vmatprep.mubr.msk.bf16.mxu0 %vm5775_vm0, %v7681_v24  ;;  %v2892_v2 = vadd.f32 %v2333_v36, %v6255_v57 }
 0x231   : > { %v6794_v50 = vsel %vm1469_vm11, %v1634_v35, %v1075_v13  ;;  %v2336_v49 = vpop.f32.mrb[50].mxu1 }
 0x232   : > { %v1910_v5 = vpack.c.bf16 %v6794_v50, %v6792_v33  ;;  %v2893_v21 = vadd.f32 %v2336_v49, %v6257_v60  ;;  %v1079_v20 = vpop.f32.mrb[160].mxu0  ;;  %v5391_v41 = vpop.f32.mrb[51].mxu1 }
 0x233   : > { %v1080_v55 = vadd.f32 %v6498_v43, %v1079_v20  ;;  %v5182_v40 = vpop.f32.mrb[161].mxu0 }
 0x234   : > { %v4444_v56 = vpack.c.bf16 %v2893_v21, %v2892_v2  ;;  %v1082_v58 = vpop.f32.mrb[162].mxu0  ;;  %5497 = vmatmul.mubr.msk.bf16.gmra.mrb[156].mxu1 %vm487_vm1, %v1910_v5 }
 0x235   : > { %v1635_v13 = vmul.f32 %v6505_v1, %v1080_v55  ;;  %v1083_v35 = vadd.f32 %v6498_v43, %v1082_v58  ;;  %v5183_v14 = vpop.f32.mrb[163].mxu0  ;;  %5500 = vmatprep.mubr.msk.bf16.mxu1 %vm5775_vm0, %v7681_v24  ;;  %vm1470_vm12 = vcmp.lt.f32.partialorder %v1080_v55, 0.0 }
 0x236   : > { %4787 = vst [vmem:[%s6552_s12 + $0x60] sm:$0xff] %v4444_v56   ;;  %v453_v14 = vpack.c.bf16 %v364_v61, %v363_v12  ;;  %v365_v12 = vld [vmem:[%s5874_s13 + $0x450] sm:$0xff]  ;;  %v366_v61 = vld [vmem:[%s5874_s13 + $0x458] sm:$0xff] }
 0x237   : > { %vm1471_vm13 = vcmp.lt.f32.partialorder %v1083_v35, 0.0  ;;  %v1636_v57 = vmul.f32 %v6505_v1, %v1083_v35  ;;  %5289 = vmatmul.mubr.msk.bf16.gmra.mrb[12].mxu0 %vm487_vm1, %v452_v59  ;;  %v2341_v60 = vpop.f32.mrb[52].mxu1  ;;  %v6813_v49 = vsel %vm1470_vm12, %v1635_v13, %v1080_v55 }
 0x238   : > { %v5394_v36 = vpop.f32.mrb[53].mxu1  ;;  %5292 = vmatprep.mubr.msk.bf16.mxu0 %vm5775_vm0, %v7681_v24  ;;  %v2894_v20 = vadd.f32 %v2341_v60, %v6273_v16 }
 0x239   : > { %v6815_v5 = vsel %vm1471_vm13, %v1636_v57, %v1083_v35  ;;  %v2344_v2 = vpop.f32.mrb[54].mxu1 }
 0x23a   : > { %v1911_v21 = vpack.c.bf16 %v6815_v5, %v6813_v49  ;;  %v2895_v41 = vadd.f32 %v2344_v2, %v6275_v19  ;;  %v1087_v40 = vpop.f32.mrb[164].mxu0  ;;  %v5395_v59 = vpop.f32.mrb[55].mxu1 }
 0x23b   : > { %v1088_v56 = vadd.f32 %v6498_v43, %v1087_v40  ;;  %v5186_v58 = vpop.f32.mrb[165].mxu0 }
 0x23c   : > { %v4449_v55 = vpack.c.bf16 %v2895_v41, %v2894_v20  ;;  %v1090_v13 = vpop.f32.mrb[166].mxu0  ;;  %5501 = vmatmul.mubr.msk.bf16.gmra.mrb[160].mxu1 %vm487_vm1, %v1911_v21 }
 0x23d   : > { %v1637_v35 = vmul.f32 %v6505_v1, %v1088_v56  ;;  %v1091_v57 = vadd.f32 %v6498_v43, %v1090_v13  ;;  %v5187_v36 = vpop.f32.mrb[167].mxu0  ;;  %5504 = vmatprep.mubr.msk.bf16.mxu1 %vm5775_vm0, %v7681_v24  ;;  %vm1472_vm14 = vcmp.lt.f32.partialorder %v1088_v56, 0.0 }
 0x23e   : > { %4788 = vst [vmem:[%s6552_s12 + $0x68] sm:$0xff] %v4449_v55   ;;  %v454_v36 = vpack.c.bf16 %v366_v61, %v365_v12  ;;  %v367_v12 = vld [vmem:[%s5874_s13 + $0x460] sm:$0xff]  ;;  %v368_v61 = vld [vmem:[%s5874_s13 + $0x468] sm:$0xff] }
 0x23f   : > { %vm1473_vm15 = vcmp.lt.f32.partialorder %v1091_v57, 0.0  ;;  %v1638_v16 = vmul.f32 %v6505_v1, %v1091_v57  ;;  %5293 = vmatmul.mubr.msk.bf16.gmra.mrb[16].mxu0 %vm487_vm1, %v453_v14  ;;  %v2349_v19 = vpop.f32.mrb[56].mxu1  ;;  %v6834_v2 = vsel %vm1472_vm14, %v1637_v35, %v1088_v56 }
 0x240   : > { %v5398_v60 = vpop.f32.mrb[57].mxu1  ;;  %5296 = vmatprep.mubr.msk.bf16.mxu0 %vm5775_vm0, %v7681_v24  ;;  %v2896_v40 = vadd.f32 %v2349_v19, %v6291_v44 }
 0x241   : > { %v6836_v21 = vsel %vm1473_vm15, %v1638_v16, %v1091_v57  ;;  %v2352_v20 = vpop.f32.mrb[58].mxu1 }
 0x242   : > { %v1912_v41 = vpack.c.bf16 %v6836_v21, %v6834_v2  ;;  %v2897_v59 = vadd.f32 %v2352_v20, %v6293_v45  ;;  %v1095_v58 = vpop.f32.mrb[168].mxu0  ;;  %v5399_v14 = vpop.f32.mrb[59].mxu1 }
 0x243   : > { %v1096_v55 = vadd.f32 %v6498_v43, %v1095_v58  ;;  %v5190_v13 = vpop.f32.mrb[169].mxu0 }
 0x244   : > { %v4454_v56 = vpack.c.bf16 %v2897_v59, %v2896_v40  ;;  %v1098_v35 = vpop.f32.mrb[170].mxu0  ;;  %5505 = vmatmul.mubr.msk.bf16.gmra.mrb[164].mxu1 %vm487_vm1, %v1912_v41 }
 0x245   : > { %v1639_v57 = vmul.f32 %v6505_v1, %v1096_v55  ;;  %v1099_v16 = vadd.f32 %v6498_v43, %v1098_v35  ;;  %v5191_v60 = vpop.f32.mrb[171].mxu0  ;;  %5508 = vmatprep.mubr.msk.bf16.mxu1 %vm5775_vm0, %v7681_v24  ;;  %vm1474_vm2 = vcmp.lt.f32.partialorder %v1096_v55, 0.0 }
 0x246   : > { %4789 = vst [vmem:[%s6552_s12 + $0x70] sm:$0xff] %v4454_v56   ;;  %v455_v60 = vpack.c.bf16 %v368_v61, %v367_v12  ;;  %v369_v12 = vld [vmem:[%s5874_s13 + $0x470] sm:$0xff]  ;;  %v370_v61 = vld [vmem:[%s5874_s13 + $0x478] sm:$0xff] }
 0x247   : > { %vm1475_vm3 = vcmp.lt.f32.partialorder %v1099_v16, 0.0  ;;  %v1640_v44 = vmul.f32 %v6505_v1, %v1099_v16  ;;  %5297 = vmatmul.mubr.msk.bf16.gmra.mrb[20].mxu0 %vm487_vm1, %v454_v36  ;;  %v2357_v45 = vpop.f32.mrb[60].mxu1  ;;  %v6855_v20 = vsel %vm1474_vm2, %v1639_v57, %v1096_v55 }
 0x248   : > { %v5402_v19 = vpop.f32.mrb[61].mxu1  ;;  %5300 = vmatprep.mubr.msk.bf16.mxu0 %vm5775_vm0, %v7681_v24  ;;  %v2898_v58 = vadd.f32 %v2357_v45, %v6309_v7 }
 0x249   : > { %v6857_v41 = vsel %vm1475_vm3, %v1640_v44, %v1099_v16  ;;  %v2360_v40 = vpop.f32.mrb[62].mxu1 }
 0x24a   : > { %v1913_v59 = vpack.c.bf16 %v6857_v41, %v6855_v20  ;;  %v2899_v14 = vadd.f32 %v2360_v40, %v6311_v8  ;;  %v1103_v13 = vpop.f32.mrb[172].mxu0  ;;  %v5403_v36 = vpop.f32.mrb[63].mxu1 }
 0x24b   : > { %v1104_v56 = vadd.f32 %v6498_v43, %v1103_v13  ;;  %v5194_v35 = vpop.f32.mrb[173].mxu0 }
 0x24c   : > { %v4459_v55 = vpack.c.bf16 %v2899_v14, %v2898_v58  ;;  %v1106_v57 = vpop.f32.mrb[174].mxu0  ;;  %5509 = vmatmul.mubr.msk.bf16.gmra.mrb[168].mxu1 %vm487_vm1, %v1913_v59 }
 0x24d   : > { %v1641_v16 = vmul.f32 %v6505_v1, %v1104_v56  ;;  %v1107_v44 = vadd.f32 %v6498_v43, %v1106_v57  ;;  %v5195_v19 = vpop.f32.mrb[175].mxu0  ;;  %5512 = vmatprep.mubr.msk.bf16.mxu1 %vm5775_vm0, %v7681_v24  ;;  %vm1476_vm4 = vcmp.lt.f32.partialorder %v1104_v56, 0.0 }
 0x24e   : > { %4790 = vst [vmem:[%s6552_s12 + $0x78] sm:$0xff] %v4459_v55   ;;  %v456_v19 = vpack.c.bf16 %v370_v61, %v369_v12  ;;  %v371_v12 = vld [vmem:[%s5874_s13 + $0x480] sm:$0xff]  ;;  %v372_v61 = vld [vmem:[%s5874_s13 + $0x488] sm:$0xff] }
 0x24f   : > { %vm1477_vm5 = vcmp.lt.f32.partialorder %v1107_v44, 0.0  ;;  %v1642_v7 = vmul.f32 %v6505_v1, %v1107_v44  ;;  %5301 = vmatmul.mubr.msk.bf16.gmra.mrb[24].mxu0 %vm487_vm1, %v455_v60  ;;  %v2365_v8 = vpop.f32.mrb[64].mxu1  ;;  %v6876_v40 = vsel %vm1476_vm4, %v1641_v16, %v1104_v56 }
 0x250   : > { %v5406_v45 = vpop.f32.mrb[65].mxu1  ;;  %5304 = vmatprep.mubr.msk.bf16.mxu0 %vm5775_vm0, %v7681_v24  ;;  %v2900_v13 = vadd.f32 %v2365_v8, %v6327_v31 }
 0x251   : > { %v6878_v59 = vsel %vm1477_vm5, %v1642_v7, %v1107_v44  ;;  %v2368_v58 = vpop.f32.mrb[66].mxu1 }
 0x252   : > { %v1914_v14 = vpack.c.bf16 %v6878_v59, %v6876_v40  ;;  %v2901_v36 = vadd.f32 %v2368_v58, %v6329_v32  ;;  %v1111_v35 = vpop.f32.mrb[176].mxu0  ;;  %v5407_v60 = vpop.f32.mrb[67].mxu1 }
 0x253   : > { %v1112_v55 = vadd.f32 %v6498_v43, %v1111_v35  ;;  %v5198_v57 = vpop.f32.mrb[177].mxu0 }
 0x254   : > { %v4464_v56 = vpack.c.bf16 %v2901_v36, %v2900_v13  ;;  %v1114_v16 = vpop.f32.mrb[178].mxu0  ;;  %5513 = vmatmul.mubr.msk.bf16.gmra.mrb[172].mxu1 %vm487_vm1, %v1914_v14  ;;  %v6908_v57 = vld [vmem:[%s7637_s2] ss:$0 sm:$0xff] }
 0x255   : > { %v1643_v44 = vmul.f32 %v6505_v1, %v1112_v55  ;;  %v1115_v7 = vadd.f32 %v6498_v43, %v1114_v16  ;;  %v5199_v45 = vpop.f32.mrb[179].mxu0  ;;  %5516 = vmatprep.mubr.msk.bf16.mxu1 %vm5775_vm0, %v7681_v24  ;;  %vm1478_vm6 = vcmp.lt.f32.partialorder %v1112_v55, 0.0 }
 0x256   : > { %4791 = vst [vmem:[%s6552_s12 + $0x80] sm:$0xff] %v4464_v56   ;;  %v457_v56 = vpack.c.bf16 %v372_v61, %v371_v12  ;;  %v373_v12 = vld [vmem:[%s5874_s13 + $0x490] sm:$0xff]  ;;  %v374_v61 = vld [vmem:[%s5874_s13 + $0x498] sm:$0xff] }
 0x257   : > { %vm1479_vm7 = vcmp.lt.f32.partialorder %v1115_v7, 0.0  ;;  %v1644_v31 = vmul.f32 %v6505_v1, %v1115_v7  ;;  %5305 = vmatmul.mubr.msk.bf16.gmra.mrb[28].mxu0 %vm487_vm1, %v456_v19  ;;  %v2373_v32 = vpop.f32.mrb[68].mxu1  ;;  %v6897_v58 = vsel %vm1478_vm6, %v1643_v44, %v1112_v55 }
 0x258   : > { %v5410_v8 = vpop.f32.mrb[69].mxu1  ;;  %5308 = vmatprep.mubr.msk.bf16.mxu0 %vm5775_vm0, %v7681_v24  ;;  %v2902_v36 = vadd.f32 %v2373_v32, %v6345_v63  ;;  %v6915_v63 = vld [vmem:[%s7639_s4] ss:$0 sm:$0xff] }
 0x259   : > { %v6899_v43 = vsel %vm1479_vm7, %v1644_v31, %v1115_v7  ;;  %v2376_v14 = vpop.f32.mrb[70].mxu1 }
 0x25a   : > { %v1915_v13 = vpack.c.bf16 %v6899_v43, %v6897_v58  ;;  %v2903_v1 = vadd.f32 %v2376_v14, %v6347_v0  ;;  %v1119_v35 = vpop.f32.mrb[180].mxu0  ;;  %v5411_v60 = vpop.f32.mrb[71].mxu1 }
 0x25b   : > { %v1120_v55 = vadd.f32 %v6908_v57, %v1119_v35  ;;  %v5202_v19 = vpop.f32.mrb[181].mxu0 }
 0x25c   : > { %v4469_v16 = vpack.c.bf16 %v2903_v1, %v2902_v36  ;;  %v1122_v44 = vpop.f32.mrb[182].mxu0  ;;  %5517 = vmatmul.mubr.msk.bf16.gmra.mrb[176].mxu1 %vm487_vm1, %v1915_v13 }
 0x25d   : > { %v1645_v0 = vmul.f32 %v6915_v63, %v1120_v55  ;;  %v1123_v7 = vadd.f32 %v6908_v57, %v1122_v44  ;;  %v5203_v45 = vpop.f32.mrb[183].mxu0  ;;  %5520 = vmatprep.mubr.msk.bf16.mxu1 %vm5775_vm0, %v7681_v24  ;;  %vm1480_vm8 = vcmp.lt.f32.partialorder %v1120_v55, 0.0 }
 0x25e   : > { %4792 = vst [vmem:[%s6552_s12 + $0x88] sm:$0xff] %v4469_v16   ;;  %v458_v45 = vpack.c.bf16 %v374_v61, %v373_v12  ;;  %v375_v12 = vld [vmem:[%s5874_s13 + $0x4a0] sm:$0xff]  ;;  %v376_v61 = vld [vmem:[%s5874_s13 + $0x4a8] sm:$0xff] }
 0x25f   : > { %vm1481_vm9 = vcmp.lt.f32.partialorder %v1123_v7, 0.0  ;;  %v1646_v31 = vmul.f32 %v6915_v63, %v1123_v7  ;;  %5309 = vmatmul.mubr.msk.bf16.gmra.mrb[32].mxu0 %vm487_vm1, %v457_v56  ;;  %v2381_v32 = vpop.f32.mrb[72].mxu1  ;;  %v6928_v14 = vsel %vm1480_vm8, %v1645_v0, %v1120_v55 }
 0x260   : > { %v5414_v8 = vpop.f32.mrb[73].mxu1  ;;  %5312 = vmatprep.mubr.msk.bf16.mxu0 %vm5775_vm0, %v7681_v24  ;;  %v2904_v35 = vadd.f32 %v2381_v32, %v6363_v30 }
 0x261   : > { %v6930_v13 = vsel %vm1481_vm9, %v1646_v31, %v1123_v7  ;;  %v2384_v36 = vpop.f32.mrb[74].mxu1 }
 0x262   : > { %v1916_v1 = vpack.c.bf16 %v6930_v13, %v6928_v14  ;;  %v2905_v60 = vadd.f32 %v2384_v36, %v6365_v37  ;;  %v1127_v19 = vpop.f32.mrb[184].mxu0  ;;  %v5415_v56 = vpop.f32.mrb[75].mxu1 }
 0x263   : > { %v1128_v16 = vadd.f32 %v6908_v57, %v1127_v19  ;;  %v5206_v44 = vpop.f32.mrb[185].mxu0 }
 0x264   : > { %v4474_v55 = vpack.c.bf16 %v2905_v60, %v2904_v35  ;;  %v1130_v0 = vpop.f32.mrb[186].mxu0  ;;  %5521 = vmatmul.mubr.msk.bf16.gmra.mrb[180].mxu1 %vm487_vm1, %v1916_v1 }
 0x265   : > { %v1647_v7 = vmul.f32 %v6915_v63, %v1128_v16  ;;  %v1131_v31 = vadd.f32 %v6908_v57, %v1130_v0  ;;  %v5207_v8 = vpop.f32.mrb[187].mxu0  ;;  %5524 = vmatprep.mubr.msk.bf16.mxu1 %vm5775_vm0, %v7681_v24  ;;  %vm1482_vm10 = vcmp.lt.f32.partialorder %v1128_v16, 0.0 }
 0x266   : > { %4793 = vst [vmem:[%s6552_s12 + $0x90] sm:$0xff] %v4474_v55   ;;  %v459_v8 = vpack.c.bf16 %v376_v61, %v375_v12  ;;  %v377_v12 = vld [vmem:[%s5874_s13 + $0x4b0] sm:$0xff]  ;;  %v378_v61 = vld [vmem:[%s5874_s13 + $0x4b8] sm:$0xff] }
 0x267   : > { %vm1483_vm11 = vcmp.lt.f32.partialorder %v1131_v31, 0.0  ;;  %v1648_v30 = vmul.f32 %v6915_v63, %v1131_v31  ;;  %5313 = vmatmul.mubr.msk.bf16.gmra.mrb[36].mxu0 %vm487_vm1, %v458_v45  ;;  %v2389_v37 = vpop.f32.mrb[76].mxu1  ;;  %v6949_v36 = vsel %vm1482_vm10, %v1647_v7, %v1128_v16 }
 0x268   : > { %v5418_v32 = vpop.f32.mrb[77].mxu1  ;;  %5316 = vmatprep.mubr.msk.bf16.mxu0 %vm5775_vm0, %v7681_v24  ;;  %v2906_v19 = vadd.f32 %v2389_v37, %v6381_v9 }
 0x269   : > { %v6951_v1 = vsel %vm1483_vm11, %v1648_v30, %v1131_v31  ;;  %v2392_v35 = vpop.f32.mrb[78].mxu1 }
 0x26a   : > { %v1917_v60 = vpack.c.bf16 %v6951_v1, %v6949_v36  ;;  %v2907_v56 = vadd.f32 %v2392_v35, %v6383_v10  ;;  %v1135_v44 = vpop.f32.mrb[188].mxu0  ;;  %v5419_v45 = vpop.f32.mrb[79].mxu1 }
 0x26b   : > { %v1136_v55 = vadd.f32 %v6908_v57, %v1135_v44  ;;  %v5210_v0 = vpop.f32.mrb[189].mxu0 }
 0x26c   : > { %v4479_v16 = vpack.c.bf16 %v2907_v56, %v2906_v19  ;;  %v1138_v7 = vpop.f32.mrb[190].mxu0  ;;  %5525 = vmatmul.mubr.msk.bf16.gmra.mrb[184].mxu1 %vm487_vm1, %v1917_v60 }
 0x26d   : > { %v1649_v31 = vmul.f32 %v6915_v63, %v1136_v55  ;;  %v1139_v30 = vadd.f32 %v6908_v57, %v1138_v7  ;;  %v5211_v32 = vpop.f32.mrb[191].mxu0  ;;  %5528 = vmatprep.mubr.msk.bf16.mxu1 %vm5775_vm0, %v7681_v24  ;;  %vm1484_vm12 = vcmp.lt.f32.partialorder %v1136_v55, 0.0 }
 0x26e   : > { %4794 = vst [vmem:[%s6552_s12 + $0x98] sm:$0xff] %v4479_v16   ;;  %v460_v32 = vpack.c.bf16 %v378_v61, %v377_v12  ;;  %v379_v12 = vld [vmem:[%s5874_s13 + $0x4c0] sm:$0xff]  ;;  %v380_v61 = vld [vmem:[%s5874_s13 + $0x4c8] sm:$0xff] }
 0x26f   : > { %vm1485_vm13 = vcmp.lt.f32.partialorder %v1139_v30, 0.0  ;;  %v1650_v9 = vmul.f32 %v6915_v63, %v1139_v30  ;;  %5317 = vmatmul.mubr.msk.bf16.gmra.mrb[40].mxu0 %vm487_vm1, %v459_v8  ;;  %v2397_v10 = vpop.f32.mrb[80].mxu1  ;;  %v6970_v35 = vsel %vm1484_vm12, %v1649_v31, %v1136_v55 }
 0x270   : > { %v5422_v37 = vpop.f32.mrb[81].mxu1  ;;  %5320 = vmatprep.mubr.msk.bf16.mxu0 %vm5775_vm0, %v7681_v24  ;;  %7686 = vst [vmem:[#allocation17_spill] sm:$0xff] %v6970_v35  ;;  %v2908_v44 = vadd.f32 %v2397_v10, %v6399_v47 }
 0x271   : > { %v6972_v60 = vsel %vm1485_vm13, %v1650_v9, %v1139_v30  ;;  %v2400_v19 = vpop.f32.mrb[82].mxu1 }
 0x272   : > { %7687 = vst [vmem:[#allocation18_spill] sm:$0xff] %v6972_v60  ;;  %v1918_v56 = vpack.c.bf16 %v6972_v60, %v6970_v35  ;;  %v2909_v45 = vadd.f32 %v2400_v19, %v6401_v48  ;;  %v1143_v0 = vpop.f32.mrb[192].mxu0  ;;  %v5423_v8 = vpop.f32.mrb[83].mxu1  ;;  %v461_v60 = vpack.c.bf16 %v380_v61, %v379_v12 }
 0x273   : > { %v1144_v16 = vadd.f32 %v6908_v57, %v1143_v0  ;;  %v5214_v7 = vpop.f32.mrb[193].mxu0  ;;  %v7690_v0 = vld [vmem:[#allocation5_spill] sm:$0xff] }
 0x274   : > { %v4484_v55 = vpack.c.bf16 %v2909_v45, %v2908_v44  ;;  %v1146_v31 = vpop.f32.mrb[194].mxu0  ;;  %5529 = vmatmul.mubr.msk.bf16.gmra.mrb[188].mxu1 %vm487_vm1, %v1918_v56  ;;  %v7691_v7 = vld [vmem:[#allocation6_spill] sm:$0xff] }
 0x275   : > { %v1651_v30 = vmul.f32 %v6915_v63, %v1144_v16  ;;  %v1147_v9 = vadd.f32 %v6908_v57, %v1146_v31  ;;  %v5215_v37 = vpop.f32.mrb[195].mxu0  ;;  %5532 = vmatprep.mubr.msk.bf16.mxu1 %vm5775_vm0, %v7681_v24  ;;  %vm1486_vm14 = vcmp.lt.f32.partialorder %v1144_v16, 0.0 }
 0x276   : > { %4795 = vst [vmem:[%s6552_s12 + $0xa0] sm:$0xff] %v4484_v55  }
 0x277   : > { %vm1487_vm15 = vcmp.lt.f32.partialorder %v1147_v9, 0.0  ;;  %v1652_v47 = vmul.f32 %v6915_v63, %v1147_v9  ;;  %5321 = vmatmul.mubr.msk.bf16.gmra.mrb[44].mxu0 %vm487_vm1, %v460_v32  ;;  %v2405_v48 = vpop.f32.mrb[84].mxu1  ;;  %v6991_v19 = vsel %vm1486_vm14, %v1651_v30, %v1144_v16 }
 0x278   : > { %v5426_v10 = vpop.f32.mrb[85].mxu1  ;;  %5324 = vmatprep.mubr.msk.bf16.mxu0 %vm5775_vm0, %v7681_v24  ;;  %7688 = vst [vmem:[#allocation19_spill] sm:$0xff] %v6991_v19  ;;  %v2910_v8 = vadd.f32 %v2405_v48, %v7690_v0 }
 0x279   : > { %v6993_v56 = vsel %vm1487_vm15, %v1652_v47, %v1147_v9  ;;  %v2408_v44 = vpop.f32.mrb[86].mxu1 }
 0x27a   : > { %7689 = vst [vmem:[#allocation20_spill] sm:$0xff] %v6993_v56  ;;  %v1919_v45 = vpack.c.bf16 %v6993_v56, %v6991_v19  ;;  %v2911_v32 = vadd.f32 %v2408_v44, %v7691_v7  ;;  %v1151_v55 = vpop.f32.mrb[196].mxu0  ;;  %v5427_v31 = vpop.f32.mrb[87].mxu1  ;;  %v381_v44 = vld [vmem:[%s5874_s13 + $0x4d0] sm:$0xff] }
 0x27b   : > { %v1152_v37 = vadd.f32 %v6908_v57, %v1151_v55  ;;  %v5218_v10 = vpop.f32.mrb[197].mxu0  ;;  %v7695_v31 = vld [vmem:[#allocation8_spill] sm:$0xff] }
 0x27c   : > { %v4489_v16 = vpack.c.bf16 %v2911_v32, %v2910_v8  ;;  %v1154_v30 = vpop.f32.mrb[198].mxu0  ;;  %5533 = vmatmul.mubr.msk.bf16.gmra.mrb[192].mxu1 %vm487_vm1, %v1919_v45  ;;  %v382_v45 = vld [vmem:[%s5874_s13 + $0x4d8] sm:$0xff]  ;;  %v7694_v32 = vld [vmem:[#allocation7_spill] sm:$0xff] }
 0x27d   : > { %v1653_v9 = vmul.f32 %v6915_v63, %v1152_v37  ;;  %v1155_v47 = vadd.f32 %v6908_v57, %v1154_v30  ;;  %v5219_v56 = vpop.f32.mrb[199].mxu0  ;;  %5536 = vmatprep.mubr.msk.bf16.mxu1 %vm5775_vm0, %v7681_v24  ;;  %vm1488_vm2 = vcmp.lt.f32.partialorder %v1152_v37, 0.0  ;;  %v462_v19 = vpack.c.bf16 %v382_v45, %v381_v44 }
 0x27e   : > { %4796 = vst [vmem:[%s6552_s12 + $0xa8] sm:$0xff] %v4489_v16  }
 0x27f   : > { %vm1489_vm3 = vcmp.lt.f32.partialorder %v1155_v47, 0.0  ;;  %v1654_v48 = vmul.f32 %v6915_v63, %v1155_v47  ;;  %5325 = vmatmul.mubr.msk.bf16.gmra.mrb[48].mxu0 %vm487_vm1, %v461_v60  ;;  %v2413_v12 = vpop.f32.mrb[88].mxu1  ;;  %v7012_v0 = vsel %vm1488_vm2, %v1653_v9, %v1152_v37 }
 0x280   : > { %v5430_v61 = vpop.f32.mrb[89].mxu1  ;;  %5328 = vmatprep.mubr.msk.bf16.mxu0 %vm5775_vm0, %v7681_v24  ;;  %7692 = vst [vmem:[#allocation5_spill] sm:$0xff] %v7012_v0  ;;  %v2912_v55 = vadd.f32 %v2413_v12, %v7694_v32 }
 0x281   : > { %v7014_v56 = vsel %vm1489_vm3, %v1654_v48, %v1155_v47  ;;  %v2416_v8 = vpop.f32.mrb[90].mxu1 }
 0x282   : > { %7693 = vst [vmem:[#allocation6_spill] sm:$0xff] %v7014_v56  ;;  %v1920_v7 = vpack.c.bf16 %v7014_v56, %v7012_v0  ;;  %v2913_v60 = vadd.f32 %v2416_v8, %v7695_v31  ;;  %v1159_v10 = vpop.f32.mrb[200].mxu0  ;;  %v5431_v16 = vpop.f32.mrb[91].mxu1  ;;  %v383_v8 = vld [vmem:[%s5874_s13 + $0x4e0] sm:$0xff] }
 0x283   : > { %v1160_v30 = vadd.f32 %v6908_v57, %v1159_v10  ;;  %v5222_v61 = vpop.f32.mrb[201].mxu0  ;;  %v7697_v16 = vld [vmem:[#allocation10_spill] sm:$0xff] }
 0x284   : > { %v4494_v37 = vpack.c.bf16 %v2913_v60, %v2912_v55  ;;  %v1162_v9 = vpop.f32.mrb[202].mxu0  ;;  %5537 = vmatmul.mubr.msk.bf16.gmra.mrb[196].mxu1 %vm487_vm1, %v1920_v7  ;;  %v384_v7 = vld [vmem:[%s5874_s13 + $0x4e8] sm:$0xff]  ;;  %v7696_v60 = vld [vmem:[#allocation9_spill] sm:$0xff] }
 0x285   : > { %v1655_v47 = vmul.f32 %v6915_v63, %v1160_v30  ;;  %v1163_v48 = vadd.f32 %v6908_v57, %v1162_v9  ;;  %v5223_v56 = vpop.f32.mrb[203].mxu0  ;;  %5540 = vmatprep.mubr.msk.bf16.mxu1 %vm5775_vm0, %v7681_v24  ;;  %vm1490_vm4 = vcmp.lt.f32.partialorder %v1160_v30, 0.0  ;;  %v463_v0 = vpack.c.bf16 %v384_v7, %v383_v8 }
 0x286   : > { %4797 = vst [vmem:[%s6552_s12 + $0xb0] sm:$0xff] %v4494_v37  }
 0x287   : > { %vm1491_vm5 = vcmp.lt.f32.partialorder %v1163_v48, 0.0  ;;  %v1656_v12 = vmul.f32 %v6915_v63, %v1163_v48  ;;  %5329 = vmatmul.mubr.msk.bf16.gmra.mrb[52].mxu0 %vm487_vm1, %v462_v19  ;;  %v2421_v44 = vpop.f32.mrb[92].mxu1  ;;  %v7033_v32 = vsel %vm1490_vm4, %v1655_v47, %v1160_v30 }
 0x288   : > { %v5434_v45 = vpop.f32.mrb[93].mxu1  ;;  %5332 = vmatprep.mubr.msk.bf16.mxu0 %vm5775_vm0, %v7681_v24  ;;  %v2914_v10 = vadd.f32 %v2421_v44, %v7696_v60 }
 0x289   : > { %v7035_v56 = vsel %vm1491_vm5, %v1656_v12, %v1163_v48  ;;  %v2424_v55 = vpop.f32.mrb[94].mxu1 }
 0x28a   : > { %v1921_v31 = vpack.c.bf16 %v7035_v56, %v7033_v32  ;;  %v2915_v19 = vadd.f32 %v2424_v55, %v7697_v16  ;;  %v1167_v61 = vpop.f32.mrb[204].mxu0  ;;  %v5435_v37 = vpop.f32.mrb[95].mxu1  ;;  %v7700_v16 = vld [vmem:[#allocation11_spill] sm:$0xff] }
 0x28b   : > { %v1168_v9 = vadd.f32 %v6908_v57, %v1167_v61  ;;  %v5226_v45 = vpop.f32.mrb[205].mxu0 }
 0x28c   : > { %v4499_v35 = vpack.c.bf16 %v2915_v19, %v2914_v10  ;;  %v1170_v30 = vpop.f32.mrb[206].mxu0  ;;  %5541 = vmatmul.mubr.msk.bf16.gmra.mrb[200].mxu1 %vm487_vm1, %v1921_v31 }
 0x28d   : > { %v1657_v47 = vmul.f32 %v6915_v63, %v1168_v9  ;;  %v1171_v48 = vadd.f32 %v6908_v57, %v1170_v30  ;;  %v5227_v12 = vpop.f32.mrb[207].mxu0  ;;  %5544 = vmatprep.mubr.msk.bf16.mxu1 %vm5775_vm0, %v7681_v24  ;;  %vm1492_vm6 = vcmp.lt.f32.partialorder %v1168_v9, 0.0 }
 0x28e   : > { %4798 = vst [vmem:[%s6552_s12 + $0xb8] sm:$0xff] %v4499_v35   ;;  %v7701_v35 = vld [vmem:[#allocation12_spill] sm:$0xff] }
 0x28f   : > { %vm1493_vm7 = vcmp.lt.f32.partialorder %v1171_v48, 0.0  ;;  %v1658_v44 = vmul.f32 %v6915_v63, %v1171_v48  ;;  %5333 = vmatmul.mubr.msk.bf16.gmra.mrb[56].mxu0 %vm487_vm1, %v463_v0  ;;  %v2429_v8 = vpop.f32.mrb[96].mxu1  ;;  %v7050_v55 = vsel %vm1492_vm6, %v1657_v47, %v1168_v9 }
 0x290   : > { %v5438_v7 = vpop.f32.mrb[97].mxu1  ;;  %7698 = vst [vmem:[#allocation7_spill] sm:$0xff] %v7050_v55  ;;  %v2916_v19 = vadd.f32 %v2429_v8, %v7700_v16 }
 0x291   : > { %v7052_v31 = vsel %vm1493_vm7, %v1658_v44, %v1171_v48  ;;  %v2432_v60 = vpop.f32.mrb[98].mxu1 }
 0x292   : > { %7699 = vst [vmem:[#allocation8_spill] sm:$0xff] %v7052_v31  ;;  %v1922_v10 = vpack.c.bf16 %v7052_v31, %v7050_v55  ;;  %v2917_v61 = vadd.f32 %v2432_v60, %v7701_v35  ;;  %v1175_v37 = vpop.f32.mrb[208].mxu0  ;;  %v5439_v45 = vpop.f32.mrb[99].mxu1 }
 0x293   : > { %v1176_v30 = vadd.f32 %v6908_v57, %v1175_v37  ;;  %v5230_v0 = vpop.f32.mrb[209].mxu0  ;;  %v7705_v45 = vld [vmem:[#allocation14_spill] sm:$0xff] }
 0x294   : > { %v4504_v12 = vpack.c.bf16 %v2917_v61, %v2916_v19  ;;  %v1178_v7 = vpop.f32.mrb[210].mxu0  ;;  %5545 = vmatmul.mubr.msk.bf16.gmra.mrb[204].mxu1 %vm487_vm1, %v1922_v10  ;;  %v7704_v61 = vld [vmem:[#allocation13_spill] sm:$0xff] }
 0x295   : > { %v1659_v9 = vmul.f32 %v6915_v63, %v1176_v30  ;;  %v1179_v47 = vadd.f32 %v6908_v57, %v1178_v7  ;;  %v5231_v48 = vpop.f32.mrb[211].mxu0  ;;  %5548 = vmatprep.mubr.msk.bf16.mxu1 %vm5775_vm0, %v7681_v24  ;;  %vm1494_vm8 = vcmp.lt.f32.partialorder %v1176_v30, 0.0 }
 0x296   : > { %4799 = vst [vmem:[%s6552_s12 + $0xc0] sm:$0xff] %v4504_v12  }
 0x297   : > { %vm1495_vm9 = vcmp.lt.f32.partialorder %v1179_v47, 0.0  ;;  %v1660_v44 = vmul.f32 %v6915_v63, %v1179_v47  ;;  %v2437_v8 = vpop.f32.mrb[100].mxu1  ;;  %v7066_v16 = vsel %vm1494_vm8, %v1659_v9, %v1176_v30 }
 0x298   : > { %v5442_v60 = vpop.f32.mrb[101].mxu1  ;;  %7702 = vst [vmem:[#allocation9_spill] sm:$0xff] %v7066_v16  ;;  %v2918_v37 = vadd.f32 %v2437_v8, %v7704_v61 }
 0x299   : > { %v7068_v19 = vsel %vm1495_vm9, %v1660_v44, %v1179_v47  ;;  %v2440_v10 = vpop.f32.mrb[102].mxu1 }
 0x29a   : > { %7703 = vst [vmem:[#allocation10_spill] sm:$0xff] %v7068_v19  ;;  %v1923_v35 = vpack.c.bf16 %v7068_v19, %v7066_v16  ;;  %v2919_v0 = vadd.f32 %v2440_v10, %v7705_v45  ;;  %v1183_v12 = vpop.f32.mrb[212].mxu0  ;;  %v5443_v7 = vpop.f32.mrb[103].mxu1  ;;  %v7706_v45 = vld [vmem:[#allocation15_spill] sm:$0xff] }
 0x29b   : > { %v1184_v48 = vadd.f32 %v6908_v57, %v1183_v12  ;;  %v5234_v31 = vpop.f32.mrb[213].mxu0  ;;  %v7707_v12 = vld [vmem:[#allocation16_spill] sm:$0xff] }
 0x29c   : > { %v4509_v55 = vpack.c.bf16 %v2919_v0, %v2918_v37  ;;  %v1186_v60 = vpop.f32.mrb[214].mxu0  ;;  %5549 = vmatmul.mubr.msk.bf16.gmra.mrb[208].mxu1 %vm487_vm1, %v1923_v35 }
 0x29d   : > { %v1661_v30 = vmul.f32 %v6915_v63, %v1184_v48  ;;  %v1187_v9 = vadd.f32 %v6908_v57, %v1186_v60  ;;  %v5235_v47 = vpop.f32.mrb[215].mxu0  ;;  %5552 = vmatprep.mubr.msk.bf16.mxu1 %vm5775_vm0, %v7681_v24  ;;  %vm1496_vm10 = vcmp.lt.f32.partialorder %v1184_v48, 0.0 }
 0x29e   : > { %4800 = vst [vmem:[%s6552_s12 + $0xc8] sm:$0xff] %v4509_v55  }
 0x29f   : > { %vm1497_vm11 = vcmp.lt.f32.partialorder %v1187_v9, 0.0  ;;  %v1662_v44 = vmul.f32 %v6915_v63, %v1187_v9  ;;  %v2445_v8 = vpop.f32.mrb[104].mxu1  ;;  %v7082_v31 = vsel %vm1496_vm10, %v1661_v30, %v1184_v48 }
 0x2a0   : > { %v5446_v10 = vpop.f32.mrb[105].mxu1  ;;  %v2920_v0 = vadd.f32 %v2445_v8, %v7706_v45 }
 0x2a1   : > { %v7084_v61 = vsel %vm1497_vm11, %v1662_v44, %v1187_v9  ;;  %v2448_v35 = vpop.f32.mrb[106].mxu1 }
 0x2a2   : > { %v1924_v37 = vpack.c.bf16 %v7084_v61, %v7082_v31  ;;  %v2921_v7 = vadd.f32 %v2448_v35, %v7707_v12  ;;  %v1191_v55 = vpop.f32.mrb[216].mxu0  ;;  %v5447_v60 = vpop.f32.mrb[107].mxu1 }
 0x2a3   : > { %v1192_v47 = vadd.f32 %v6908_v57, %v1191_v55  ;;  %v5238_v19 = vpop.f32.mrb[217].mxu0 }
 0x2a4   : > { %v4514_v16 = vpack.c.bf16 %v2921_v7, %v2920_v0  ;;  %v1194_v10 = vpop.f32.mrb[218].mxu0  ;;  %5553 = vmatmul.mubr.msk.bf16.gmra.mrb[212].mxu1 %vm487_vm1, %v1924_v37 }
 0x2a5   : > { %v1663_v48 = vmul.f32 %v6915_v63, %v1192_v47  ;;  %v1195_v30 = vadd.f32 %v6908_v57, %v1194_v10  ;;  %v5239_v9 = vpop.f32.mrb[219].mxu0  ;;  %5556 = vmatprep.mubr.msk.bf16.mxu1 %vm5775_vm0, %v7681_v24  ;;  %vm1498_vm12 = vcmp.lt.f32.partialorder %v1192_v47, 0.0 }
 0x2a6   : > { %4801 = vst [vmem:[%s6552_s12 + $0xd0] sm:$0xff] %v4514_v16  }
 0x2a7   : > { %vm1499_vm13 = vcmp.lt.f32.partialorder %v1195_v30, 0.0  ;;  %v1664_v44 = vmul.f32 %v6915_v63, %v1195_v30  ;;  %v2453_v8 = vpop.f32.mrb[108].mxu1  ;;  %v7098_v19 = vsel %vm1498_vm12, %v1663_v48, %v1192_v47 }
 0x2a8   : > { %v5450_v35 = vpop.f32.mrb[109].mxu1  ;;  %v2922_v12 = vadd.f32 %v2453_v8, %v6538_v42 }
 0x2a9   : > { %v7100_v45 = vsel %vm1499_vm13, %v1664_v44, %v1195_v30  ;;  %v2456_v37 = vpop.f32.mrb[110].mxu1 }
 0x2aa   : > { %v1925_v0 = vpack.c.bf16 %v7100_v45, %v7098_v19  ;;  %v2923_v7 = vadd.f32 %v2456_v37, %v6540_v51  ;;  %v1199_v16 = vpop.f32.mrb[220].mxu0  ;;  %v5451_v55 = vpop.f32.mrb[111].mxu1 }
 0x2ab   : > { %v1200_v60 = vadd.f32 %v6908_v57, %v1199_v16  ;;  %v5242_v10 = vpop.f32.mrb[221].mxu0 }
 0x2ac   : > { %v4519_v9 = vpack.c.bf16 %v2923_v7, %v2922_v12  ;;  %v1202_v35 = vpop.f32.mrb[222].mxu0  ;;  %5557 = vmatmul.mubr.msk.bf16.gmra.mrb[216].mxu1 %vm487_vm1, %v1925_v0 }
 0x2ad   : > { %v1665_v47 = vmul.f32 %v6915_v63, %v1200_v60  ;;  %v1203_v48 = vadd.f32 %v6908_v57, %v1202_v35  ;;  %v5243_v30 = vpop.f32.mrb[223].mxu0  ;;  %5560 = vmatprep.mubr.msk.bf16.mxu1 %vm5775_vm0, %v7681_v24  ;;  %vm1500_vm14 = vcmp.lt.f32.partialorder %v1200_v60, 0.0 }
 0x2ae   : > { %4802 = vst [vmem:[%s6552_s12 + $0xd8] sm:$0xff] %v4519_v9  }
 0x2af   : > { %vm1501_vm15 = vcmp.lt.f32.partialorder %v1203_v48, 0.0  ;;  %v1666_v42 = vmul.f32 %v6915_v63, %v1203_v48  ;;  %v2461_v51 = vpop.f32.mrb[112].mxu1  ;;  %v7114_v8 = vsel %vm1500_vm14, %v1665_v47, %v1200_v60 }
 0x2b0   : > { %v5454_v44 = vpop.f32.mrb[113].mxu1  ;;  %v2924_v7 = vadd.f32 %v2461_v51, %v6561_v46 }
 0x2b1   : > { %v7116_v37 = vsel %vm1501_vm15, %v1666_v42, %v1203_v48  ;;  %v2464_v0 = vpop.f32.mrb[114].mxu1 }
 0x2b2   : > { %v1926_v12 = vpack.c.bf16 %v7116_v37, %v7114_v8  ;;  %v2925_v16 = vadd.f32 %v2464_v0, %v6563_v62  ;;  %v1207_v55 = vpop.f32.mrb[224].mxu0  ;;  %v5455_v10 = vpop.f32.mrb[115].mxu1 }
 0x2b3   : > { %v1208_v9 = vadd.f32 %v6908_v57, %v1207_v55  ;;  %v5246_v35 = vpop.f32.mrb[225].mxu0 }
 0x2b4   : > { %v4524_v30 = vpack.c.bf16 %v2925_v16, %v2924_v7  ;;  %v1210_v44 = vpop.f32.mrb[226].mxu0  ;;  %5561 = vmatmul.mubr.msk.bf16.gmra.mrb[220].mxu1 %vm487_vm1, %v1926_v12 }
 0x2b5   : > { %v1667_v60 = vmul.f32 %v6915_v63, %v1208_v9  ;;  %v1211_v47 = vadd.f32 %v6908_v57, %v1210_v44  ;;  %v5247_v48 = vpop.f32.mrb[227].mxu0  ;;  %5564 = vmatprep.mubr.msk.bf16.mxu1 %vm5775_vm0, %v7681_v24  ;;  %vm1502_vm2 = vcmp.lt.f32.partialorder %v1208_v9, 0.0 }
 0x2b6   : > { %4803 = vst [vmem:[%s6552_s12 + $0xe0] sm:$0xff] %v4524_v30  }
 0x2b7   : > { %vm1503_vm3 = vcmp.lt.f32.partialorder %v1211_v47, 0.0  ;;  %v1668_v46 = vmul.f32 %v6915_v63, %v1211_v47  ;;  %v2469_v62 = vpop.f32.mrb[116].mxu1  ;;  %v7130_v51 = vsel %vm1502_vm2, %v1667_v60, %v1208_v9 }
 0x2b8   : > { %v5458_v42 = vpop.f32.mrb[117].mxu1  ;;  %v2926_v16 = vadd.f32 %v2469_v62, %v6582_v15 }
 0x2b9   : > { %v7132_v0 = vsel %vm1503_vm3, %v1668_v46, %v1211_v47  ;;  %v2472_v12 = vpop.f32.mrb[118].mxu1 }
 0x2ba   : > { %v1927_v7 = vpack.c.bf16 %v7132_v0, %v7130_v51  ;;  %v2927_v55 = vadd.f32 %v2472_v12, %v6584_v25  ;;  %v1215_v10 = vpop.f32.mrb[228].mxu0  ;;  %v5459_v35 = vpop.f32.mrb[119].mxu1 }
 0x2bb   : > { %v1216_v30 = vadd.f32 %v6908_v57, %v1215_v10  ;;  %v5250_v44 = vpop.f32.mrb[229].mxu0 }
 0x2bc   : > { %v4529_v48 = vpack.c.bf16 %v2927_v55, %v2926_v16  ;;  %v1218_v42 = vpop.f32.mrb[230].mxu0  ;;  %5565 = vmatmul.mubr.msk.bf16.gmra.mrb[224].mxu1 %vm487_vm1, %v1927_v7 }
 0x2bd   : > { %v1669_v9 = vmul.f32 %v6915_v63, %v1216_v30  ;;  %v1219_v60 = vadd.f32 %v6908_v57, %v1218_v42  ;;  %v5251_v47 = vpop.f32.mrb[231].mxu0  ;;  %5568 = vmatprep.mubr.msk.bf16.mxu1 %vm5775_vm0, %v7681_v24  ;;  %vm1504_vm4 = vcmp.lt.f32.partialorder %v1216_v30, 0.0 }
 0x2be   : > { %4804 = vst [vmem:[%s6552_s12 + $0xe8] sm:$0xff] %v4529_v48  }
 0x2bf   : > { %vm1505_vm5 = vcmp.lt.f32.partialorder %v1219_v60, 0.0  ;;  %v1670_v15 = vmul.f32 %v6915_v63, %v1219_v60  ;;  %v2477_v25 = vpop.f32.mrb[120].mxu1  ;;  %v7146_v62 = vsel %vm1504_vm4, %v1669_v9, %v1216_v30 }
 0x2c0   : > { %v5462_v46 = vpop.f32.mrb[121].mxu1  ;;  %v2928_v55 = vadd.f32 %v2477_v25, %v6603_v23 }
 0x2c1   : > { %v7148_v12 = vsel %vm1505_vm5, %v1670_v15, %v1219_v60  ;;  %v2480_v7 = vpop.f32.mrb[122].mxu1 }
 0x2c2   : > { %v1928_v16 = vpack.c.bf16 %v7148_v12, %v7146_v62  ;;  %v2929_v10 = vadd.f32 %v2480_v7, %v6605_v26  ;;  %v1223_v35 = vpop.f32.mrb[232].mxu0  ;;  %v5463_v44 = vpop.f32.mrb[123].mxu1 }
 0x2c3   : > { %v1224_v48 = vadd.f32 %v6908_v57, %v1223_v35  ;;  %v5254_v42 = vpop.f32.mrb[233].mxu0 }
 0x2c4   : > { %v4534_v47 = vpack.c.bf16 %v2929_v10, %v2928_v55  ;;  %v1226_v46 = vpop.f32.mrb[234].mxu0  ;;  %5569 = vmatmul.mubr.msk.bf16.gmra.mrb[228].mxu1 %vm487_vm1, %v1928_v16 }
 0x2c5   : > { %v1671_v30 = vmul.f32 %v6915_v63, %v1224_v48  ;;  %v1227_v9 = vadd.f32 %v6908_v57, %v1226_v46  ;;  %v5255_v60 = vpop.f32.mrb[235].mxu0  ;;  %5572 = vmatprep.mubr.msk.bf16.mxu1 %vm5775_vm0, %v7681_v24  ;;  %vm1506_vm6 = vcmp.lt.f32.partialorder %v1224_v48, 0.0 }
 0x2c6   : > { %4805 = vst [vmem:[%s6552_s12 + $0xf0] sm:$0xff] %v4534_v47  }
 0x2c7   : > { %vm1507_vm7 = vcmp.lt.f32.partialorder %v1227_v9, 0.0  ;;  %v1672_v23 = vmul.f32 %v6915_v63, %v1227_v9  ;;  %v2485_v26 = vpop.f32.mrb[124].mxu1  ;;  %v7162_v25 = vsel %vm1506_vm6, %v1671_v30, %v1224_v48 }
 0x2c8   : > { %v5466_v15 = vpop.f32.mrb[125].mxu1  ;;  %v2930_v10 = vadd.f32 %v2485_v26, %v6624_v6 }
 0x2c9   : > { %v7164_v7 = vsel %vm1507_vm7, %v1672_v23, %v1227_v9  ;;  %v2488_v16 = vpop.f32.mrb[126].mxu1 }
 0x2ca   : > { %v1929_v55 = vpack.c.bf16 %v7164_v7, %v7162_v25  ;;  %v2931_v35 = vadd.f32 %v2488_v16, %v6626_v22  ;;  %v1231_v44 = vpop.f32.mrb[236].mxu0  ;;  %v5467_v42 = vpop.f32.mrb[127].mxu1 }
 0x2cb   : > { %v1232_v47 = vadd.f32 %v6908_v57, %v1231_v44  ;;  %v5258_v46 = vpop.f32.mrb[237].mxu0 }
 0x2cc   : > { %v4539_v60 = vpack.c.bf16 %v2931_v35, %v2930_v10  ;;  %v1234_v15 = vpop.f32.mrb[238].mxu0  ;;  %5573 = vmatmul.mubr.msk.bf16.gmra.mrb[232].mxu1 %vm487_vm1, %v1929_v55 }
 0x2cd   : > { %v1673_v48 = vmul.f32 %v6915_v63, %v1232_v47  ;;  %v1235_v30 = vadd.f32 %v6908_v57, %v1234_v15  ;;  %v5259_v9 = vpop.f32.mrb[239].mxu0  ;;  %5576 = vmatprep.mubr.msk.bf16.mxu1 %vm5775_vm0, %v7681_v24  ;;  %vm1508_vm8 = vcmp.lt.f32.partialorder %v1232_v47, 0.0 }
 0x2ce   : > { %4806 = vst [vmem:[%s6552_s12 + $0xf8] sm:$0xff] %v4539_v60  }
 0x2cf   : > { %vm1509_vm9 = vcmp.lt.f32.partialorder %v1235_v30, 0.0  ;;  %v1674_v6 = vmul.f32 %v6915_v63, %v1235_v30  ;;  %v2493_v22 = vpop.f32.mrb[128].mxu1  ;;  %v7178_v26 = vsel %vm1508_vm8, %v1673_v48, %v1232_v47 }
 0x2d0   : > { %v5470_v23 = vpop.f32.mrb[129].mxu1  ;;  %v2932_v35 = vadd.f32 %v2493_v22, %v6645_v28 }
 0x2d1   : > { %v7180_v16 = vsel %vm1509_vm9, %v1674_v6, %v1235_v30  ;;  %v2496_v55 = vpop.f32.mrb[130].mxu1 }
 0x2d2   : > { %v1930_v10 = vpack.c.bf16 %v7180_v16, %v7178_v26  ;;  %v2933_v44 = vadd.f32 %v2496_v55, %v6647_v54  ;;  %v1239_v42 = vpop.f32.mrb[240].mxu0  ;;  %v5471_v46 = vpop.f32.mrb[131].mxu1 }
 0x2d3   : > { %v1240_v60 = vadd.f32 %v6908_v57, %v1239_v42  ;;  %v5262_v15 = vpop.f32.mrb[241].mxu0 }
 0x2d4   : > { %v4544_v9 = vpack.c.bf16 %v2933_v44, %v2932_v35  ;;  %v1242_v23 = vpop.f32.mrb[242].mxu0  ;;  %5577 = vmatmul.mubr.msk.bf16.gmra.mrb[236].mxu1 %vm487_vm1, %v1930_v10 }
 0x2d5   : > { %v1675_v47 = vmul.f32 %v6915_v63, %v1240_v60  ;;  %v1243_v48 = vadd.f32 %v6908_v57, %v1242_v23  ;;  %v5263_v30 = vpop.f32.mrb[243].mxu0  ;;  %5580 = vmatprep.mubr.msk.bf16.mxu1 %vm5775_vm0, %v7681_v24  ;;  %vm1510_vm10 = vcmp.lt.f32.partialorder %v1240_v60, 0.0 }
 0x2d6   : > { %4807 = vst [vmem:[%s6552_s12 + $0x100] sm:$0xff] %v4544_v9  }
 0x2d7   : > { %vm1511_vm11 = vcmp.lt.f32.partialorder %v1243_v48, 0.0  ;;  %v1676_v28 = vmul.f32 %v6915_v63, %v1243_v48  ;;  %v2501_v54 = vpop.f32.mrb[132].mxu1  ;;  %v7194_v22 = vsel %vm1510_vm10, %v1675_v47, %v1240_v60 }
 0x2d8   : > { %v5474_v6 = vpop.f32.mrb[133].mxu1  ;;  %v2934_v44 = vadd.f32 %v2501_v54, %v6666_v27 }
 0x2d9   : > { %v7196_v55 = vsel %vm1511_vm11, %v1676_v28, %v1243_v48  ;;  %v2504_v10 = vpop.f32.mrb[134].mxu1 }
 0x2da   : > { %v1931_v35 = vpack.c.bf16 %v7196_v55, %v7194_v22  ;;  %v2935_v42 = vadd.f32 %v2504_v10, %v6668_v11  ;;  %v1247_v46 = vpop.f32.mrb[244].mxu0  ;;  %v5475_v15 = vpop.f32.mrb[135].mxu1 }
 0x2db   : > { %v1248_v9 = vadd.f32 %v6908_v57, %v1247_v46  ;;  %v5266_v23 = vpop.f32.mrb[245].mxu0 }
 0x2dc   : > { %v4549_v30 = vpack.c.bf16 %v2935_v42, %v2934_v44  ;;  %v1250_v6 = vpop.f32.mrb[246].mxu0  ;;  %5581 = vmatmul.mubr.msk.bf16.gmra.mrb[240].mxu1 %vm487_vm1, %v1931_v35 }
 0x2dd   : > { %v1677_v60 = vmul.f32 %v6915_v63, %v1248_v9  ;;  %v1251_v47 = vadd.f32 %v6908_v57, %v1250_v6  ;;  %v5267_v48 = vpop.f32.mrb[247].mxu0  ;;  %5584 = vmatprep.mubr.msk.bf16.mxu1 %vm5775_vm0, %v7681_v24  ;;  %vm1512_vm12 = vcmp.lt.f32.partialorder %v1248_v9, 0.0 }
 0x2de   : > { %4808 = vst [vmem:[%s6552_s12 + $0x108] sm:$0xff] %v4549_v30  }
 0x2df   : > { %vm1513_vm13 = vcmp.lt.f32.partialorder %v1251_v47, 0.0  ;;  %v1678_v27 = vmul.f32 %v6915_v63, %v1251_v47  ;;  %v2509_v11 = vpop.f32.mrb[136].mxu1  ;;  %v7210_v54 = vsel %vm1512_vm12, %v1677_v60, %v1248_v9 }
 0x2e0   : > { %v5478_v28 = vpop.f32.mrb[137].mxu1  ;;  %v2936_v42 = vadd.f32 %v2509_v11, %v6687_v29 }
 0x2e1   : > { %v7212_v10 = vsel %vm1513_vm13, %v1678_v27, %v1251_v47  ;;  %v2512_v35 = vpop.f32.mrb[138].mxu1 }
 0x2e2   : > { %v1932_v44 = vpack.c.bf16 %v7212_v10, %v7210_v54  ;;  %v2937_v46 = vadd.f32 %v2512_v35, %v6689_v39  ;;  %v1255_v15 = vpop.f32.mrb[248].mxu0  ;;  %v5479_v23 = vpop.f32.mrb[139].mxu1 }
 0x2e3   : > { %v1256_v30 = vadd.f32 %v6908_v57, %v1255_v15  ;;  %v5270_v6 = vpop.f32.mrb[249].mxu0 }
 0x2e4   : > { %v4554_v48 = vpack.c.bf16 %v2937_v46, %v2936_v42  ;;  %v1258_v28 = vpop.f32.mrb[250].mxu0  ;;  %5585 = vmatmul.mubr.msk.bf16.gmra.mrb[244].mxu1 %vm487_vm1, %v1932_v44 }
 0x2e5   : > { %v1679_v9 = vmul.f32 %v6915_v63, %v1256_v30  ;;  %v1259_v60 = vadd.f32 %v6908_v57, %v1258_v28  ;;  %v5271_v47 = vpop.f32.mrb[251].mxu0  ;;  %5588 = vmatprep.mubr.msk.bf16.mxu1 %vm5775_vm0, %v7681_v24  ;;  %vm1514_vm14 = vcmp.lt.f32.partialorder %v1256_v30, 0.0 }
 0x2e6   : > { %4809 = vst [vmem:[%s6552_s12 + $0x110] sm:$0xff] %v4554_v48  }
 0x2e7   : > { %vm1515_vm15 = vcmp.lt.f32.partialorder %v1259_v60, 0.0  ;;  %v1680_v29 = vmul.f32 %v6915_v63, %v1259_v60  ;;  %v2517_v39 = vpop.f32.mrb[140].mxu1  ;;  %v7226_v11 = vsel %vm1514_vm14, %v1679_v9, %v1256_v30 }
 0x2e8   : > { %v5482_v27 = vpop.f32.mrb[141].mxu1  ;;  %v2938_v46 = vadd.f32 %v2517_v39, %v6708_v38 }
 0x2e9   : > { %v7228_v35 = vsel %vm1515_vm15, %v1680_v29, %v1259_v60  ;;  %v2520_v44 = vpop.f32.mrb[142].mxu1 }
 0x2ea   : > { %v1933_v42 = vpack.c.bf16 %v7228_v35, %v7226_v11  ;;  %v2939_v15 = vadd.f32 %v2520_v44, %v6710_v53  ;;  %v1263_v23 = vpop.f32.mrb[252].mxu0  ;;  %v5483_v6 = vpop.f32.mrb[143].mxu1 }
 0x2eb   : > { %v1264_v48 = vadd.f32 %v6908_v57, %v1263_v23  ;;  %v5274_v28 = vpop.f32.mrb[253].mxu0 }
 0x2ec   : > { %v4559_v47 = vpack.c.bf16 %v2939_v15, %v2938_v46  ;;  %v1266_v27 = vpop.f32.mrb[254].mxu0  ;;  %5589 = vmatmul.mubr.msk.bf16.gmra.mrb[248].mxu1 %vm487_vm1, %v1933_v42 }
 0x2ed   : > { %v1681_v30 = vmul.f32 %v6915_v63, %v1264_v48  ;;  %v1267_v9 = vadd.f32 %v6908_v57, %v1266_v27  ;;  %v5275_v60 = vpop.f32.mrb[255].mxu0  ;;  %5592 = vmatprep.mubr.msk.bf16.mxu1 %vm5775_vm0, %v7681_v24  ;;  %vm1516_vm2 = vcmp.lt.f32.partialorder %v1264_v48, 0.0 }
 0x2ee   : > { %4810 = vst [vmem:[%s6552_s12 + $0x118] sm:$0xff] %v4559_v47  }
 0x2ef   : > { %vm1517_vm3 = vcmp.lt.f32.partialorder %v1267_v9, 0.0  ;;  %v1682_v38 = vmul.f32 %v6915_v63, %v1267_v9  ;;  %v2525_v53 = vpop.f32.mrb[144].mxu1  ;;  %v7242_v39 = vsel %vm1516_vm2, %v1681_v30, %v1264_v48 }
 0x2f0   : > { %v5486_v29 = vpop.f32.mrb[145].mxu1  ;;  %v2940_v15 = vadd.f32 %v2525_v53, %v6729_v52 }
 0x2f1   : > { %v7244_v44 = vsel %vm1517_vm3, %v1682_v38, %v1267_v9  ;;  %v2528_v42 = vpop.f32.mrb[146].mxu1 }
 0x2f2   : > { %v1934_v46 = vpack.c.bf16 %v7244_v44, %v7242_v39  ;;  %v2941_v23 = vadd.f32 %v2528_v42, %v6731_v4  ;;  %v1271_v6 = vpop.f32.mrb[0].mxu0  ;;  %v5487_v28 = vpop.f32.mrb[147].mxu1 }
 0x2f3   : > { %v1272_v47 = vadd.f32 %v6908_v57, %v1271_v6  ;;  %v5278_v27 = vpop.f32.mrb[1].mxu0 }
 0x2f4   : > { %v4564_v60 = vpack.c.bf16 %v2941_v23, %v2940_v15  ;;  %v1274_v29 = vpop.f32.mrb[2].mxu0  ;;  %5593 = vmatmul.mubr.msk.bf16.gmra.mrb[252].mxu1 %vm487_vm1, %v1934_v46 }
 0x2f5   : > { %v1683_v48 = vmul.f32 %v6915_v63, %v1272_v47  ;;  %v1275_v30 = vadd.f32 %v6908_v57, %v1274_v29  ;;  %v5279_v9 = vpop.f32.mrb[3].mxu0  ;;  %5596 = vmatprep.mubr.msk.bf16.mxu1 %vm5775_vm0, %v7681_v24  ;;  %vm1518_vm4 = vcmp.lt.f32.partialorder %v1272_v47, 0.0 }
 0x2f6   : > { %4811 = vst [vmem:[%s6552_s12 + $0x120] sm:$0xff] %v4564_v60  }
 0x2f7   : > { %vm1519_vm5 = vcmp.lt.f32.partialorder %v1275_v30, 0.0  ;;  %v1684_v52 = vmul.f32 %v6915_v63, %v1275_v30  ;;  %v2533_v4 = vpop.f32.mrb[148].mxu1  ;;  %v7258_v53 = vsel %vm1518_vm4, %v1683_v48, %v1272_v47 }
 0x2f8   : > { %v5490_v38 = vpop.f32.mrb[149].mxu1  ;;  %v2942_v23 = vadd.f32 %v2533_v4, %v6750_v3 }
 0x2f9   : > { %v7260_v42 = vsel %vm1519_vm5, %v1684_v52, %v1275_v30  ;;  %v2536_v46 = vpop.f32.mrb[150].mxu1 }
 0x2fa   : > { %v1935_v15 = vpack.c.bf16 %v7260_v42, %v7258_v53  ;;  %v2943_v6 = vadd.f32 %v2536_v46, %v6752_v18  ;;  %v1279_v28 = vpop.f32.mrb[4].mxu0  ;;  %v5491_v27 = vpop.f32.mrb[151].mxu1 }
 0x2fb   : > { %v1280_v60 = vadd.f32 %v6908_v57, %v1279_v28  ;;  %v5282_v29 = vpop.f32.mrb[5].mxu0 }
 0x2fc   : > { %v4569_v9 = vpack.c.bf16 %v2943_v6, %v2942_v23  ;;  %v1282_v38 = vpop.f32.mrb[6].mxu0  ;;  %5597 = vmatmul.mubr.msk.bf16.gmra.mrb[0].mxu1 %vm487_vm1, %v1935_v15 }
 0x2fd   : > { %v1685_v47 = vmul.f32 %v6915_v63, %v1280_v60  ;;  %v1283_v48 = vadd.f32 %v6908_v57, %v1282_v38  ;;  %v5283_v30 = vpop.f32.mrb[7].mxu0  ;;  %5600 = vmatprep.mubr.msk.bf16.mxu1 %vm5775_vm0, %v7681_v24  ;;  %vm1520_vm6 = vcmp.lt.f32.partialorder %v1280_v60, 0.0 }
 0x2fe   : > { %4812 = vst [vmem:[%s6552_s12 + $0x128] sm:$0xff] %v4569_v9  }
 0x2ff   : > { %vm1521_vm7 = vcmp.lt.f32.partialorder %v1283_v48, 0.0  ;;  %v1686_v3 = vmul.f32 %v6915_v63, %v1283_v48  ;;  %v2541_v18 = vpop.f32.mrb[152].mxu1  ;;  %v7274_v4 = vsel %vm1520_vm6, %v1685_v47, %v1280_v60  ;;  %v7285_v63 = vld [vmem:[%s7637_s2] ss:$0 sm:$0xff] }
 0x300   : > { %v5494_v52 = vpop.f32.mrb[153].mxu1  ;;  %v2944_v57 = vadd.f32 %v2541_v18, %v6771_v17  ;;  %v7292_v17 = vld [vmem:[%s7639_s4] ss:$0 sm:$0xff] }
 0x301   : > { %v7276_v46 = vsel %vm1521_vm7, %v1686_v3, %v1283_v48  ;;  %v2544_v15 = vpop.f32.mrb[154].mxu1 }
 0x302   : > { %v1936_v23 = vpack.c.bf16 %v7276_v46, %v7274_v4  ;;  %v2945_v6 = vadd.f32 %v2544_v15, %v6773_v34  ;;  %v1287_v28 = vpop.f32.mrb[8].mxu0  ;;  %v5495_v27 = vpop.f32.mrb[155].mxu1 }
 0x303   : > { %v1288_v60 = vadd.f32 %v7285_v63, %v1287_v28  ;;  %v5286_v29 = vpop.f32.mrb[9].mxu0 }
 0x304   : > { %v4574_v9 = vpack.c.bf16 %v2945_v6, %v2944_v57  ;;  %v1290_v38 = vpop.f32.mrb[10].mxu0  ;;  %5601 = vmatmul.mubr.msk.bf16.gmra.mrb[4].mxu1 %vm487_vm1, %v1936_v23 }
 0x305   : > { %v1687_v34 = vmul.f32 %v7292_v17, %v1288_v60  ;;  %v1291_v47 = vadd.f32 %v7285_v63, %v1290_v38  ;;  %v5287_v48 = vpop.f32.mrb[11].mxu0  ;;  %5604 = vmatprep.mubr.msk.bf16.mxu1 %vm5775_vm0, %v7681_v24  ;;  %vm1522_vm8 = vcmp.lt.f32.partialorder %v1288_v60, 0.0 }
 0x306   : > { %4813 = vst [vmem:[%s6552_s12 + $0x130] sm:$0xff] %v4574_v9  }
 0x307   : > { %vm1523_vm9 = vcmp.lt.f32.partialorder %v1291_v47, 0.0  ;;  %v1688_v30 = vmul.f32 %v7292_v17, %v1291_v47  ;;  %v2549_v3 = vpop.f32.mrb[156].mxu1  ;;  %v7300_v52 = vsel %vm1522_vm8, %v1687_v34, %v1288_v60 }
 0x308   : > { %v5498_v18 = vpop.f32.mrb[157].mxu1  ;;  %v2946_v6 = vadd.f32 %v2549_v3, %v6792_v33 }
 0x309   : > { %v7302_v15 = vsel %vm1523_vm9, %v1688_v30, %v1291_v47  ;;  %v2552_v23 = vpop.f32.mrb[158].mxu1 }
 0x30a   : > { %v1937_v57 = vpack.c.bf16 %v7302_v15, %v7300_v52  ;;  %v2947_v28 = vadd.f32 %v2552_v23, %v6794_v50  ;;  %v1295_v27 = vpop.f32.mrb[12].mxu0  ;;  %v5499_v29 = vpop.f32.mrb[159].mxu1 }
 0x30b   : > { %v1296_v9 = vadd.f32 %v7285_v63, %v1295_v27  ;;  %v5290_v38 = vpop.f32.mrb[13].mxu0 }
 0x30c   : > { %v4579_v48 = vpack.c.bf16 %v2947_v28, %v2946_v6  ;;  %v1298_v18 = vpop.f32.mrb[14].mxu0  ;;  %5605 = vmatmul.mubr.msk.bf16.gmra.mrb[8].mxu1 %vm487_vm1, %v1937_v57 }
 0x30d   : > { %v1689_v60 = vmul.f32 %v7292_v17, %v1296_v9  ;;  %v1299_v34 = vadd.f32 %v7285_v63, %v1298_v18  ;;  %v5291_v47 = vpop.f32.mrb[15].mxu0  ;;  %5608 = vmatprep.mubr.msk.bf16.mxu1 %vm5775_vm0, %v7681_v24  ;;  %vm1524_vm10 = vcmp.lt.f32.partialorder %v1296_v9, 0.0 }
 0x30e   : > { %4814 = vst [vmem:[%s6552_s12 + $0x138] sm:$0xff] %v4579_v48  }
 0x30f   : > { %vm1525_vm11 = vcmp.lt.f32.partialorder %v1299_v34, 0.0  ;;  %v1690_v33 = vmul.f32 %v7292_v17, %v1299_v34  ;;  %v2557_v50 = vpop.f32.mrb[160].mxu1  ;;  %v7316_v3 = vsel %vm1524_vm10, %v1689_v60, %v1296_v9 }
 0x310   : > { %v5502_v30 = vpop.f32.mrb[161].mxu1  ;;  %v2948_v28 = vadd.f32 %v2557_v50, %v6813_v49 }
 0x311   : > { %v7318_v23 = vsel %vm1525_vm11, %v1690_v33, %v1299_v34  ;;  %v2560_v57 = vpop.f32.mrb[162].mxu1 }
 0x312   : > { %v1938_v6 = vpack.c.bf16 %v7318_v23, %v7316_v3  ;;  %v2949_v27 = vadd.f32 %v2560_v57, %v6815_v5  ;;  %v1303_v29 = vpop.f32.mrb[16].mxu0  ;;  %v5503_v38 = vpop.f32.mrb[163].mxu1 }
 0x313   : > { %v1304_v48 = vadd.f32 %v7285_v63, %v1303_v29  ;;  %v5294_v18 = vpop.f32.mrb[17].mxu0 }
 0x314   : > { %v4584_v47 = vpack.c.bf16 %v2949_v27, %v2948_v28  ;;  %v1306_v30 = vpop.f32.mrb[18].mxu0  ;;  %5609 = vmatmul.mubr.msk.bf16.gmra.mrb[12].mxu1 %vm487_vm1, %v1938_v6 }
 0x315   : > { %v1691_v9 = vmul.f32 %v7292_v17, %v1304_v48  ;;  %v1307_v60 = vadd.f32 %v7285_v63, %v1306_v30  ;;  %v5295_v34 = vpop.f32.mrb[19].mxu0  ;;  %5612 = vmatprep.mubr.msk.bf16.mxu1 %vm5775_vm0, %v7681_v24  ;;  %vm1526_vm12 = vcmp.lt.f32.partialorder %v1304_v48, 0.0 }
 0x316   : > { %4815 = vst [vmem:[%s6552_s12 + $0x140] sm:$0xff] %v4584_v47  }
 0x317   : > { %vm1527_vm13 = vcmp.lt.f32.partialorder %v1307_v60, 0.0  ;;  %v1692_v49 = vmul.f32 %v7292_v17, %v1307_v60  ;;  %v2565_v5 = vpop.f32.mrb[164].mxu1  ;;  %v7332_v50 = vsel %vm1526_vm12, %v1691_v9, %v1304_v48 }
 0x318   : > { %v5506_v33 = vpop.f32.mrb[165].mxu1  ;;  %v2950_v27 = vadd.f32 %v2565_v5, %v6834_v2 }
 0x319   : > { %v7334_v57 = vsel %vm1527_vm13, %v1692_v49, %v1307_v60  ;;  %v2568_v6 = vpop.f32.mrb[166].mxu1 }
 0x31a   : > { %v1939_v28 = vpack.c.bf16 %v7334_v57, %v7332_v50  ;;  %v2951_v29 = vadd.f32 %v2568_v6, %v6836_v21  ;;  %v1311_v38 = vpop.f32.mrb[20].mxu0  ;;  %v5507_v18 = vpop.f32.mrb[167].mxu1 }
 0x31b   : > { %v1312_v47 = vadd.f32 %v7285_v63, %v1311_v38  ;;  %v5298_v30 = vpop.f32.mrb[21].mxu0 }
 0x31c   : > { %v4589_v34 = vpack.c.bf16 %v2951_v29, %v2950_v27  ;;  %v1314_v33 = vpop.f32.mrb[22].mxu0  ;;  %5613 = vmatmul.mubr.msk.bf16.gmra.mrb[16].mxu1 %vm487_vm1, %v1939_v28 }
 0x31d   : > { %v1693_v48 = vmul.f32 %v7292_v17, %v1312_v47  ;;  %v1315_v9 = vadd.f32 %v7285_v63, %v1314_v33  ;;  %v5299_v60 = vpop.f32.mrb[23].mxu0  ;;  %5616 = vmatprep.mubr.msk.bf16.mxu1 %vm5775_vm0, %v7681_v24  ;;  %vm1528_vm14 = vcmp.lt.f32.partialorder %v1312_v47, 0.0 }
 0x31e   : > { %4816 = vst [vmem:[%s6552_s12 + $0x148] sm:$0xff] %v4589_v34  }
 0x31f   : > { %vm1529_vm15 = vcmp.lt.f32.partialorder %v1315_v9, 0.0  ;;  %v1694_v2 = vmul.f32 %v7292_v17, %v1315_v9  ;;  %v2573_v21 = vpop.f32.mrb[168].mxu1  ;;  %v7348_v5 = vsel %vm1528_vm14, %v1693_v48, %v1312_v47 }
 0x320   : > { %v5510_v49 = vpop.f32.mrb[169].mxu1  ;;  %v2952_v29 = vadd.f32 %v2573_v21, %v6855_v20 }
 0x321   : > { %v7350_v6 = vsel %vm1529_vm15, %v1694_v2, %v1315_v9  ;;  %v2576_v28 = vpop.f32.mrb[170].mxu1 }
 0x322   : > { %v1940_v27 = vpack.c.bf16 %v7350_v6, %v7348_v5  ;;  %v2953_v38 = vadd.f32 %v2576_v28, %v6857_v41  ;;  %v1319_v18 = vpop.f32.mrb[24].mxu0  ;;  %v5511_v30 = vpop.f32.mrb[171].mxu1 }
 0x323   : > { %v1320_v34 = vadd.f32 %v7285_v63, %v1319_v18  ;;  %v5302_v33 = vpop.f32.mrb[25].mxu0 }
 0x324   : > { %v4594_v60 = vpack.c.bf16 %v2953_v38, %v2952_v29  ;;  %v1322_v49 = vpop.f32.mrb[26].mxu0  ;;  %5617 = vmatmul.mubr.msk.bf16.gmra.mrb[20].mxu1 %vm487_vm1, %v1940_v27 }
 0x325   : > { %v1695_v47 = vmul.f32 %v7292_v17, %v1320_v34  ;;  %v1323_v48 = vadd.f32 %v7285_v63, %v1322_v49  ;;  %v5303_v9 = vpop.f32.mrb[27].mxu0  ;;  %5620 = vmatprep.mubr.msk.bf16.mxu1 %vm5775_vm0, %v7681_v24  ;;  %vm1530_vm2 = vcmp.lt.f32.partialorder %v1320_v34, 0.0 }
 0x326   : > { %4817 = vst [vmem:[%s6552_s12 + $0x150] sm:$0xff] %v4594_v60  }
 0x327   : > { %vm1531_vm3 = vcmp.lt.f32.partialorder %v1323_v48, 0.0  ;;  %v1696_v20 = vmul.f32 %v7292_v17, %v1323_v48  ;;  %v2581_v41 = vpop.f32.mrb[172].mxu1  ;;  %v7364_v21 = vsel %vm1530_vm2, %v1695_v47, %v1320_v34 }
 0x328   : > { %v5514_v2 = vpop.f32.mrb[173].mxu1  ;;  %v2954_v38 = vadd.f32 %v2581_v41, %v6876_v40 }
 0x329   : > { %v7366_v28 = vsel %vm1531_vm3, %v1696_v20, %v1323_v48  ;;  %v2584_v27 = vpop.f32.mrb[174].mxu1 }
 0x32a   : > { %v1941_v29 = vpack.c.bf16 %v7366_v28, %v7364_v21  ;;  %v2955_v18 = vadd.f32 %v2584_v27, %v6878_v59  ;;  %v1327_v30 = vpop.f32.mrb[28].mxu0  ;;  %v5515_v33 = vpop.f32.mrb[175].mxu1 }
 0x32b   : > { %v1328_v60 = vadd.f32 %v7285_v63, %v1327_v30  ;;  %v5306_v49 = vpop.f32.mrb[29].mxu0 }
 0x32c   : > { %v4599_v9 = vpack.c.bf16 %v2955_v18, %v2954_v38  ;;  %v1330_v2 = vpop.f32.mrb[30].mxu0  ;;  %5621 = vmatmul.mubr.msk.bf16.gmra.mrb[24].mxu1 %vm487_vm1, %v1941_v29 }
 0x32d   : > { %v1697_v34 = vmul.f32 %v7292_v17, %v1328_v60  ;;  %v1331_v47 = vadd.f32 %v7285_v63, %v1330_v2  ;;  %v5307_v48 = vpop.f32.mrb[31].mxu0  ;;  %5624 = vmatprep.mubr.msk.bf16.mxu1 %vm5775_vm0, %v7681_v24  ;;  %vm1532_vm4 = vcmp.lt.f32.partialorder %v1328_v60, 0.0 }
 0x32e   : > { %4818 = vst [vmem:[%s6552_s12 + $0x158] sm:$0xff] %v4599_v9  }
 0x32f   : > { %vm1533_vm5 = vcmp.lt.f32.partialorder %v1331_v47, 0.0  ;;  %v1698_v40 = vmul.f32 %v7292_v17, %v1331_v47  ;;  %v2589_v59 = vpop.f32.mrb[176].mxu1  ;;  %v7380_v41 = vsel %vm1532_vm4, %v1697_v34, %v1328_v60 }
 0x330   : > { %v5518_v20 = vpop.f32.mrb[177].mxu1  ;;  %v2956_v18 = vadd.f32 %v2589_v59, %v6897_v58 }
 0x331   : > { %v7382_v27 = vsel %vm1533_vm5, %v1698_v40, %v1331_v47  ;;  %v2592_v29 = vpop.f32.mrb[178].mxu1 }
 0x332   : > { %v1942_v38 = vpack.c.bf16 %v7382_v27, %v7380_v41  ;;  %v2957_v30 = vadd.f32 %v2592_v29, %v6899_v43  ;;  %v1335_v33 = vpop.f32.mrb[32].mxu0  ;;  %v5519_v49 = vpop.f32.mrb[179].mxu1 }
 0x333   : > { %v1336_v9 = vadd.f32 %v7285_v63, %v1335_v33  ;;  %v5310_v2 = vpop.f32.mrb[33].mxu0 }
 0x334   : > { %v4604_v48 = vpack.c.bf16 %v2957_v30, %v2956_v18  ;;  %v1338_v20 = vpop.f32.mrb[34].mxu0  ;;  %5625 = vmatmul.mubr.msk.bf16.gmra.mrb[28].mxu1 %vm487_vm1, %v1942_v38 }
 0x335   : > { %v1699_v60 = vmul.f32 %v7292_v17, %v1336_v9  ;;  %v1339_v34 = vadd.f32 %v7285_v63, %v1338_v20  ;;  %v5311_v47 = vpop.f32.mrb[35].mxu0  ;;  %5628 = vmatprep.mubr.msk.bf16.mxu1 %vm5775_vm0, %v7681_v24  ;;  %vm1534_vm6 = vcmp.lt.f32.partialorder %v1336_v9, 0.0 }
 0x336   : > { %4819 = vst [vmem:[%s6552_s12 + $0x160] sm:$0xff] %v4604_v48  }
 0x337   : > { %vm1535_vm7 = vcmp.lt.f32.partialorder %v1339_v34, 0.0  ;;  %v1700_v58 = vmul.f32 %v7292_v17, %v1339_v34  ;;  %v2597_v43 = vpop.f32.mrb[180].mxu1  ;;  %v7396_v59 = vsel %vm1534_vm6, %v1699_v60, %v1336_v9 }
 0x338   : > { %v5522_v40 = vpop.f32.mrb[181].mxu1  ;;  %v2958_v30 = vadd.f32 %v2597_v43, %v6928_v14 }
 0x339   : > { %v7398_v29 = vsel %vm1535_vm7, %v1700_v58, %v1339_v34  ;;  %v2600_v38 = vpop.f32.mrb[182].mxu1 }
 0x33a   : > { %v1943_v18 = vpack.c.bf16 %v7398_v29, %v7396_v59  ;;  %v2959_v33 = vadd.f32 %v2600_v38, %v6930_v13  ;;  %v1343_v49 = vpop.f32.mrb[36].mxu0  ;;  %v5523_v2 = vpop.f32.mrb[183].mxu1 }
 0x33b   : > { %v1344_v48 = vadd.f32 %v7285_v63, %v1343_v49  ;;  %v5314_v20 = vpop.f32.mrb[37].mxu0 }
 0x33c   : > { %v4609_v47 = vpack.c.bf16 %v2959_v33, %v2958_v30  ;;  %v1346_v40 = vpop.f32.mrb[38].mxu0  ;;  %5629 = vmatmul.mubr.msk.bf16.gmra.mrb[32].mxu1 %vm487_vm1, %v1943_v18 }
 0x33d   : > { %v1701_v9 = vmul.f32 %v7292_v17, %v1344_v48  ;;  %v1347_v60 = vadd.f32 %v7285_v63, %v1346_v40  ;;  %v5315_v34 = vpop.f32.mrb[39].mxu0  ;;  %5632 = vmatprep.mubr.msk.bf16.mxu1 %vm5775_vm0, %v7681_v24  ;;  %vm1536_vm8 = vcmp.lt.f32.partialorder %v1344_v48, 0.0 }
 0x33e   : > { %4820 = vst [vmem:[%s6552_s12 + $0x168] sm:$0xff] %v4609_v47  }
 0x33f   : > { %vm1537_vm9 = vcmp.lt.f32.partialorder %v1347_v60, 0.0  ;;  %v1702_v14 = vmul.f32 %v7292_v17, %v1347_v60  ;;  %v2605_v13 = vpop.f32.mrb[184].mxu1  ;;  %v7412_v43 = vsel %vm1536_vm8, %v1701_v9, %v1344_v48 }
 0x340   : > { %v5526_v58 = vpop.f32.mrb[185].mxu1  ;;  %7708 = vst [vmem:[#allocation11_spill] sm:$0xff] %v7412_v43  ;;  %v2960_v33 = vadd.f32 %v2605_v13, %v6949_v36 }
 0x341   : > { %v7414_v38 = vsel %vm1537_vm9, %v1702_v14, %v1347_v60  ;;  %v2608_v18 = vpop.f32.mrb[186].mxu1 }
 0x342   : > { %7709 = vst [vmem:[#allocation12_spill] sm:$0xff] %v7414_v38  ;;  %v1944_v30 = vpack.c.bf16 %v7414_v38, %v7412_v43  ;;  %v2961_v49 = vadd.f32 %v2608_v18, %v6951_v1  ;;  %v1351_v2 = vpop.f32.mrb[40].mxu0  ;;  %v5527_v20 = vpop.f32.mrb[187].mxu1 }
 0x343   : > { %v1352_v47 = vadd.f32 %v7285_v63, %v1351_v2  ;;  %v5318_v40 = vpop.f32.mrb[41].mxu0  ;;  %v7713_v20 = vld [vmem:[#allocation18_spill] sm:$0xff] }
 0x344   : > { %v4614_v34 = vpack.c.bf16 %v2961_v49, %v2960_v33  ;;  %v1354_v58 = vpop.f32.mrb[42].mxu0  ;;  %5633 = vmatmul.mubr.msk.bf16.gmra.mrb[36].mxu1 %vm487_vm1, %v1944_v30  ;;  %v7712_v49 = vld [vmem:[#allocation17_spill] sm:$0xff] }
 0x345   : > { %v1703_v48 = vmul.f32 %v7292_v17, %v1352_v47  ;;  %v1355_v9 = vadd.f32 %v7285_v63, %v1354_v58  ;;  %v5319_v60 = vpop.f32.mrb[43].mxu0  ;;  %5636 = vmatprep.mubr.msk.bf16.mxu1 %vm5775_vm0, %v7681_v24  ;;  %vm1538_vm10 = vcmp.lt.f32.partialorder %v1352_v47, 0.0 }
 0x346   : > { %4821 = vst [vmem:[%s6552_s12 + $0x170] sm:$0xff] %v4614_v34  }
 0x347   : > { %vm1539_vm11 = vcmp.lt.f32.partialorder %v1355_v9, 0.0  ;;  %v1704_v36 = vmul.f32 %v7292_v17, %v1355_v9  ;;  %v2613_v1 = vpop.f32.mrb[188].mxu1  ;;  %v7428_v13 = vsel %vm1538_vm10, %v1703_v48, %v1352_v47 }
 0x348   : > { %v5530_v14 = vpop.f32.mrb[189].mxu1  ;;  %7710 = vst [vmem:[#allocation13_spill] sm:$0xff] %v7428_v13  ;;  %v2962_v2 = vadd.f32 %v2613_v1, %v7712_v49 }
 0x349   : > { %v7430_v18 = vsel %vm1539_vm11, %v1704_v36, %v1355_v9  ;;  %v2616_v30 = vpop.f32.mrb[190].mxu1 }
 0x34a   : > { %7711 = vst [vmem:[#allocation14_spill] sm:$0xff] %v7430_v18  ;;  %v1945_v33 = vpack.c.bf16 %v7430_v18, %v7428_v13  ;;  %v2963_v40 = vadd.f32 %v2616_v30, %v7713_v20  ;;  %v1359_v34 = vpop.f32.mrb[44].mxu0  ;;  %v5531_v58 = vpop.f32.mrb[191].mxu1  ;;  %v7716_v20 = vld [vmem:[#allocation19_spill] sm:$0xff] }
 0x34b   : > { %v1360_v60 = vadd.f32 %v7285_v63, %v1359_v34  ;;  %v5322_v38 = vpop.f32.mrb[45].mxu0  ;;  %v7717_v34 = vld [vmem:[#allocation20_spill] sm:$0xff] }
 0x34c   : > { %v4619_v43 = vpack.c.bf16 %v2963_v40, %v2962_v2  ;;  %v1362_v14 = vpop.f32.mrb[46].mxu0  ;;  %5637 = vmatmul.mubr.msk.bf16.gmra.mrb[40].mxu1 %vm487_vm1, %v1945_v33 }
 0x34d   : > { %v1705_v47 = vmul.f32 %v7292_v17, %v1360_v60  ;;  %v1363_v48 = vadd.f32 %v7285_v63, %v1362_v14  ;;  %v5323_v9 = vpop.f32.mrb[47].mxu0  ;;  %5640 = vmatprep.mubr.msk.bf16.mxu1 %vm5775_vm0, %v7681_v24  ;;  %vm1540_vm12 = vcmp.lt.f32.partialorder %v1360_v60, 0.0 }
 0x34e   : > { %4822 = vst [vmem:[%s6552_s12 + $0x178] sm:$0xff] %v4619_v43  }
 0x34f   : > { %vm1541_vm13 = vcmp.lt.f32.partialorder %v1363_v48, 0.0  ;;  %v1706_v36 = vmul.f32 %v7292_v17, %v1363_v48  ;;  %v2621_v1 = vpop.f32.mrb[192].mxu1  ;;  %v7444_v38 = vsel %vm1540_vm12, %v1705_v47, %v1360_v60 }
 0x350   : > { %v5534_v30 = vpop.f32.mrb[193].mxu1  ;;  %7714 = vst [vmem:[#allocation15_spill] sm:$0xff] %v7444_v38  ;;  %v2964_v40 = vadd.f32 %v2621_v1, %v7716_v20 }
 0x351   : > { %v7446_v49 = vsel %vm1541_vm13, %v1706_v36, %v1363_v48  ;;  %v2624_v33 = vpop.f32.mrb[194].mxu1 }
 0x352   : > { %7715 = vst [vmem:[#allocation16_spill] sm:$0xff] %v7446_v49  ;;  %v1946_v2 = vpack.c.bf16 %v7446_v49, %v7444_v38  ;;  %v2965_v58 = vadd.f32 %v2624_v33, %v7717_v34  ;;  %v1367_v43 = vpop.f32.mrb[48].mxu0  ;;  %v5535_v14 = vpop.f32.mrb[195].mxu1  ;;  %v7718_v34 = vld [vmem:[#allocation5_spill] sm:$0xff] }
 0x353   : > { %v1368_v9 = vadd.f32 %v7285_v63, %v1367_v43  ;;  %v5326_v18 = vpop.f32.mrb[49].mxu0  ;;  %v7719_v43 = vld [vmem:[#allocation6_spill] sm:$0xff] }
 0x354   : > { %v4624_v13 = vpack.c.bf16 %v2965_v58, %v2964_v40  ;;  %v1370_v30 = vpop.f32.mrb[50].mxu0  ;;  %5641 = vmatmul.mubr.msk.bf16.gmra.mrb[44].mxu1 %vm487_vm1, %v1946_v2 }
 0x355   : > { %v1707_v60 = vmul.f32 %v7292_v17, %v1368_v9  ;;  %v1371_v47 = vadd.f32 %v7285_v63, %v1370_v30  ;;  %v5327_v48 = vpop.f32.mrb[51].mxu0  ;;  %5644 = vmatprep.mubr.msk.bf16.mxu1 %vm5775_vm0, %v7681_v24  ;;  %vm1542_vm14 = vcmp.lt.f32.partialorder %v1368_v9, 0.0 }
 0x356   : > { %4823 = vst [vmem:[%s6552_s12 + $0x180] sm:$0xff] %v4624_v13  }
 0x357   : > { %vm1543_vm15 = vcmp.lt.f32.partialorder %v1371_v47, 0.0  ;;  %v1708_v36 = vmul.f32 %v7292_v17, %v1371_v47  ;;  %v2629_v1 = vpop.f32.mrb[196].mxu1  ;;  %v7460_v18 = vsel %vm1542_vm14, %v1707_v60, %v1368_v9 }
 0x358   : > { %v5538_v33 = vpop.f32.mrb[197].mxu1  ;;  %v2966_v58 = vadd.f32 %v2629_v1, %v7718_v34 }
 0x359   : > { %v7462_v20 = vsel %vm1543_vm15, %v1708_v36, %v1371_v47  ;;  %v2632_v2 = vpop.f32.mrb[198].mxu1 }
 0x35a   : > { %v1947_v40 = vpack.c.bf16 %v7462_v20, %v7460_v18  ;;  %v2967_v14 = vadd.f32 %v2632_v2, %v7719_v43  ;;  %v1375_v13 = vpop.f32.mrb[52].mxu0  ;;  %v5539_v30 = vpop.f32.mrb[199].mxu1 }
 0x35b   : > { %v1376_v48 = vadd.f32 %v7285_v63, %v1375_v13  ;;  %v5330_v49 = vpop.f32.mrb[53].mxu0 }
 0x35c   : > { %v4629_v38 = vpack.c.bf16 %v2967_v14, %v2966_v58  ;;  %v1378_v33 = vpop.f32.mrb[54].mxu0  ;;  %5645 = vmatmul.mubr.msk.bf16.gmra.mrb[48].mxu1 %vm487_vm1, %v1947_v40 }
 0x35d   : > { %v1709_v9 = vmul.f32 %v7292_v17, %v1376_v48  ;;  %v1379_v60 = vadd.f32 %v7285_v63, %v1378_v33  ;;  %v5331_v47 = vpop.f32.mrb[55].mxu0  ;;  %5648 = vmatprep.mubr.msk.bf16.mxu1 %vm5775_vm0, %v7681_v24  ;;  %vm1544_vm2 = vcmp.lt.f32.partialorder %v1376_v48, 0.0 }
 0x35e   : > { %4824 = vst [vmem:[%s6552_s12 + $0x188] sm:$0xff] %v4629_v38  }
 0x35f   : > { %vm1545_vm3 = vcmp.lt.f32.partialorder %v1379_v60, 0.0  ;;  %v1710_v36 = vmul.f32 %v7292_v17, %v1379_v60  ;;  %v2637_v1 = vpop.f32.mrb[200].mxu1  ;;  %v7476_v49 = vsel %vm1544_vm2, %v1709_v9, %v1376_v48 }
 0x360   : > { %v5542_v2 = vpop.f32.mrb[201].mxu1  ;;  %v2968_v43 = vadd.f32 %v2637_v1, %v7033_v32 }
 0x361   : > { %v7478_v34 = vsel %vm1545_vm3, %v1710_v36, %v1379_v60  ;;  %v2640_v40 = vpop.f32.mrb[202].mxu1 }
 0x362   : > { %v1948_v58 = vpack.c.bf16 %v7478_v34, %v7476_v49  ;;  %v2969_v14 = vadd.f32 %v2640_v40, %v7035_v56  ;;  %v1383_v38 = vpop.f32.mrb[56].mxu0  ;;  %v5543_v13 = vpop.f32.mrb[203].mxu1 }
 0x363   : > { %v1384_v30 = vadd.f32 %v7285_v63, %v1383_v38  ;;  %v5334_v33 = vpop.f32.mrb[57].mxu0 }
 0x364   : > { %v4634_v47 = vpack.c.bf16 %v2969_v14, %v2968_v43  ;;  %v1386_v2 = vpop.f32.mrb[58].mxu0  ;;  %5649 = vmatmul.mubr.msk.bf16.gmra.mrb[52].mxu1 %vm487_vm1, %v1948_v58  ;;  %v7720_v43 = vld [vmem:[#allocation7_spill] sm:$0xff] }
 0x365   : > { %v1711_v48 = vmul.f32 %v7292_v17, %v1384_v30  ;;  %v1387_v9 = vadd.f32 %v7285_v63, %v1386_v2  ;;  %v5335_v60 = vpop.f32.mrb[59].mxu0  ;;  %5652 = vmatprep.mubr.msk.bf16.mxu1 %vm5775_vm0, %v7681_v24  ;;  %vm1546_vm4 = vcmp.lt.f32.partialorder %v1384_v30, 0.0  ;;  %v7721_v24 = vld [vmem:[#allocation8_spill] sm:$0xff]  ;;  %v7722_v2 = vld [vmem:[#allocation9_spill] sm:$0xff] }
 0x366   : > { %4825 = vst [vmem:[%s6552_s12 + $0x190] sm:$0xff] %v4634_v47  }
 0x367   : > { %vm1547_vm5 = vcmp.lt.f32.partialorder %v1387_v9, 0.0  ;;  %v1712_v32 = vmul.f32 %v7292_v17, %v1387_v9  ;;  %v2645_v56 = vpop.f32.mrb[204].mxu1  ;;  %v7492_v1 = vsel %vm1546_vm4, %v1711_v48, %v1384_v30 }
 0x368   : > { %v5546_v36 = vpop.f32.mrb[205].mxu1  ;;  %v2970_v14 = vadd.f32 %v2645_v56, %v7720_v43 }
 0x369   : > { %v7494_v40 = vsel %vm1547_vm5, %v1712_v32, %v1387_v9  ;;  %v2648_v58 = vpop.f32.mrb[206].mxu1  ;;  %v7723_v9 = vld [vmem:[#allocation10_spill] sm:$0xff] }
 0x36a   : > { %v1949_v63 = vpack.c.bf16 %v7494_v40, %v7492_v1  ;;  %v2971_v38 = vadd.f32 %v2648_v58, %v7721_v24  ;;  %v5547_v13 = vpop.f32.mrb[207].mxu1 }
 0x36c   : > { %v4639_v33 = vpack.c.bf16 %v2971_v38, %v2970_v14  ;;  %5653 = vmatmul.mubr.msk.bf16.gmra.mrb[56].mxu1 %vm487_vm1, %v1949_v63 }
 0x36e   : > { %4826 = vst [vmem:[%s6552_s12 + $0x198] sm:$0xff] %v4639_v33  }
 0x36f   : > { %v2653_v17 = vpop.f32.mrb[208].mxu1 }
 0x370   : > { %v5550_v30 = vpop.f32.mrb[209].mxu1  ;;  %v2972_v48 = vadd.f32 %v2653_v17, %v7722_v2 }
 0x371   : > { %v2656_v47 = vpop.f32.mrb[210].mxu1 }
 0x372   : > { %v2973_v60 = vadd.f32 %v2656_v47, %v7723_v9  ;;  %v5551_v32 = vpop.f32.mrb[211].mxu1 }
 0x374   : > { %v4644_v36 = vpack.c.bf16 %v2973_v60, %v2972_v48 }
 0x376   : > { %4827 = vst [vmem:[%s6552_s12 + $0x1a0] sm:$0xff] %v4644_v36  }
 0x377   : > { %v2661_v56 = vpop.f32.mrb[212].mxu1 }
 0x378   : > { %v5554_v43 = vpop.f32.mrb[213].mxu1  ;;  %v2974_v14 = vadd.f32 %v2661_v56, %v7082_v31 }
 0x379   : > { %v2664_v58 = vpop.f32.mrb[214].mxu1 }
 0x37a   : > { %v2975_v63 = vadd.f32 %v2664_v58, %v7084_v61  ;;  %v5555_v24 = vpop.f32.mrb[215].mxu1 }
 0x37c   : > { %v4649_v38 = vpack.c.bf16 %v2975_v63, %v2974_v14 }
 0x37e   : > { %4828 = vst [vmem:[%s6552_s12 + $0x1a8] sm:$0xff] %v4649_v38  }
 0x37f   : > { %v2669_v13 = vpop.f32.mrb[216].mxu1 }
 0x380   : > { %v5558_v33 = vpop.f32.mrb[217].mxu1  ;;  %v2976_v30 = vadd.f32 %v2669_v13, %v7098_v19 }
 0x381   : > { %v2672_v17 = vpop.f32.mrb[218].mxu1 }
 0x382   : > { %v2977_v47 = vadd.f32 %v2672_v17, %v7100_v45  ;;  %v5559_v2 = vpop.f32.mrb[219].mxu1 }
 0x384   : > { %v4654_v48 = vpack.c.bf16 %v2977_v47, %v2976_v30 }
 0x386   : > { %4829 = vst [vmem:[%s6552_s12 + $0x1b0] sm:$0xff] %v4654_v48  }
 0x387   : > { %v2677_v9 = vpop.f32.mrb[220].mxu1 }
 0x388   : > { %v5562_v60 = vpop.f32.mrb[221].mxu1  ;;  %v2978_v61 = vadd.f32 %v2677_v9, %v7114_v8 }
 0x389   : > { %v2680_v31 = vpop.f32.mrb[222].mxu1 }
 0x38a   : > { %v2979_v32 = vadd.f32 %v2680_v31, %v7116_v37  ;;  %v5563_v36 = vpop.f32.mrb[223].mxu1 }
 0x38c   : > { %v4659_v56 = vpack.c.bf16 %v2979_v32, %v2978_v61 }
 0x38e   : > { %4830 = vst [vmem:[%s6552_s12 + $0x1b8] sm:$0xff] %v4659_v56  }
 0x38f   : > { %v2685_v43 = vpop.f32.mrb[224].mxu1 }
 0x390   : > { %v5566_v58 = vpop.f32.mrb[225].mxu1  ;;  %v2980_v45 = vadd.f32 %v2685_v43, %v7130_v51 }
 0x391   : > { %v2688_v19 = vpop.f32.mrb[226].mxu1 }
 0x392   : > { %v2981_v14 = vadd.f32 %v2688_v19, %v7132_v0  ;;  %v5567_v63 = vpop.f32.mrb[227].mxu1 }
 0x394   : > { %v4664_v24 = vpack.c.bf16 %v2981_v14, %v2980_v45 }
 0x396   : > { %4831 = vst [vmem:[%s6552_s12 + $0x1c0] sm:$0xff] %v4664_v24  }
 0x397   : > { %v2693_v38 = vpop.f32.mrb[228].mxu1 }
 0x398   : > { %v5570_v13 = vpop.f32.mrb[229].mxu1  ;;  %v2982_v37 = vadd.f32 %v2693_v38, %v7146_v62 }
 0x399   : > { %v2696_v8 = vpop.f32.mrb[230].mxu1 }
 0x39a   : > { %v2983_v33 = vadd.f32 %v2696_v8, %v7148_v12  ;;  %v5571_v17 = vpop.f32.mrb[231].mxu1 }
 0x39c   : > { %v4669_v30 = vpack.c.bf16 %v2983_v33, %v2982_v37 }
 0x39e   : > { %4832 = vst [vmem:[%s6552_s12 + $0x1c8] sm:$0xff] %v4669_v30  }
 0x39f   : > { %v2701_v47 = vpop.f32.mrb[232].mxu1 }
 0x3a0   : > { %v5574_v2 = vpop.f32.mrb[233].mxu1  ;;  %v2984_v0 = vadd.f32 %v2701_v47, %v7162_v25 }
 0x3a1   : > { %v2704_v51 = vpop.f32.mrb[234].mxu1 }
 0x3a2   : > { %v2985_v48 = vadd.f32 %v2704_v51, %v7164_v7  ;;  %v5575_v9 = vpop.f32.mrb[235].mxu1 }
 0x3a4   : > { %v4674_v60 = vpack.c.bf16 %v2985_v48, %v2984_v0 }
 0x3a6   : > { %4833 = vst [vmem:[%s6552_s12 + $0x1d0] sm:$0xff] %v4674_v60  }
 0x3a7   : > { %v2709_v31 = vpop.f32.mrb[236].mxu1 }
 0x3a8   : > { %v5578_v61 = vpop.f32.mrb[237].mxu1  ;;  %v2986_v12 = vadd.f32 %v2709_v31, %v7178_v26 }
 0x3a9   : > { %v2712_v62 = vpop.f32.mrb[238].mxu1 }
 0x3aa   : > { %v2987_v32 = vadd.f32 %v2712_v62, %v7180_v16  ;;  %v5579_v36 = vpop.f32.mrb[239].mxu1 }
 0x3ac   : > { %v4679_v56 = vpack.c.bf16 %v2987_v32, %v2986_v12 }
 0x3ae   : > { %4834 = vst [vmem:[%s6552_s12 + $0x1d8] sm:$0xff] %v4679_v56  }
 0x3af   : > { %v2717_v43 = vpop.f32.mrb[240].mxu1 }
 0x3b0   : > { %v5582_v58 = vpop.f32.mrb[241].mxu1  ;;  %v2988_v7 = vadd.f32 %v2717_v43, %v7194_v22 }
 0x3b1   : > { %v2720_v25 = vpop.f32.mrb[242].mxu1 }
 0x3b2   : > { %v2989_v19 = vadd.f32 %v2720_v25, %v7196_v55  ;;  %v5583_v45 = vpop.f32.mrb[243].mxu1 }
 0x3b4   : > { %v4684_v14 = vpack.c.bf16 %v2989_v19, %v2988_v7 }
 0x3b6   : > { %4835 = vst [vmem:[%s6552_s12 + $0x1e0] sm:$0xff] %v4684_v14  }
 0x3b7   : > { %v2725_v63 = vpop.f32.mrb[244].mxu1 }
 0x3b8   : > { %v5586_v24 = vpop.f32.mrb[245].mxu1  ;;  %v2990_v16 = vadd.f32 %v2725_v63, %v7210_v54 }
 0x3b9   : > { %v2728_v26 = vpop.f32.mrb[246].mxu1 }
 0x3ba   : > { %v2991_v38 = vadd.f32 %v2728_v26, %v7212_v10  ;;  %v5587_v13 = vpop.f32.mrb[247].mxu1 }
 0x3bc   : > { %v4689_v8 = vpack.c.bf16 %v2991_v38, %v2990_v16 }
 0x3be   : > { %4836 = vst [vmem:[%s6552_s12 + $0x1e8] sm:$0xff] %v4689_v8  }
 0x3bf   : > { %v2733_v37 = vpop.f32.mrb[248].mxu1 }
 0x3c0   : > { %v5590_v33 = vpop.f32.mrb[249].mxu1  ;;  %v2992_v55 = vadd.f32 %v2733_v37, %v7226_v11 }
 0x3c1   : > { %v2736_v22 = vpop.f32.mrb[250].mxu1 }
 0x3c2   : > { %v2993_v17 = vadd.f32 %v2736_v22, %v7228_v35  ;;  %v5591_v30 = vpop.f32.mrb[251].mxu1 }
 0x3c4   : > { %v4694_v47 = vpack.c.bf16 %v2993_v17, %v2992_v55 }
 0x3c6   : > { %4837 = vst [vmem:[%s6552_s12 + $0x1f0] sm:$0xff] %v4694_v47  }
 0x3c7   : > { %v2741_v2 = vpop.f32.mrb[252].mxu1 }
 0x3c8   : > { %v5594_v51 = vpop.f32.mrb[253].mxu1  ;;  %v2994_v10 = vadd.f32 %v2741_v2, %v7242_v39 }
 0x3c9   : > { %v2744_v54 = vpop.f32.mrb[254].mxu1 }
 0x3ca   : > { %v2995_v0 = vadd.f32 %v2744_v54, %v7244_v44  ;;  %v5595_v48 = vpop.f32.mrb[255].mxu1 }
 0x3cc   : > { %v4699_v9 = vpack.c.bf16 %v2995_v0, %v2994_v10 }
 0x3ce   : > { %4838 = vst [vmem:[%s6552_s12 + $0x1f8] sm:$0xff] %v4699_v9  }
 0x3cf   : > { %v2749_v60 = vpop.f32.mrb[0].mxu1 }
 0x3d0   : > { %v5598_v31 = vpop.f32.mrb[1].mxu1  ;;  %v2996_v35 = vadd.f32 %v2749_v60, %v7258_v53 }
 0x3d1   : > { %v2752_v11 = vpop.f32.mrb[2].mxu1 }
 0x3d2   : > { %v2997_v61 = vadd.f32 %v2752_v11, %v7260_v42  ;;  %v5599_v62 = vpop.f32.mrb[3].mxu1 }
 0x3d4   : > { %v4704_v12 = vpack.c.bf16 %v2997_v61, %v2996_v35 }
 0x3d6   : > { %4839 = vst [vmem:[%s6552_s12 + $0x200] sm:$0xff] %v4704_v12  }
 0x3d7   : > { %v2757_v32 = vpop.f32.mrb[4].mxu1 }
 0x3d8   : > { %v5602_v36 = vpop.f32.mrb[5].mxu1  ;;  %v2998_v44 = vadd.f32 %v2757_v32, %v7274_v4 }
 0x3d9   : > { %v2760_v39 = vpop.f32.mrb[6].mxu1 }
 0x3da   : > { %v2999_v56 = vadd.f32 %v2760_v39, %v7276_v46  ;;  %v5603_v43 = vpop.f32.mrb[7].mxu1 }
 0x3db   : > { %v7725_v43 = vld [vmem:[#allocation12_spill] sm:$0xff] }
 0x3dc   : > { %v4709_v58 = vpack.c.bf16 %v2999_v56, %v2998_v44  ;;  %v7724_v56 = vld [vmem:[#allocation11_spill] sm:$0xff] }
 0x3de   : > { %4840 = vst [vmem:[%s6552_s12 + $0x208] sm:$0xff] %v4709_v58  }
 0x3df   : > { %v2765_v25 = vpop.f32.mrb[8].mxu1 }
 0x3e0   : > { %v5606_v7 = vpop.f32.mrb[9].mxu1  ;;  %v3000_v42 = vadd.f32 %v2765_v25, %v7300_v52 }
 0x3e1   : > { %v2768_v53 = vpop.f32.mrb[10].mxu1 }
 0x3e2   : > { %v3001_v19 = vadd.f32 %v2768_v53, %v7302_v15  ;;  %v5607_v45 = vpop.f32.mrb[11].mxu1 }
 0x3e3   : > { %v7727_v45 = vld [vmem:[#allocation14_spill] sm:$0xff] }
 0x3e4   : > { %v4714_v14 = vpack.c.bf16 %v3001_v19, %v3000_v42  ;;  %v7726_v19 = vld [vmem:[#allocation13_spill] sm:$0xff] }
 0x3e6   : > { %4841 = vst [vmem:[%s6552_s12 + $0x210] sm:$0xff] %v4714_v14  }
 0x3e7   : > { %v2773_v63 = vpop.f32.mrb[12].mxu1 }
 0x3e8   : > { %v5610_v24 = vpop.f32.mrb[13].mxu1  ;;  %v3002_v46 = vadd.f32 %v2773_v63, %v7316_v3 }
 0x3e9   : > { %v2776_v4 = vpop.f32.mrb[14].mxu1 }
 0x3ea   : > { %v3003_v26 = vadd.f32 %v2776_v4, %v7318_v23  ;;  %v5611_v16 = vpop.f32.mrb[15].mxu1 }
 0x3eb   : > { %v7728_v16 = vld [vmem:[#allocation15_spill] sm:$0xff] }
 0x3ec   : > { %v4719_v38 = vpack.c.bf16 %v3003_v26, %v3002_v46 }
 0x3ee   : > { %4842 = vst [vmem:[%s6552_s12 + $0x218] sm:$0xff] %v4719_v38  }
 0x3ef   : > { %v2781_v13 = vpop.f32.mrb[16].mxu1 }
 0x3f0   : > { %v5614_v8 = vpop.f32.mrb[17].mxu1  ;;  %v3004_v15 = vadd.f32 %v2781_v13, %v7332_v50  ;;  %v7729_v13 = vld [vmem:[#allocation16_spill] sm:$0xff] }
 0x3f1   : > { %v2784_v52 = vpop.f32.mrb[18].mxu1 }
 0x3f2   : > { %v3005_v37 = vadd.f32 %v2784_v52, %v7334_v57  ;;  %v5615_v33 = vpop.f32.mrb[19].mxu1 }
 0x3f4   : > { %v4724_v22 = vpack.c.bf16 %v3005_v37, %v3004_v15 }
 0x3f6   : > { %4843 = vst [vmem:[%s6552_s12 + $0x220] sm:$0xff] %v4724_v22  }
 0x3f7   : > { %v2789_v55 = vpop.f32.mrb[20].mxu1 }
 0x3f8   : > { %v5618_v17 = vpop.f32.mrb[21].mxu1  ;;  %v3006_v23 = vadd.f32 %v2789_v55, %v7348_v5 }
 0x3f9   : > { %v2792_v3 = vpop.f32.mrb[22].mxu1 }
 0x3fa   : > { %v3007_v30 = vadd.f32 %v2792_v3, %v7350_v6  ;;  %v5619_v47 = vpop.f32.mrb[23].mxu1 }
 0x3fc   : > { %v4729_v2 = vpack.c.bf16 %v3007_v30, %v3006_v23 }
 0x3fe   : > { %4844 = vst [vmem:[%s6552_s12 + $0x228] sm:$0xff] %v4729_v2  }
 0x3ff   : > { %v2797_v51 = vpop.f32.mrb[24].mxu1 }
 0x400   : > { %v5622_v54 = vpop.f32.mrb[25].mxu1  ;;  %v3008_v57 = vadd.f32 %v2797_v51, %v7364_v21 }
 0x401   : > { %v2800_v50 = vpop.f32.mrb[26].mxu1 }
 0x402   : > { %v3009_v10 = vadd.f32 %v2800_v50, %v7366_v28  ;;  %v5623_v0 = vpop.f32.mrb[27].mxu1 }
 0x404   : > { %v4734_v48 = vpack.c.bf16 %v3009_v10, %v3008_v57 }
 0x406   : > { %4845 = vst [vmem:[%s6552_s12 + $0x230] sm:$0xff] %v4734_v48  }
 0x407   : > { %v2805_v9 = vpop.f32.mrb[28].mxu1 }
 0x408   : > { %v5626_v60 = vpop.f32.mrb[29].mxu1  ;;  %v3010_v6 = vadd.f32 %v2805_v9, %v7380_v41 }
 0x409   : > { %v2808_v5 = vpop.f32.mrb[30].mxu1 }
 0x40a   : > { %v3011_v31 = vadd.f32 %v2808_v5, %v7382_v27  ;;  %v5627_v11 = vpop.f32.mrb[31].mxu1 }
 0x40c   : > { %v4739_v35 = vpack.c.bf16 %v3011_v31, %v3010_v6 }
 0x40e   : > { %4846 = vst [vmem:[%s6552_s12 + $0x238] sm:$0xff] %v4739_v35  }
 0x40f   : > { %v2813_v61 = vpop.f32.mrb[32].mxu1 }
 0x410   : > { %v5630_v62 = vpop.f32.mrb[33].mxu1  ;;  %v3012_v28 = vadd.f32 %v2813_v61, %v7396_v59 }
 0x411   : > { %v2816_v21 = vpop.f32.mrb[34].mxu1 }
 0x412   : > { %v3013_v12 = vadd.f32 %v2816_v21, %v7398_v29  ;;  %v5631_v32 = vpop.f32.mrb[35].mxu1 }
 0x414   : > { %v4744_v36 = vpack.c.bf16 %v3013_v12, %v3012_v28 }
 0x416   : > { %4847 = vst [vmem:[%s6552_s12 + $0x240] sm:$0xff] %v4744_v36  }
 0x417   : > { %v2821_v39 = vpop.f32.mrb[36].mxu1 }
 0x418   : > { %v5634_v44 = vpop.f32.mrb[37].mxu1  ;;  %v3014_v27 = vadd.f32 %v2821_v39, %v7724_v56 }
 0x419   : > { %v2824_v41 = vpop.f32.mrb[38].mxu1 }
 0x41a   : > { %v3015_v58 = vadd.f32 %v2824_v41, %v7725_v43  ;;  %v5635_v25 = vpop.f32.mrb[39].mxu1 }
 0x41c   : > { %v4749_v7 = vpack.c.bf16 %v3015_v58, %v3014_v27 }
 0x41e   : > { %4848 = vst [vmem:[%s6552_s12 + $0x248] sm:$0xff] %v4749_v7  }
 0x41f   : > { %v2829_v53 = vpop.f32.mrb[40].mxu1 }
 0x420   : > { %v5638_v42 = vpop.f32.mrb[41].mxu1  ;;  %v3016_v29 = vadd.f32 %v2829_v53, %v7726_v19 }
 0x421   : > { %v2832_v59 = vpop.f32.mrb[42].mxu1 }
 0x422   : > { %v3017_v14 = vadd.f32 %v2832_v59, %v7727_v45  ;;  %v5639_v63 = vpop.f32.mrb[43].mxu1 }
 0x424   : > { %v4754_v24 = vpack.c.bf16 %v3017_v14, %v3016_v29 }
 0x426   : > { %4849 = vst [vmem:[%s6552_s12 + $0x250] sm:$0xff] %v4754_v24  }
 0x427   : > { %v2837_v4 = vpop.f32.mrb[44].mxu1 }
 0x428   : > { %v5642_v46 = vpop.f32.mrb[45].mxu1  ;;  %v3018_v38 = vadd.f32 %v2837_v4, %v7728_v16 }
 0x429   : > { %v2840_v26 = vpop.f32.mrb[46].mxu1 }
 0x42a   : > { %v3019_v8 = vadd.f32 %v2840_v26, %v7729_v13  ;;  %v5643_v52 = vpop.f32.mrb[47].mxu1 }
 0x42c   : > { %v4759_v15 = vpack.c.bf16 %v3019_v8, %v3018_v38 }
 0x42e   : > { %4850 = vst [vmem:[%s6552_s12 + $0x258] sm:$0xff] %v4759_v15  }
 0x42f   : > { %v2845_v37 = vpop.f32.mrb[48].mxu1 }
 0x430   : > { %v5646_v33 = vpop.f32.mrb[49].mxu1  ;;  %v3020_v55 = vadd.f32 %v2845_v37, %v7460_v18 }
 0x431   : > { %v2848_v22 = vpop.f32.mrb[50].mxu1 }
 0x432   : > { %v3021_v17 = vadd.f32 %v2848_v22, %v7462_v20  ;;  %v5647_v3 = vpop.f32.mrb[51].mxu1 }
 0x434   : > { %v4764_v23 = vpack.c.bf16 %v3021_v17, %v3020_v55 }
 0x436   : > { %4851 = vst [vmem:[%s6552_s12 + $0x260] sm:$0xff] %v4764_v23  }
 0x437   : > { %v2853_v30 = vpop.f32.mrb[52].mxu1 }
 0x438   : > { %v5650_v47 = vpop.f32.mrb[53].mxu1  ;;  %v3022_v51 = vadd.f32 %v2853_v30, %v7476_v49 }
 0x439   : > { %v2856_v2 = vpop.f32.mrb[54].mxu1 }
 0x43a   : > { %v3023_v54 = vadd.f32 %v2856_v2, %v7478_v34  ;;  %v5651_v50 = vpop.f32.mrb[55].mxu1 }
 0x43c   : > { %v4769_v57 = vpack.c.bf16 %v3023_v54, %v3022_v51 }
 0x43e   : > { %4852 = vst [vmem:[%s6552_s12 + $0x268] sm:$0xff] %v4769_v57  }
 0x43f   : > { %v2861_v18 = vpop.f32.mrb[56].mxu1 }
 0x440   : > { %v5654_v10 = vpop.f32.mrb[57].mxu1  ;;  %v3024_v0 = vadd.f32 %v2861_v18, %v7492_v1 }
 0x441   : > { %v2864_v20 = vpop.f32.mrb[58].mxu1 }
 0x442   : > { %v3025_v48 = vadd.f32 %v2864_v20, %v7494_v40  ;;  %v5655_v9 = vpop.f32.mrb[59].mxu1 }
 0x444   : > { %v4774_v49 = vpack.c.bf16 %v3025_v48, %v3024_v0 }
 0x446   : > { %4853 = vst [vmem:[%s6552_s12 + $0x270] sm:$0xff] %v4774_v49  }
 0x447   : > { %5723 = shalt.err (!%p5720_p3)
}
 0x448   : > { %s5724_s10 = scalar_lea.hbm %s7587_s9, 10112  ;;  %s5728_s13 = scalar_lea.hbm %s7640_s5, 20224 }
 0x449   : > { %p5725_p4 = scmp.ne.s32.totalorder %s7587_s9, %s5724_s10  ;;  %p5729_p9 = scmp.lt.u32.totalorder %s7587_s9, %s7640_s5 }
 0x44a   : > { %p5730_p10 = scmp.lt.u32.totalorder %s5728_s13, %s5724_s10  ;;  %p5732_p12 = scmp.lt.u32.totalorder %s5724_s10, %s7587_s9 }
 0x44b   : > { %p5726_p7 = pnand %p5725_p4, %p5847_p5 }
 0x44c   : > { %p5731_p11 = por %p5730_p10, %p5729_p9 }
 0x44d   : > { %p5727_p8 = pneg %p5726_p7 }
 0x44e   : > { %p5733_p13 = por %p5732_p12, %p5731_p11 }
 0x450   : > { %p5734_p0 = pnand %p5733_p13, %p5727_p8 }
 0x452   : > { %5737 = shalt.err (!%p5734_p0)
}
 0x453   : > { %s5777_s26 = smov 64   ;;  %s5778_s30 = smov 4  }
 0x454   : > { %5657 = dma.vmem_to_hbm [thread:$0]  (%p5847_p5), %s7589_s6, 10112, %s7587_s9, %s7594_s22, %s5777_s26, %s5777_s26, %s5778_s30  }
 0x455 PF: > { %p5663_p1 = scmp.ge.s32.totalorder %s5772_s21, 2  ;;  %s3845_s7 = sand.u32 1, %s5760_s18  }
 0x456   : > { %s3846_s8 = scalar_lea.sflag [#allocation3], %s3845_s7 }
 0x457   : > { %p5660_p2 = pnand %p5663_p1, %p5851_p6 }
 0x459   : > { %5755 = dma.done.wait (!%p5660_p2), %s3846_s8, 10112  }
 0x45a   : > { %5757 = vsyncadd (!%p5660_p2), %s3846_s8, 4294957184  ;;  %p15_p3 = scmp.ge.s32.totalorder %s5834_s24, 4   ;;  %s7730_s18 = smov %s5764_s19 }
 0x45b   : > { %s7731_s19 = smov %s5768_s20  ;;  %s7732_s20 = smov %s5845_s27 }
 0x45c   : > { %s7733_s21 = smov %s5834_s24  ;;  %17 = sbr.rel (!%p15_p3) target bundleno = 3 (0x3), region = 75 }
 0x463   :  { %3851 = vsyncpa [#allocation3], 1 }
 0x464   :  { %3853 = vsyncpa [#allocation3 + $0x1], 1 }

</bundles_post_ra>
